<compile_context>
chip_gen: v5e
topology: v5e:2x2
jax: 0.10.0
libtpu: 0.0.40
codegen_flags: <defaults>
</compile_context>

<pallas_src>
import math

import numpy as np
import jax
import jax.numpy as jnp
from jax.experimental import pallas as pl
from jax.experimental.pallas import tpu as pltpu

# ------------------------------- configuration -------------------------------
B, SEQ = 2, 8                  # batch, max_len
VOCAB, EMB = 50, 16            # vocab size, embedding dim
HIDDEN = 32                    # hidden_size == encoder output feature size
NUM_LAYERS = 3                 # module default
NDIR = 2                       # bidirectional=True
HD = HIDDEN // NDIR            # per-direction hidden size (16)
GATES = 4 * HD                 # per-direction gate width, PyTorch order i,f,g,o
GL = NDIR * GATES              # 128 packed gate lanes: [i_f|i_b|f_f|f_b|g_f|g_b|o_f|o_b]
IN_PAD = 128                   # lane-dense input / activation slab width
G2 = NDIR * HD                 # 32 = width of one gate group (both directions)


def _sigmoid(v):
    # tanh form: overflow-free and runs on the EUP slot.
    return 0.5 * jnp.tanh(0.5 * v) + 0.5


# -------------------------------- Pallas kernel -------------------------------
def _lstm_encoder_kernel(x_ref, mask_ref, wih_ref, whh_ref, b_ref,
                         out_ref, hc_ref, act_ref):
    """Fused multi-layer bidirectional LSTM (all layers, both directions).

    x_ref:    (SEQ*B, 128)  time-major embedded tokens, zero-padded lanes
    mask_ref: (SEQ*B, 2*HD) row (t,b): [mask(b,t)]*HD | [mask(b,SEQ-1-t)]*HD
    wih_ref:  (L, NDIR, 128, 128) per-direction input weights at their gate lanes
    whh_ref:  (L, 2*HD, 128)      block-diagonal recurrence weights
    b_ref:    (L, 1, 128)         b_ih + b_hh, both directions, at gate lanes
    out_ref:  (SEQ*B, 128)  last-layer outputs (lanes 0:2*HD used, rest zero)
    hc_ref:   (2*B, 2*HD)   rows 0:B = h_n [fwd|bwd], rows B:2B = c_n
    act_ref:  (SEQ*B, 128)  VMEM scratch: inter-layer activation slab
    """
    # well-defined padding lanes (and avoid NaN*0 from stale VMEM feeding the MXU)
    act_ref[...] = jnp.zeros_like(act_ref)
    out_ref[...] = jnp.zeros_like(out_ref)

    mask = mask_ref[...]                 # (SEQ*B, 2*HD), combined fwd/bwd masks
    inv_mask = 1.0 - mask                # hoisted out of all loops

    h = jnp.zeros((B, G2), jnp.float32)
    c = jnp.zeros((B, G2), jnp.float32)

    for layer in range(NUM_LAYERS):
        src = x_ref if layer == 0 else act_ref
        dst = out_ref if layer == NUM_LAYERS - 1 else act_ref
        layer_in = src[...]                                       # (SEQ*B, 128)

        # One lane-dense MXU input projection per direction for ALL timesteps.
        # gx_f is nonzero only on fwd gate lanes, gx_b only on bwd gate lanes.
        gx_f = (jnp.dot(layer_in, wih_ref[layer, 0],
                        preferred_element_type=jnp.float32) + b_ref[layer])
        gx_b = jnp.dot(layer_in, wih_ref[layer, 1],
                       preferred_element_type=jnp.float32)
        w_hh = whh_ref[layer]                                      # (2*HD, 128)

        h = jnp.zeros((B, G2), jnp.float32)
        c = jnp.zeros((B, G2), jnp.float32)
        for t in range(SEQ):            # fused step: fwd at t, bwd at SEQ-1-t
            rt = t * B
            rr = (SEQ - 1 - t) * B
            # single 128-wide block-diagonal recurrence matmul + full-row adds
            g = (gx_f[rt:rt + B] + gx_b[rr:rr + B]
                 + jnp.dot(h, w_hh, preferred_element_type=jnp.float32))
            i_g = _sigmoid(g[:, 0 * G2:1 * G2])
            f_g = _sigmoid(g[:, 1 * G2:2 * G2])
            g_g = jnp.tanh(g[:, 2 * G2:3 * G2])
            o_g = _sigmoid(g[:, 3 * G2:4 * G2])
            c_new = f_g * c + i_g * g_g                            # (B, 2*HD)
            h_new = o_g * jnp.tanh(c_new)
            m = mask[rt:rt + B]
            im = inv_mask[rt:rt + B]
            out_v = m * h_new               # padded timesteps stay exactly zero
            h = out_v + im * h              # freeze state past seq_len (packed-seq)
            c = m * c_new + im * c
            # direct stores, no concatenates: fwd half -> time t, bwd half -> SEQ-1-t
            dst[rt:rt + B, 0:HD] = out_v[:, 0:HD]
            dst[rr:rr + B, HD:2 * HD] = out_v[:, HD:2 * HD]

    # last-layer final states, packed into one small output slab
    hc_ref[0:B, :] = h
    hc_ref[B:2 * B, :] = c


# ------------------------------------ wrapper ---------------------------------
def lstm_seq2seq_encoder_forward(tokens, seq_len, params):
    """tokens: (B, SEQ) int32; seq_len: (B,) int32.

    Returns ((output, (h_n, c_n)), encoder_mask), matching the PyTorch module:
      output: (B, SEQ, HIDDEN), h_n/c_n: (B, HIDDEN), encoder_mask: (B, SEQ) bool
    """
    # Embedding gather is plain-JAX glue around the fused kernel.
    x = params['embed'][tokens]                                    # (B, SEQ, EMB)
    x = jnp.transpose(x, (1, 0, 2)).reshape(SEQ * B, EMB).astype(jnp.float32)
    x = jnp.pad(x, ((0, 0), (0, IN_PAD - EMB)))                    # lane-dense slab

    valid = jnp.arange(SEQ)[None, :] < seq_len[:, None]            # seq_len_to_mask
    vf = valid.T.astype(jnp.float32).reshape(SEQ * B, 1)           # mask(b, t)
    vb = valid.T[::-1].astype(jnp.float32).reshape(SEQ * B, 1)     # mask(b, SEQ-1-t)
    mask2d = jnp.concatenate([jnp.repeat(vf, HD, axis=1),
                              jnp.repeat(vb, HD, axis=1)], axis=1)  # (SEQ*B, 2*HD)

    vmem_spec = pl.BlockSpec(memory_space=pltpu.MemorySpace.VMEM)
    out_slab, hc = pl.pallas_call(
        _lstm_encoder_kernel,
        out_shape=(jax.ShapeDtypeStruct((SEQ * B, IN_PAD), jnp.float32),
                   jax.ShapeDtypeStruct((2 * B, NDIR * HD), jnp.float32)),
        in_specs=[vmem_spec] * 5,
        out_specs=(vmem_spec, vmem_spec),
        scratch_shapes=[pltpu.VMEM((SEQ * B, IN_PAD), jnp.float32)],
        compiler_params=pltpu.CompilerParams(vmem_limit_bytes=64 * 1024 * 1024),
    )(x, mask2d, params['w_ih'], params['w_hh'], params['b'])

    output = jnp.transpose(out_slab[:, :NDIR * HD].reshape(SEQ, B, NDIR * HD),
                           (1, 0, 2))                              # (B, SEQ, HIDDEN)
    h_last = hc[:B]                    # [h_fwd | h_bwd] of last layer (concat_bidir[-1])
    c_last = hc[B:]
    return (output, (h_last, c_last)), valid


# ---------------------------------- parameters --------------------------------
def init_params(key):
    """Random init (PyTorch LSTM bound).  Packs weights into:
       w_ih: (L, NDIR, 128, 128)  per-direction, at interleaved gate lanes
       w_hh: (L, 2*HD, 128)       block-diagonal (fwd rows -> fwd lanes, bwd -> bwd)
       b:    (L, 1, 128)          b_ih + b_hh at gate lanes
    Raw per-direction weights are kept for the float64 reference check."""
    k_emb, key = jax.random.split(key)
    embed = jax.random.normal(k_emb, (VOCAB, EMB)).astype(jnp.float32)

    bound = 1.0 / math.sqrt(HD)
    raw = []
    for layer in range(NUM_LAYERS):
        in_w = EMB if layer == 0 else NDIR * HD
        dirs = []
        for d in range(NDIR):
            key, k1, k2, k3, k4 = jax.random.split(key, 5)
            wi = jax.random.uniform(k1, (in_w, GATES), jnp.float32, -bound, bound)
            wh = jax.random.uniform(k2, (HD, GATES), jnp.float32, -bound, bound)
            bi = jax.random.uniform(k3, (GATES,), jnp.float32, -bound, bound)
            bh = jax.random.uniform(k4, (GATES,), jnp.float32, -bound, bound)
            dirs.append((np.asarray(wi, np.float32),
                         np.asarray(wh, np.float32),
                         np.asarray(bi + bh, np.float32)))
        raw.append(dirs)

    w_ih = np.zeros((NUM_LAYERS, NDIR, IN_PAD, GL), np.float32)
    w_hh = np.zeros((NUM_LAYERS, NDIR * HD, GL), np.float32)
    bias = np.zeros((NUM_LAYERS, 1, GL), np.float32)
    for layer in range(NUM_LAYERS):
        in_w = EMB if layer == 0 else NDIR * HD
        for d in range(NDIR):
            wi, wh, bb = raw[layer][d]
            for gate in range(4):
                dst = gate * NDIR * HD + d * HD     # interleaved gate-lane offset
                src = gate * HD
                w_ih[layer, d, :in_w, dst:dst + HD] = wi[:, src:src + HD]
                w_hh[layer, d * HD:(d + 1) * HD, dst:dst + HD] = wh[:, src:src + HD]
                bias[layer, 0, dst:dst + HD] = bb[src:src + HD]

    return {'embed': embed, 'w_ih': jnp.asarray(w_ih), 'w_hh': jnp.asarray(w_hh),
            'b': jnp.asarray(bias), 'raw': raw}


# ------------------------- float64 numpy reference (sanity) -------------------
def _reference_forward(tokens, seq_len, params):
    def sig(v):
        return 1.0 / (1.0 + np.exp(-v))

    emb = np.asarray(params['embed'], np.float64)
    tok = np.asarray(tokens)
    sl = np.asarray(seq_len)

    layer_in = emb[tok]                                            # (B, SEQ, EMB)
    out = None
    h_fin = np.zeros((NDIR, B, HD))
    c_fin = np.zeros((NDIR, B, HD))
    for layer in range(NUM_LAYERS):
        layer_out = np.zeros((B, SEQ, NDIR * HD))
        for d in range(NDIR):
            wi, wh, bb = [np.asarray(a, np.float64) for a in params['raw'][layer][d]]
            for bi_ in range(B):
                h = np.zeros(HD)
                c = np.zeros(HD)
                n = int(sl[bi_])
                order = range(n) if d == 0 else range(n - 1, -1, -1)
                for t in order:
                    g = layer_in[bi_, t] @ wi + h @ wh + bb
                    i_g = sig(g[0:HD]); f_g = sig(g[HD:2 * HD])
                    g_g = np.tanh(g[2 * HD:3 * HD]); o_g = sig(g[3 * HD:4 * HD])
                    c = f_g * c + i_g * g_g
                    h = o_g * np.tanh(c)
                    layer_out[bi_, t, d * HD:(d + 1) * HD] = h
                h_fin[d, bi_] = h
                c_fin[d, bi_] = c
        layer_in = layer_out
        out = layer_out
    h_last = np.concatenate([h_fin[0], h_fin[1]], axis=-1)
    c_last = np.concatenate([c_fin[0], c_fin[1]], axis=-1)
    return out, h_last, c_last


# -------------------------------------- main ----------------------------------
if __name__ == "__main__":
    key = jax.random.PRNGKey(0)
    pkey, tkey = jax.random.split(key)
    params = init_params(pkey)

    tokens = jax.random.randint(tkey, (B, SEQ), 0, VOCAB, dtype=jnp.int32)
    seq_len = jnp.array([SEQ, 5], dtype=jnp.int32)

    (out, (h_n, c_n)), enc_mask = lstm_seq2seq_encoder_forward(tokens, seq_len, params)
    jax.block_until_ready(out)
    jax.block_until_ready(h_n)
    jax.block_until_ready(c_n)
    jax.block_until_ready(enc_mask)

    # shapes / dtypes as the module documents
    assert out.shape == (B, SEQ, HIDDEN) and out.dtype == jnp.float32
    assert h_n.shape == (B, HIDDEN) and c_n.shape == (B, HIDDEN)
    assert enc_mask.shape == (B, SEQ) and enc_mask.dtype == jnp.bool_
    assert bool(jnp.all(jnp.isfinite(out)))

    # packed-sequence semantics: outputs at padded positions are exactly zero
    assert bool(jnp.all(out[1, 5:, :] == 0.0))
    # final states match the sequence output at the right positions
    assert bool(jnp.allclose(h_n[1, :HD], out[1, 4, :HD], atol=1e-6))
    assert bool(jnp.allclose(h_n[1, HD:], out[1, 0, HD:], atol=1e-6))

    # numeric sanity check against a float64 numpy reference
    ref_out, ref_h, ref_c = _reference_forward(tokens, seq_len, params)
    np.testing.assert_allclose(np.asarray(out), ref_out, rtol=2e-3, atol=2e-4)
    np.testing.assert_allclose(np.asarray(h_n), ref_h, rtol=2e-3, atol=2e-4)
    np.testing.assert_allclose(np.asarray(c_n), ref_c, rtol=2e-3, atol=2e-4)

    print("KERNEL_OK")
</pallas_src>

<mosaic_0001>
module attributes {stable_mosaic.version = 11 : i64} {
  func.func @_lstm_encoder_kernel(%arg0: memref<16x128xf32, #tpu.memory_space<vmem>>, %arg1: memref<16x32xf32, #tpu.memory_space<vmem>>, %arg2: memref<3x2x128x128xf32, #tpu.memory_space<vmem>>, %arg3: memref<3x32x128xf32, #tpu.memory_space<vmem>>, %arg4: memref<3x1x128xf32, #tpu.memory_space<vmem>>, %arg5: memref<16x128xf32, #tpu.memory_space<vmem>>, %arg6: memref<4x32xf32, #tpu.memory_space<vmem>>, %arg7: memref<16x128xf32, #tpu.memory_space<vmem>>) attributes {dimension_semantics = [], scalar_prefetch = 0 : i64, scratch_operands = 1 : i64, tpu.core_type = #tpu.core_type<tc>} {
    %cst = arith.constant 0.000000e+00 : f32
    %0 = vector.broadcast %cst : f32 to vector<16x128xf32>
    %c0 = arith.constant 0 : index
    %c0_0 = arith.constant 0 : index
    %1 = vector.load %arg7[%c0, %c0_0] : memref<16x128xf32, #tpu.memory_space<vmem>>, vector<16x128xf32>
    tpu.vector_store %arg7[%c0, %c0_0], %0 {strides = array<i32>} : memref<16x128xf32, #tpu.memory_space<vmem>>, vector<16x128xf32>,
    %cst_1 = arith.constant 0.000000e+00 : f32
    %2 = vector.broadcast %cst_1 : f32 to vector<16x128xf32>
    %c0_2 = arith.constant 0 : index
    %c0_3 = arith.constant 0 : index
    %3 = vector.load %arg5[%c0_2, %c0_3] : memref<16x128xf32, #tpu.memory_space<vmem>>, vector<16x128xf32>
    tpu.vector_store %arg5[%c0_2, %c0_3], %2 {strides = array<i32>} : memref<16x128xf32, #tpu.memory_space<vmem>>, vector<16x128xf32>,
    %c0_4 = arith.constant 0 : index
    %c0_5 = arith.constant 0 : index
    %4 = vector.load %arg1[%c0_4, %c0_5] : memref<16x32xf32, #tpu.memory_space<vmem>>, vector<16x32xf32>
    %cst_6 = arith.constant 1.000000e+00 : f32
    %5 = vector.broadcast %cst_6 : f32 to vector<16x32xf32>
    %6 = arith.subf %5, %4 : vector<16x32xf32>
    %c0_7 = arith.constant 0 : index
    %c0_8 = arith.constant 0 : index
    %7 = vector.load %arg0[%c0_7, %c0_8] : memref<16x128xf32, #tpu.memory_space<vmem>>, vector<16x128xf32>
    %c0_9 = arith.constant 0 : index
    %c0_10 = arith.constant 0 : index
    %c0_11 = arith.constant 0 : index
    %c0_12 = arith.constant 0 : index
    %8 = vector.load %arg2[%c0_9, %c0_10, %c0_11, %c0_12] : memref<3x2x128x128xf32, #tpu.memory_space<vmem>>, vector<1x1x128x128xf32>
    %9 = vector.shape_cast %8 : vector<1x1x128x128xf32> to vector<128x128xf32>
    %cst_13 = arith.constant dense<0.000000e+00> : vector<16x128xf32>
    %10 = tpu.matmul %7, %9, %cst_13 {dimension_numbers = #tpu.dot_dimension_numbers<[1], [0], [0], [1], [0, 0, 1, 1], [], []>} : vector<16x128xf32>, vector<128x128xf32>, vector<16x128xf32> -> vector<16x128xf32>
    %c0_14 = arith.constant 0 : index
    %c0_15 = arith.constant 0 : index
    %c0_16 = arith.constant 0 : index
    %11 = vector.load %arg4[%c0_14, %c0_15, %c0_16] : memref<3x1x128xf32, #tpu.memory_space<vmem>>, vector<1x1x128xf32>
    %12 = vector.shape_cast %11 : vector<1x1x128xf32> to vector<1x128xf32>
    %13 = vector.broadcast %12 : vector<1x128xf32> to vector<16x128xf32>
    %14 = arith.addf %10, %13 : vector<16x128xf32>
    %c0_17 = arith.constant 0 : index
    %c1 = arith.constant 1 : index
    %c0_18 = arith.constant 0 : index
    %c0_19 = arith.constant 0 : index
    %15 = vector.load %arg2[%c0_17, %c1, %c0_18, %c0_19] : memref<3x2x128x128xf32, #tpu.memory_space<vmem>>, vector<1x1x128x128xf32>
    %16 = vector.shape_cast %15 : vector<1x1x128x128xf32> to vector<128x128xf32>
    %cst_20 = arith.constant dense<0.000000e+00> : vector<16x128xf32>
    %17 = tpu.matmul %7, %16, %cst_20 {dimension_numbers = #tpu.dot_dimension_numbers<[1], [0], [0], [1], [0, 0, 1, 1], [], []>} : vector<16x128xf32>, vector<128x128xf32>, vector<16x128xf32> -> vector<16x128xf32>
    %c0_21 = arith.constant 0 : index
    %c0_22 = arith.constant 0 : index
    %c0_23 = arith.constant 0 : index
    %18 = vector.load %arg3[%c0_21, %c0_22, %c0_23] : memref<3x32x128xf32, #tpu.memory_space<vmem>>, vector<1x32x128xf32>
    %19 = vector.shape_cast %18 : vector<1x32x128xf32> to vector<32x128xf32>
    %cst_24 = arith.constant 0.000000e+00 : f32
    %20 = vector.broadcast %cst_24 : f32 to vector<2x32xf32>
    %cst_25 = arith.constant 0.000000e+00 : f32
    %21 = vector.broadcast %cst_25 : f32 to vector<2x32xf32>
    %22 = vector.extract_strided_slice %14 {offsets = [0, 0], sizes = [2, 128], strides = [1, 1]} : vector<16x128xf32> to vector<2x128xf32>
    %23 = vector.extract_strided_slice %17 {offsets = [14, 0], sizes = [2, 128], strides = [1, 1]} : vector<16x128xf32> to vector<2x128xf32>
    %24 = arith.addf %22, %23 : vector<2x128xf32>
    %cst_26 = arith.constant dense<0.000000e+00> : vector<2x128xf32>
    %25 = tpu.matmul %20, %19, %cst_26 {dimension_numbers = #tpu.dot_dimension_numbers<[1], [0], [0], [1], [0, 0, 1, 1], [], []>} : vector<2x32xf32>, vector<32x128xf32>, vector<2x128xf32> -> vector<2x128xf32>
    %26 = arith.addf %24, %25 : vector<2x128xf32>
    %27 = vector.extract_strided_slice %26 {offsets = [0, 0], sizes = [2, 32], strides = [1, 1]} : vector<2x128xf32> to vector<2x32xf32>
    %cst_27 = arith.constant 5.000000e-01 : f32
    %28 = vector.broadcast %cst_27 : f32 to vector<2x32xf32>
    %29 = arith.mulf %28, %27 : vector<2x32xf32>
    %30 = math.tanh %29 : vector<2x32xf32>
    %cst_28 = arith.constant 5.000000e-01 : f32
    %31 = vector.broadcast %cst_28 : f32 to vector<2x32xf32>
    %32 = arith.mulf %31, %30 : vector<2x32xf32>
    %cst_29 = arith.constant 5.000000e-01 : f32
    %33 = vector.broadcast %cst_29 : f32 to vector<2x32xf32>
    %34 = arith.addf %32, %33 : vector<2x32xf32>
    %35 = vector.extract_strided_slice %26 {offsets = [0, 32], sizes = [2, 32], strides = [1, 1]} : vector<2x128xf32> to vector<2x32xf32>
    %cst_30 = arith.constant 5.000000e-01 : f32
    %36 = vector.broadcast %cst_30 : f32 to vector<2x32xf32>
    %37 = arith.mulf %36, %35 : vector<2x32xf32>
    %38 = math.tanh %37 : vector<2x32xf32>
    %cst_31 = arith.constant 5.000000e-01 : f32
    %39 = vector.broadcast %cst_31 : f32 to vector<2x32xf32>
    %40 = arith.mulf %39, %38 : vector<2x32xf32>
    %cst_32 = arith.constant 5.000000e-01 : f32
    %41 = vector.broadcast %cst_32 : f32 to vector<2x32xf32>
    %42 = arith.addf %40, %41 : vector<2x32xf32>
    %43 = vector.extract_strided_slice %26 {offsets = [0, 64], sizes = [2, 32], strides = [1, 1]} : vector<2x128xf32> to vector<2x32xf32>
    %44 = math.tanh %43 : vector<2x32xf32>
    %45 = vector.extract_strided_slice %26 {offsets = [0, 96], sizes = [2, 32], strides = [1, 1]} : vector<2x128xf32> to vector<2x32xf32>
    %cst_33 = arith.constant 5.000000e-01 : f32
    %46 = vector.broadcast %cst_33 : f32 to vector<2x32xf32>
    %47 = arith.mulf %46, %45 : vector<2x32xf32>
    %48 = math.tanh %47 : vector<2x32xf32>
    %cst_34 = arith.constant 5.000000e-01 : f32
    %49 = vector.broadcast %cst_34 : f32 to vector<2x32xf32>
    %50 = arith.mulf %49, %48 : vector<2x32xf32>
    %cst_35 = arith.constant 5.000000e-01 : f32
    %51 = vector.broadcast %cst_35 : f32 to vector<2x32xf32>
    %52 = arith.addf %50, %51 : vector<2x32xf32>
    %53 = arith.mulf %42, %21 : vector<2x32xf32>
    %54 = arith.mulf %34, %44 : vector<2x32xf32>
    %55 = arith.addf %53, %54 : vector<2x32xf32>
    %56 = math.tanh %55 : vector<2x32xf32>
    %57 = arith.mulf %52, %56 : vector<2x32xf32>
    %58 = vector.extract_strided_slice %4 {offsets = [0, 0], sizes = [2, 32], strides = [1, 1]} : vector<16x32xf32> to vector<2x32xf32>
    %59 = vector.extract_strided_slice %6 {offsets = [0, 0], sizes = [2, 32], strides = [1, 1]} : vector<16x32xf32> to vector<2x32xf32>
    %60 = arith.mulf %58, %57 : vector<2x32xf32>
    %61 = arith.mulf %59, %20 : vector<2x32xf32>
    %62 = arith.addf %60, %61 : vector<2x32xf32>
    %63 = arith.mulf %58, %55 : vector<2x32xf32>
    %64 = arith.mulf %59, %21 : vector<2x32xf32>
    %65 = arith.addf %63, %64 : vector<2x32xf32>
    %66 = vector.extract_strided_slice %60 {offsets = [0, 0], sizes = [2, 16], strides = [1, 1]} : vector<2x32xf32> to vector<2x16xf32>
    %c0_36 = arith.constant 0 : index
    %c0_37 = arith.constant 0 : index
    %67 = vector.load %arg7[%c0_36, %c0_37] : memref<16x128xf32, #tpu.memory_space<vmem>>, vector<2x16xf32>
    tpu.vector_store %arg7[%c0_36, %c0_37], %66 {strides = array<i32>} : memref<16x128xf32, #tpu.memory_space<vmem>>, vector<2x16xf32>,
    %68 = vector.extract_strided_slice %60 {offsets = [0, 16], sizes = [2, 16], strides = [1, 1]} : vector<2x32xf32> to vector<2x16xf32>
    %c14 = arith.constant 14 : index
    %c16 = arith.constant 16 : index
    %69 = vector.load %arg7[%c14, %c16] : memref<16x128xf32, #tpu.memory_space<vmem>>, vector<2x16xf32>
    tpu.vector_store %arg7[%c14, %c16], %68 {strides = array<i32>} : memref<16x128xf32, #tpu.memory_space<vmem>>, vector<2x16xf32>,
    %70 = vector.extract_strided_slice %14 {offsets = [2, 0], sizes = [2, 128], strides = [1, 1]} : vector<16x128xf32> to vector<2x128xf32>
    %71 = vector.extract_strided_slice %17 {offsets = [12, 0], sizes = [2, 128], strides = [1, 1]} : vector<16x128xf32> to vector<2x128xf32>
    %72 = arith.addf %70, %71 : vector<2x128xf32>
    %cst_38 = arith.constant dense<0.000000e+00> : vector<2x128xf32>
    %73 = tpu.matmul %62, %19, %cst_38 {dimension_numbers = #tpu.dot_dimension_numbers<[1], [0], [0], [1], [0, 0, 1, 1], [], []>} : vector<2x32xf32>, vector<32x128xf32>, vector<2x128xf32> -> vector<2x128xf32>
    %74 = arith.addf %72, %73 : vector<2x128xf32>
    %75 = vector.extract_strided_slice %74 {offsets = [0, 0], sizes = [2, 32], strides = [1, 1]} : vector<2x128xf32> to vector<2x32xf32>
    %cst_39 = arith.constant 5.000000e-01 : f32
    %76 = vector.broadcast %cst_39 : f32 to vector<2x32xf32>
    %77 = arith.mulf %76, %75 : vector<2x32xf32>
    %78 = math.tanh %77 : vector<2x32xf32>
    %cst_40 = arith.constant 5.000000e-01 : f32
    %79 = vector.broadcast %cst_40 : f32 to vector<2x32xf32>
    %80 = arith.mulf %79, %78 : vector<2x32xf32>
    %cst_41 = arith.constant 5.000000e-01 : f32
    %81 = vector.broadcast %cst_41 : f32 to vector<2x32xf32>
    %82 = arith.addf %80, %81 : vector<2x32xf32>
    %83 = vector.extract_strided_slice %74 {offsets = [0, 32], sizes = [2, 32], strides = [1, 1]} : vector<2x128xf32> to vector<2x32xf32>
    %cst_42 = arith.constant 5.000000e-01 : f32
    %84 = vector.broadcast %cst_42 : f32 to vector<2x32xf32>
    %85 = arith.mulf %84, %83 : vector<2x32xf32>
    %86 = math.tanh %85 : vector<2x32xf32>
    %cst_43 = arith.constant 5.000000e-01 : f32
    %87 = vector.broadcast %cst_43 : f32 to vector<2x32xf32>
    %88 = arith.mulf %87, %86 : vector<2x32xf32>
    %cst_44 = arith.constant 5.000000e-01 : f32
    %89 = vector.broadcast %cst_44 : f32 to vector<2x32xf32>
    %90 = arith.addf %88, %89 : vector<2x32xf32>
    %91 = vector.extract_strided_slice %74 {offsets = [0, 64], sizes = [2, 32], strides = [1, 1]} : vector<2x128xf32> to vector<2x32xf32>
    %92 = math.tanh %91 : vector<2x32xf32>
    %93 = vector.extract_strided_slice %74 {offsets = [0, 96], sizes = [2, 32], strides = [1, 1]} : vector<2x128xf32> to vector<2x32xf32>
    %cst_45 = arith.constant 5.000000e-01 : f32
    %94 = vector.broadcast %cst_45 : f32 to vector<2x32xf32>
    %95 = arith.mulf %94, %93 : vector<2x32xf32>
    %96 = math.tanh %95 : vector<2x32xf32>
    %cst_46 = arith.constant 5.000000e-01 : f32
    %97 = vector.broadcast %cst_46 : f32 to vector<2x32xf32>
    %98 = arith.mulf %97, %96 : vector<2x32xf32>
    %cst_47 = arith.constant 5.000000e-01 : f32
    %99 = vector.broadcast %cst_47 : f32 to vector<2x32xf32>
    %100 = arith.addf %98, %99 : vector<2x32xf32>
    %101 = arith.mulf %90, %65 : vector<2x32xf32>
    %102 = arith.mulf %82, %92 : vector<2x32xf32>
    %103 = arith.addf %101, %102 : vector<2x32xf32>
    %104 = math.tanh %103 : vector<2x32xf32>
    %105 = arith.mulf %100, %104 : vector<2x32xf32>
    %106 = vector.extract_strided_slice %4 {offsets = [2, 0], sizes = [2, 32], strides = [1, 1]} : vector<16x32xf32> to vector<2x32xf32>
    %107 = vector.extract_strided_slice %6 {offsets = [2, 0], sizes = [2, 32], strides = [1, 1]} : vector<16x32xf32> to vector<2x32xf32>
    %108 = arith.mulf %106, %105 : vector<2x32xf32>
    %109 = arith.mulf %107, %62 : vector<2x32xf32>
    %110 = arith.addf %108, %109 : vector<2x32xf32>
    %111 = arith.mulf %106, %103 : vector<2x32xf32>
    %112 = arith.mulf %107, %65 : vector<2x32xf32>
    %113 = arith.addf %111, %112 : vector<2x32xf32>
    %114 = vector.extract_strided_slice %108 {offsets = [0, 0], sizes = [2, 16], strides = [1, 1]} : vector<2x32xf32> to vector<2x16xf32>
    %c2 = arith.constant 2 : index
    %c0_48 = arith.constant 0 : index
    %115 = vector.load %arg7[%c2, %c0_48] : memref<16x128xf32, #tpu.memory_space<vmem>>, vector<2x16xf32>
    tpu.vector_store %arg7[%c2, %c0_48], %114 {strides = array<i32>} : memref<16x128xf32, #tpu.memory_space<vmem>>, vector<2x16xf32>,
    %116 = vector.extract_strided_slice %108 {offsets = [0, 16], sizes = [2, 16], strides = [1, 1]} : vector<2x32xf32> to vector<2x16xf32>
    %c12 = arith.constant 12 : index
    %c16_49 = arith.constant 16 : index
    %117 = vector.load %arg7[%c12, %c16_49] : memref<16x128xf32, #tpu.memory_space<vmem>>, vector<2x16xf32>
    tpu.vector_store %arg7[%c12, %c16_49], %116 {strides = array<i32>} : memref<16x128xf32, #tpu.memory_space<vmem>>, vector<2x16xf32>,
    %118 = vector.extract_strided_slice %14 {offsets = [4, 0], sizes = [2, 128], strides = [1, 1]} : vector<16x128xf32> to vector<2x128xf32>
    %119 = vector.extract_strided_slice %17 {offsets = [10, 0], sizes = [2, 128], strides = [1, 1]} : vector<16x128xf32> to vector<2x128xf32>
    %120 = arith.addf %118, %119 : vector<2x128xf32>
    %cst_50 = arith.constant dense<0.000000e+00> : vector<2x128xf32>
    %121 = tpu.matmul %110, %19, %cst_50 {dimension_numbers = #tpu.dot_dimension_numbers<[1], [0], [0], [1], [0, 0, 1, 1], [], []>} : vector<2x32xf32>, vector<32x128xf32>, vector<2x128xf32> -> vector<2x128xf32>
    %122 = arith.addf %120, %121 : vector<2x128xf32>
    %123 = vector.extract_strided_slice %122 {offsets = [0, 0], sizes = [2, 32], strides = [1, 1]} : vector<2x128xf32> to vector<2x32xf32>
    %cst_51 = arith.constant 5.000000e-01 : f32
    %124 = vector.broadcast %cst_51 : f32 to vector<2x32xf32>
    %125 = arith.mulf %124, %123 : vector<2x32xf32>
    %126 = math.tanh %125 : vector<2x32xf32>
    %cst_52 = arith.constant 5.000000e-01 : f32
    %127 = vector.broadcast %cst_52 : f32 to vector<2x32xf32>
    %128 = arith.mulf %127, %126 : vector<2x32xf32>
    %cst_53 = arith.constant 5.000000e-01 : f32
    %129 = vector.broadcast %cst_53 : f32 to vector<2x32xf32>
    %130 = arith.addf %128, %129 : vector<2x32xf32>
    %131 = vector.extract_strided_slice %122 {offsets = [0, 32], sizes = [2, 32], strides = [1, 1]} : vector<2x128xf32> to vector<2x32xf32>
    %cst_54 = arith.constant 5.000000e-01 : f32
    %132 = vector.broadcast %cst_54 : f32 to vector<2x32xf32>
    %133 = arith.mulf %132, %131 : vector<2x32xf32>
    %134 = math.tanh %133 : vector<2x32xf32>
    %cst_55 = arith.constant 5.000000e-01 : f32
    %135 = vector.broadcast %cst_55 : f32 to vector<2x32xf32>
    %136 = arith.mulf %135, %134 : vector<2x32xf32>
    %cst_56 = arith.constant 5.000000e-01 : f32
    %137 = vector.broadcast %cst_56 : f32 to vector<2x32xf32>
    %138 = arith.addf %136, %137 : vector<2x32xf32>
    %139 = vector.extract_strided_slice %122 {offsets = [0, 64], sizes = [2, 32], strides = [1, 1]} : vector<2x128xf32> to vector<2x32xf32>
    %140 = math.tanh %139 : vector<2x32xf32>
    %141 = vector.extract_strided_slice %122 {offsets = [0, 96], sizes = [2, 32], strides = [1, 1]} : vector<2x128xf32> to vector<2x32xf32>
    %cst_57 = arith.constant 5.000000e-01 : f32
    %142 = vector.broadcast %cst_57 : f32 to vector<2x32xf32>
    %143 = arith.mulf %142, %141 : vector<2x32xf32>
    %144 = math.tanh %143 : vector<2x32xf32>
    %cst_58 = arith.constant 5.000000e-01 : f32
    %145 = vector.broadcast %cst_58 : f32 to vector<2x32xf32>
    %146 = arith.mulf %145, %144 : vector<2x32xf32>
    %cst_59 = arith.constant 5.000000e-01 : f32
    %147 = vector.broadcast %cst_59 : f32 to vector<2x32xf32>
    %148 = arith.addf %146, %147 : vector<2x32xf32>
    %149 = arith.mulf %138, %113 : vector<2x32xf32>
    %150 = arith.mulf %130, %140 : vector<2x32xf32>
    %151 = arith.addf %149, %150 : vector<2x32xf32>
    %152 = math.tanh %151 : vector<2x32xf32>
    %153 = arith.mulf %148, %152 : vector<2x32xf32>
    %154 = vector.extract_strided_slice %4 {offsets = [4, 0], sizes = [2, 32], strides = [1, 1]} : vector<16x32xf32> to vector<2x32xf32>
    %155 = vector.extract_strided_slice %6 {offsets = [4, 0], sizes = [2, 32], strides = [1, 1]} : vector<16x32xf32> to vector<2x32xf32>
    %156 = arith.mulf %154, %153 : vector<2x32xf32>
    %157 = arith.mulf %155, %110 : vector<2x32xf32>
    %158 = arith.addf %156, %157 : vector<2x32xf32>
    %159 = arith.mulf %154, %151 : vector<2x32xf32>
    %160 = arith.mulf %155, %113 : vector<2x32xf32>
    %161 = arith.addf %159, %160 : vector<2x32xf32>
    %162 = vector.extract_strided_slice %156 {offsets = [0, 0], sizes = [2, 16], strides = [1, 1]} : vector<2x32xf32> to vector<2x16xf32>
    %c4 = arith.constant 4 : index
    %c0_60 = arith.constant 0 : index
    %163 = vector.load %arg7[%c4, %c0_60] : memref<16x128xf32, #tpu.memory_space<vmem>>, vector<2x16xf32>
    tpu.vector_store %arg7[%c4, %c0_60], %162 {strides = array<i32>} : memref<16x128xf32, #tpu.memory_space<vmem>>, vector<2x16xf32>,
    %164 = vector.extract_strided_slice %156 {offsets = [0, 16], sizes = [2, 16], strides = [1, 1]} : vector<2x32xf32> to vector<2x16xf32>
    %c10 = arith.constant 10 : index
    %c16_61 = arith.constant 16 : index
    %165 = vector.load %arg7[%c10, %c16_61] : memref<16x128xf32, #tpu.memory_space<vmem>>, vector<2x16xf32>
    tpu.vector_store %arg7[%c10, %c16_61], %164 {strides = array<i32>} : memref<16x128xf32, #tpu.memory_space<vmem>>, vector<2x16xf32>,
    %166 = vector.extract_strided_slice %14 {offsets = [6, 0], sizes = [2, 128], strides = [1, 1]} : vector<16x128xf32> to vector<2x128xf32>
    %167 = vector.extract_strided_slice %17 {offsets = [8, 0], sizes = [2, 128], strides = [1, 1]} : vector<16x128xf32> to vector<2x128xf32>
    %168 = arith.addf %166, %167 : vector<2x128xf32>
    %cst_62 = arith.constant dense<0.000000e+00> : vector<2x128xf32>
    %169 = tpu.matmul %158, %19, %cst_62 {dimension_numbers = #tpu.dot_dimension_numbers<[1], [0], [0], [1], [0, 0, 1, 1], [], []>} : vector<2x32xf32>, vector<32x128xf32>, vector<2x128xf32> -> vector<2x128xf32>
    %170 = arith.addf %168, %169 : vector<2x128xf32>
    %171 = vector.extract_strided_slice %170 {offsets = [0, 0], sizes = [2, 32], strides = [1, 1]} : vector<2x128xf32> to vector<2x32xf32>
    %cst_63 = arith.constant 5.000000e-01 : f32
    %172 = vector.broadcast %cst_63 : f32 to vector<2x32xf32>
    %173 = arith.mulf %172, %171 : vector<2x32xf32>
    %174 = math.tanh %173 : vector<2x32xf32>
    %cst_64 = arith.constant 5.000000e-01 : f32
    %175 = vector.broadcast %cst_64 : f32 to vector<2x32xf32>
    %176 = arith.mulf %175, %174 : vector<2x32xf32>
    %cst_65 = arith.constant 5.000000e-01 : f32
    %177 = vector.broadcast %cst_65 : f32 to vector<2x32xf32>
    %178 = arith.addf %176, %177 : vector<2x32xf32>
    %179 = vector.extract_strided_slice %170 {offsets = [0, 32], sizes = [2, 32], strides = [1, 1]} : vector<2x128xf32> to vector<2x32xf32>
    %cst_66 = arith.constant 5.000000e-01 : f32
    %180 = vector.broadcast %cst_66 : f32 to vector<2x32xf32>
    %181 = arith.mulf %180, %179 : vector<2x32xf32>
    %182 = math.tanh %181 : vector<2x32xf32>
    %cst_67 = arith.constant 5.000000e-01 : f32
    %183 = vector.broadcast %cst_67 : f32 to vector<2x32xf32>
    %184 = arith.mulf %183, %182 : vector<2x32xf32>
    %cst_68 = arith.constant 5.000000e-01 : f32
    %185 = vector.broadcast %cst_68 : f32 to vector<2x32xf32>
    %186 = arith.addf %184, %185 : vector<2x32xf32>
    %187 = vector.extract_strided_slice %170 {offsets = [0, 64], sizes = [2, 32], strides = [1, 1]} : vector<2x128xf32> to vector<2x32xf32>
    %188 = math.tanh %187 : vector<2x32xf32>
    %189 = vector.extract_strided_slice %170 {offsets = [0, 96], sizes = [2, 32], strides = [1, 1]} : vector<2x128xf32> to vector<2x32xf32>
    %cst_69 = arith.constant 5.000000e-01 : f32
    %190 = vector.broadcast %cst_69 : f32 to vector<2x32xf32>
    %191 = arith.mulf %190, %189 : vector<2x32xf32>
    %192 = math.tanh %191 : vector<2x32xf32>
    %cst_70 = arith.constant 5.000000e-01 : f32
    %193 = vector.broadcast %cst_70 : f32 to vector<2x32xf32>
    %194 = arith.mulf %193, %192 : vector<2x32xf32>
    %cst_71 = arith.constant 5.000000e-01 : f32
    %195 = vector.broadcast %cst_71 : f32 to vector<2x32xf32>
    %196 = arith.addf %194, %195 : vector<2x32xf32>
    %197 = arith.mulf %186, %161 : vector<2x32xf32>
    %198 = arith.mulf %178, %188 : vector<2x32xf32>
    %199 = arith.addf %197, %198 : vector<2x32xf32>
    %200 = math.tanh %199 : vector<2x32xf32>
    %201 = arith.mulf %196, %200 : vector<2x32xf32>
    %202 = vector.extract_strided_slice %4 {offsets = [6, 0], sizes = [2, 32], strides = [1, 1]} : vector<16x32xf32> to vector<2x32xf32>
    %203 = vector.extract_strided_slice %6 {offsets = [6, 0], sizes = [2, 32], strides = [1, 1]} : vector<16x32xf32> to vector<2x32xf32>
    %204 = arith.mulf %202, %201 : vector<2x32xf32>
    %205 = arith.mulf %203, %158 : vector<2x32xf32>
    %206 = arith.addf %204, %205 : vector<2x32xf32>
    %207 = arith.mulf %202, %199 : vector<2x32xf32>
    %208 = arith.mulf %203, %161 : vector<2x32xf32>
    %209 = arith.addf %207, %208 : vector<2x32xf32>
    %210 = vector.extract_strided_slice %204 {offsets = [0, 0], sizes = [2, 16], strides = [1, 1]} : vector<2x32xf32> to vector<2x16xf32>
    %c6 = arith.constant 6 : index
    %c0_72 = arith.constant 0 : index
    %211 = vector.load %arg7[%c6, %c0_72] : memref<16x128xf32, #tpu.memory_space<vmem>>, vector<2x16xf32>
    tpu.vector_store %arg7[%c6, %c0_72], %210 {strides = array<i32>} : memref<16x128xf32, #tpu.memory_space<vmem>>, vector<2x16xf32>,
    %212 = vector.extract_strided_slice %204 {offsets = [0, 16], sizes = [2, 16], strides = [1, 1]} : vector<2x32xf32> to vector<2x16xf32>
    %c8 = arith.constant 8 : index
    %c16_73 = arith.constant 16 : index
    %213 = vector.load %arg7[%c8, %c16_73] : memref<16x128xf32, #tpu.memory_space<vmem>>, vector<2x16xf32>
    tpu.vector_store %arg7[%c8, %c16_73], %212 {strides = array<i32>} : memref<16x128xf32, #tpu.memory_space<vmem>>, vector<2x16xf32>,
    %214 = vector.extract_strided_slice %14 {offsets = [8, 0], sizes = [2, 128], strides = [1, 1]} : vector<16x128xf32> to vector<2x128xf32>
    %215 = vector.extract_strided_slice %17 {offsets = [6, 0], sizes = [2, 128], strides = [1, 1]} : vector<16x128xf32> to vector<2x128xf32>
    %216 = arith.addf %214, %215 : vector<2x128xf32>
    %cst_74 = arith.constant dense<0.000000e+00> : vector<2x128xf32>
    %217 = tpu.matmul %206, %19, %cst_74 {dimension_numbers = #tpu.dot_dimension_numbers<[1], [0], [0], [1], [0, 0, 1, 1], [], []>} : vector<2x32xf32>, vector<32x128xf32>, vector<2x128xf32> -> vector<2x128xf32>
    %218 = arith.addf %216, %217 : vector<2x128xf32>
    %219 = vector.extract_strided_slice %218 {offsets = [0, 0], sizes = [2, 32], strides = [1, 1]} : vector<2x128xf32> to vector<2x32xf32>
    %cst_75 = arith.constant 5.000000e-01 : f32
    %220 = vector.broadcast %cst_75 : f32 to vector<2x32xf32>
    %221 = arith.mulf %220, %219 : vector<2x32xf32>
    %222 = math.tanh %221 : vector<2x32xf32>
    %cst_76 = arith.constant 5.000000e-01 : f32
    %223 = vector.broadcast %cst_76 : f32 to vector<2x32xf32>
    %224 = arith.mulf %223, %222 : vector<2x32xf32>
    %cst_77 = arith.constant 5.000000e-01 : f32
    %225 = vector.broadcast %cst_77 : f32 to vector<2x32xf32>
    %226 = arith.addf %224, %225 : vector<2x32xf32>
    %227 = vector.extract_strided_slice %218 {offsets = [0, 32], sizes = [2, 32], strides = [1, 1]} : vector<2x128xf32> to vector<2x32xf32>
    %cst_78 = arith.constant 5.000000e-01 : f32
    %228 = vector.broadcast %cst_78 : f32 to vector<2x32xf32>
    %229 = arith.mulf %228, %227 : vector<2x32xf32>
    %230 = math.tanh %229 : vector<2x32xf32>
    %cst_79 = arith.constant 5.000000e-01 : f32
    %231 = vector.broadcast %cst_79 : f32 to vector<2x32xf32>
    %232 = arith.mulf %231, %230 : vector<2x32xf32>
    %cst_80 = arith.constant 5.000000e-01 : f32
    %233 = vector.broadcast %cst_80 : f32 to vector<2x32xf32>
    %234 = arith.addf %232, %233 : vector<2x32xf32>
    %235 = vector.extract_strided_slice %218 {offsets = [0, 64], sizes = [2, 32], strides = [1, 1]} : vector<2x128xf32> to vector<2x32xf32>
    %236 = math.tanh %235 : vector<2x32xf32>
    %237 = vector.extract_strided_slice %218 {offsets = [0, 96], sizes = [2, 32], strides = [1, 1]} : vector<2x128xf32> to vector<2x32xf32>
    %cst_81 = arith.constant 5.000000e-01 : f32
    %238 = vector.broadcast %cst_81 : f32 to vector<2x32xf32>
    %239 = arith.mulf %238, %237 : vector<2x32xf32>
    %240 = math.tanh %239 : vector<2x32xf32>
    %cst_82 = arith.constant 5.000000e-01 : f32
    %241 = vector.broadcast %cst_82 : f32 to vector<2x32xf32>
    %242 = arith.mulf %241, %240 : vector<2x32xf32>
    %cst_83 = arith.constant 5.000000e-01 : f32
    %243 = vector.broadcast %cst_83 : f32 to vector<2x32xf32>
    %244 = arith.addf %242, %243 : vector<2x32xf32>
    %245 = arith.mulf %234, %209 : vector<2x32xf32>
    %246 = arith.mulf %226, %236 : vector<2x32xf32>
    %247 = arith.addf %245, %246 : vector<2x32xf32>
    %248 = math.tanh %247 : vector<2x32xf32>
    %249 = arith.mulf %244, %248 : vector<2x32xf32>
    %250 = vector.extract_strided_slice %4 {offsets = [8, 0], sizes = [2, 32], strides = [1, 1]} : vector<16x32xf32> to vector<2x32xf32>
    %251 = vector.extract_strided_slice %6 {offsets = [8, 0], sizes = [2, 32], strides = [1, 1]} : vector<16x32xf32> to vector<2x32xf32>
    %252 = arith.mulf %250, %249 : vector<2x32xf32>
    %253 = arith.mulf %251, %206 : vector<2x32xf32>
    %254 = arith.addf %252, %253 : vector<2x32xf32>
    %255 = arith.mulf %250, %247 : vector<2x32xf32>
    %256 = arith.mulf %251, %209 : vector<2x32xf32>
    %257 = arith.addf %255, %256 : vector<2x32xf32>
    %258 = vector.extract_strided_slice %252 {offsets = [0, 0], sizes = [2, 16], strides = [1, 1]} : vector<2x32xf32> to vector<2x16xf32>
    %c8_84 = arith.constant 8 : index
    %c0_85 = arith.constant 0 : index
    %259 = vector.load %arg7[%c8_84, %c0_85] : memref<16x128xf32, #tpu.memory_space<vmem>>, vector<2x16xf32>
    tpu.vector_store %arg7[%c8_84, %c0_85], %258 {strides = array<i32>} : memref<16x128xf32, #tpu.memory_space<vmem>>, vector<2x16xf32>,
    %260 = vector.extract_strided_slice %252 {offsets = [0, 16], sizes = [2, 16], strides = [1, 1]} : vector<2x32xf32> to vector<2x16xf32>
    %c6_86 = arith.constant 6 : index
    %c16_87 = arith.constant 16 : index
    %261 = vector.load %arg7[%c6_86, %c16_87] : memref<16x128xf32, #tpu.memory_space<vmem>>, vector<2x16xf32>
    tpu.vector_store %arg7[%c6_86, %c16_87], %260 {strides = array<i32>} : memref<16x128xf32, #tpu.memory_space<vmem>>, vector<2x16xf32>,
    %262 = vector.extract_strided_slice %14 {offsets = [10, 0], sizes = [2, 128], strides = [1, 1]} : vector<16x128xf32> to vector<2x128xf32>
    %263 = vector.extract_strided_slice %17 {offsets = [4, 0], sizes = [2, 128], strides = [1, 1]} : vector<16x128xf32> to vector<2x128xf32>
    %264 = arith.addf %262, %263 : vector<2x128xf32>
    %cst_88 = arith.constant dense<0.000000e+00> : vector<2x128xf32>
    %265 = tpu.matmul %254, %19, %cst_88 {dimension_numbers = #tpu.dot_dimension_numbers<[1], [0], [0], [1], [0, 0, 1, 1], [], []>} : vector<2x32xf32>, vector<32x128xf32>, vector<2x128xf32> -> vector<2x128xf32>
    %266 = arith.addf %264, %265 : vector<2x128xf32>
    %267 = vector.extract_strided_slice %266 {offsets = [0, 0], sizes = [2, 32], strides = [1, 1]} : vector<2x128xf32> to vector<2x32xf32>
    %cst_89 = arith.constant 5.000000e-01 : f32
    %268 = vector.broadcast %cst_89 : f32 to vector<2x32xf32>
    %269 = arith.mulf %268, %267 : vector<2x32xf32>
    %270 = math.tanh %269 : vector<2x32xf32>
    %cst_90 = arith.constant 5.000000e-01 : f32
    %271 = vector.broadcast %cst_90 : f32 to vector<2x32xf32>
    %272 = arith.mulf %271, %270 : vector<2x32xf32>
    %cst_91 = arith.constant 5.000000e-01 : f32
    %273 = vector.broadcast %cst_91 : f32 to vector<2x32xf32>
    %274 = arith.addf %272, %273 : vector<2x32xf32>
    %275 = vector.extract_strided_slice %266 {offsets = [0, 32], sizes = [2, 32], strides = [1, 1]} : vector<2x128xf32> to vector<2x32xf32>
    %cst_92 = arith.constant 5.000000e-01 : f32
    %276 = vector.broadcast %cst_92 : f32 to vector<2x32xf32>
    %277 = arith.mulf %276, %275 : vector<2x32xf32>
    %278 = math.tanh %277 : vector<2x32xf32>
    %cst_93 = arith.constant 5.000000e-01 : f32
    %279 = vector.broadcast %cst_93 : f32 to vector<2x32xf32>
    %280 = arith.mulf %279, %278 : vector<2x32xf32>
    %cst_94 = arith.constant 5.000000e-01 : f32
    %281 = vector.broadcast %cst_94 : f32 to vector<2x32xf32>
    %282 = arith.addf %280, %281 : vector<2x32xf32>
    %283 = vector.extract_strided_slice %266 {offsets = [0, 64], sizes = [2, 32], strides = [1, 1]} : vector<2x128xf32> to vector<2x32xf32>
    %284 = math.tanh %283 : vector<2x32xf32>
    %285 = vector.extract_strided_slice %266 {offsets = [0, 96], sizes = [2, 32], strides = [1, 1]} : vector<2x128xf32> to vector<2x32xf32>
    %cst_95 = arith.constant 5.000000e-01 : f32
    %286 = vector.broadcast %cst_95 : f32 to vector<2x32xf32>
    %287 = arith.mulf %286, %285 : vector<2x32xf32>
    %288 = math.tanh %287 : vector<2x32xf32>
    %cst_96 = arith.constant 5.000000e-01 : f32
    %289 = vector.broadcast %cst_96 : f32 to vector<2x32xf32>
    %290 = arith.mulf %289, %288 : vector<2x32xf32>
    %cst_97 = arith.constant 5.000000e-01 : f32
    %291 = vector.broadcast %cst_97 : f32 to vector<2x32xf32>
    %292 = arith.addf %290, %291 : vector<2x32xf32>
    %293 = arith.mulf %282, %257 : vector<2x32xf32>
    %294 = arith.mulf %274, %284 : vector<2x32xf32>
    %295 = arith.addf %293, %294 : vector<2x32xf32>
    %296 = math.tanh %295 : vector<2x32xf32>
    %297 = arith.mulf %292, %296 : vector<2x32xf32>
    %298 = vector.extract_strided_slice %4 {offsets = [10, 0], sizes = [2, 32], strides = [1, 1]} : vector<16x32xf32> to vector<2x32xf32>
    %299 = vector.extract_strided_slice %6 {offsets = [10, 0], sizes = [2, 32], strides = [1, 1]} : vector<16x32xf32> to vector<2x32xf32>
    %300 = arith.mulf %298, %297 : vector<2x32xf32>
    %301 = arith.mulf %299, %254 : vector<2x32xf32>
    %302 = arith.addf %300, %301 : vector<2x32xf32>
    %303 = arith.mulf %298, %295 : vector<2x32xf32>
    %304 = arith.mulf %299, %257 : vector<2x32xf32>
    %305 = arith.addf %303, %304 : vector<2x32xf32>
    %306 = vector.extract_strided_slice %300 {offsets = [0, 0], sizes = [2, 16], strides = [1, 1]} : vector<2x32xf32> to vector<2x16xf32>
    %c10_98 = arith.constant 10 : index
    %c0_99 = arith.constant 0 : index
    %307 = vector.load %arg7[%c10_98, %c0_99] : memref<16x128xf32, #tpu.memory_space<vmem>>, vector<2x16xf32>
    tpu.vector_store %arg7[%c10_98, %c0_99], %306 {strides = array<i32>} : memref<16x128xf32, #tpu.memory_space<vmem>>, vector<2x16xf32>,
    %308 = vector.extract_strided_slice %300 {offsets = [0, 16], sizes = [2, 16], strides = [1, 1]} : vector<2x32xf32> to vector<2x16xf32>
    %c4_100 = arith.constant 4 : index
    %c16_101 = arith.constant 16 : index
    %309 = vector.load %arg7[%c4_100, %c16_101] : memref<16x128xf32, #tpu.memory_space<vmem>>, vector<2x16xf32>
    tpu.vector_store %arg7[%c4_100, %c16_101], %308 {strides = array<i32>} : memref<16x128xf32, #tpu.memory_space<vmem>>, vector<2x16xf32>,
    %310 = vector.extract_strided_slice %14 {offsets = [12, 0], sizes = [2, 128], strides = [1, 1]} : vector<16x128xf32> to vector<2x128xf32>
    %311 = vector.extract_strided_slice %17 {offsets = [2, 0], sizes = [2, 128], strides = [1, 1]} : vector<16x128xf32> to vector<2x128xf32>
    %312 = arith.addf %310, %311 : vector<2x128xf32>
    %cst_102 = arith.constant dense<0.000000e+00> : vector<2x128xf32>
    %313 = tpu.matmul %302, %19, %cst_102 {dimension_numbers = #tpu.dot_dimension_numbers<[1], [0], [0], [1], [0, 0, 1, 1], [], []>} : vector<2x32xf32>, vector<32x128xf32>, vector<2x128xf32> -> vector<2x128xf32>
    %314 = arith.addf %312, %313 : vector<2x128xf32>
    %315 = vector.extract_strided_slice %314 {offsets = [0, 0], sizes = [2, 32], strides = [1, 1]} : vector<2x128xf32> to vector<2x32xf32>
    %cst_103 = arith.constant 5.000000e-01 : f32
    %316 = vector.broadcast %cst_103 : f32 to vector<2x32xf32>
    %317 = arith.mulf %316, %315 : vector<2x32xf32>
    %318 = math.tanh %317 : vector<2x32xf32>
    %cst_104 = arith.constant 5.000000e-01 : f32
    %319 = vector.broadcast %cst_104 : f32 to vector<2x32xf32>
    %320 = arith.mulf %319, %318 : vector<2x32xf32>
    %cst_105 = arith.constant 5.000000e-01 : f32
    %321 = vector.broadcast %cst_105 : f32 to vector<2x32xf32>
    %322 = arith.addf %320, %321 : vector<2x32xf32>
    %323 = vector.extract_strided_slice %314 {offsets = [0, 32], sizes = [2, 32], strides = [1, 1]} : vector<2x128xf32> to vector<2x32xf32>
    %cst_106 = arith.constant 5.000000e-01 : f32
    %324 = vector.broadcast %cst_106 : f32 to vector<2x32xf32>
    %325 = arith.mulf %324, %323 : vector<2x32xf32>
    %326 = math.tanh %325 : vector<2x32xf32>
    %cst_107 = arith.constant 5.000000e-01 : f32
    %327 = vector.broadcast %cst_107 : f32 to vector<2x32xf32>
    %328 = arith.mulf %327, %326 : vector<2x32xf32>
    %cst_108 = arith.constant 5.000000e-01 : f32
    %329 = vector.broadcast %cst_108 : f32 to vector<2x32xf32>
    %330 = arith.addf %328, %329 : vector<2x32xf32>
    %331 = vector.extract_strided_slice %314 {offsets = [0, 64], sizes = [2, 32], strides = [1, 1]} : vector<2x128xf32> to vector<2x32xf32>
    %332 = math.tanh %331 : vector<2x32xf32>
    %333 = vector.extract_strided_slice %314 {offsets = [0, 96], sizes = [2, 32], strides = [1, 1]} : vector<2x128xf32> to vector<2x32xf32>
    %cst_109 = arith.constant 5.000000e-01 : f32
    %334 = vector.broadcast %cst_109 : f32 to vector<2x32xf32>
    %335 = arith.mulf %334, %333 : vector<2x32xf32>
    %336 = math.tanh %335 : vector<2x32xf32>
    %cst_110 = arith.constant 5.000000e-01 : f32
    %337 = vector.broadcast %cst_110 : f32 to vector<2x32xf32>
    %338 = arith.mulf %337, %336 : vector<2x32xf32>
    %cst_111 = arith.constant 5.000000e-01 : f32
    %339 = vector.broadcast %cst_111 : f32 to vector<2x32xf32>
    %340 = arith.addf %338, %339 : vector<2x32xf32>
    %341 = arith.mulf %330, %305 : vector<2x32xf32>
    %342 = arith.mulf %322, %332 : vector<2x32xf32>
    %343 = arith.addf %341, %342 : vector<2x32xf32>
    %344 = math.tanh %343 : vector<2x32xf32>
    %345 = arith.mulf %340, %344 : vector<2x32xf32>
    %346 = vector.extract_strided_slice %4 {offsets = [12, 0], sizes = [2, 32], strides = [1, 1]} : vector<16x32xf32> to vector<2x32xf32>
    %347 = vector.extract_strided_slice %6 {offsets = [12, 0], sizes = [2, 32], strides = [1, 1]} : vector<16x32xf32> to vector<2x32xf32>
    %348 = arith.mulf %346, %345 : vector<2x32xf32>
    %349 = arith.mulf %347, %302 : vector<2x32xf32>
    %350 = arith.addf %348, %349 : vector<2x32xf32>
    %351 = arith.mulf %346, %343 : vector<2x32xf32>
    %352 = arith.mulf %347, %305 : vector<2x32xf32>
    %353 = arith.addf %351, %352 : vector<2x32xf32>
    %354 = vector.extract_strided_slice %348 {offsets = [0, 0], sizes = [2, 16], strides = [1, 1]} : vector<2x32xf32> to vector<2x16xf32>
    %c12_112 = arith.constant 12 : index
    %c0_113 = arith.constant 0 : index
    %355 = vector.load %arg7[%c12_112, %c0_113] : memref<16x128xf32, #tpu.memory_space<vmem>>, vector<2x16xf32>
    tpu.vector_store %arg7[%c12_112, %c0_113], %354 {strides = array<i32>} : memref<16x128xf32, #tpu.memory_space<vmem>>, vector<2x16xf32>,
    %356 = vector.extract_strided_slice %348 {offsets = [0, 16], sizes = [2, 16], strides = [1, 1]} : vector<2x32xf32> to vector<2x16xf32>
    %c2_114 = arith.constant 2 : index
    %c16_115 = arith.constant 16 : index
    %357 = vector.load %arg7[%c2_114, %c16_115] : memref<16x128xf32, #tpu.memory_space<vmem>>, vector<2x16xf32>
    tpu.vector_store %arg7[%c2_114, %c16_115], %356 {strides = array<i32>} : memref<16x128xf32, #tpu.memory_space<vmem>>, vector<2x16xf32>,
    %358 = vector.extract_strided_slice %14 {offsets = [14, 0], sizes = [2, 128], strides = [1, 1]} : vector<16x128xf32> to vector<2x128xf32>
    %359 = vector.extract_strided_slice %17 {offsets = [0, 0], sizes = [2, 128], strides = [1, 1]} : vector<16x128xf32> to vector<2x128xf32>
    %360 = arith.addf %358, %359 : vector<2x128xf32>
    %cst_116 = arith.constant dense<0.000000e+00> : vector<2x128xf32>
    %361 = tpu.matmul %350, %19, %cst_116 {dimension_numbers = #tpu.dot_dimension_numbers<[1], [0], [0], [1], [0, 0, 1, 1], [], []>} : vector<2x32xf32>, vector<32x128xf32>, vector<2x128xf32> -> vector<2x128xf32>
    %362 = arith.addf %360, %361 : vector<2x128xf32>
    %363 = vector.extract_strided_slice %362 {offsets = [0, 0], sizes = [2, 32], strides = [1, 1]} : vector<2x128xf32> to vector<2x32xf32>
    %cst_117 = arith.constant 5.000000e-01 : f32
    %364 = vector.broadcast %cst_117 : f32 to vector<2x32xf32>
    %365 = arith.mulf %364, %363 : vector<2x32xf32>
    %366 = math.tanh %365 : vector<2x32xf32>
    %cst_118 = arith.constant 5.000000e-01 : f32
    %367 = vector.broadcast %cst_118 : f32 to vector<2x32xf32>
    %368 = arith.mulf %367, %366 : vector<2x32xf32>
    %cst_119 = arith.constant 5.000000e-01 : f32
    %369 = vector.broadcast %cst_119 : f32 to vector<2x32xf32>
    %370 = arith.addf %368, %369 : vector<2x32xf32>
    %371 = vector.extract_strided_slice %362 {offsets = [0, 32], sizes = [2, 32], strides = [1, 1]} : vector<2x128xf32> to vector<2x32xf32>
    %cst_120 = arith.constant 5.000000e-01 : f32
    %372 = vector.broadcast %cst_120 : f32 to vector<2x32xf32>
    %373 = arith.mulf %372, %371 : vector<2x32xf32>
    %374 = math.tanh %373 : vector<2x32xf32>
    %cst_121 = arith.constant 5.000000e-01 : f32
    %375 = vector.broadcast %cst_121 : f32 to vector<2x32xf32>
    %376 = arith.mulf %375, %374 : vector<2x32xf32>
    %cst_122 = arith.constant 5.000000e-01 : f32
    %377 = vector.broadcast %cst_122 : f32 to vector<2x32xf32>
    %378 = arith.addf %376, %377 : vector<2x32xf32>
    %379 = vector.extract_strided_slice %362 {offsets = [0, 64], sizes = [2, 32], strides = [1, 1]} : vector<2x128xf32> to vector<2x32xf32>
    %380 = math.tanh %379 : vector<2x32xf32>
    %381 = vector.extract_strided_slice %362 {offsets = [0, 96], sizes = [2, 32], strides = [1, 1]} : vector<2x128xf32> to vector<2x32xf32>
    %cst_123 = arith.constant 5.000000e-01 : f32
    %382 = vector.broadcast %cst_123 : f32 to vector<2x32xf32>
    %383 = arith.mulf %382, %381 : vector<2x32xf32>
    %384 = math.tanh %383 : vector<2x32xf32>
    %cst_124 = arith.constant 5.000000e-01 : f32
    %385 = vector.broadcast %cst_124 : f32 to vector<2x32xf32>
    %386 = arith.mulf %385, %384 : vector<2x32xf32>
    %cst_125 = arith.constant 5.000000e-01 : f32
    %387 = vector.broadcast %cst_125 : f32 to vector<2x32xf32>
    %388 = arith.addf %386, %387 : vector<2x32xf32>
    %389 = arith.mulf %378, %353 : vector<2x32xf32>
    %390 = arith.mulf %370, %380 : vector<2x32xf32>
    %391 = arith.addf %389, %390 : vector<2x32xf32>
    %392 = math.tanh %391 : vector<2x32xf32>
    %393 = arith.mulf %388, %392 : vector<2x32xf32>
    %394 = vector.extract_strided_slice %4 {offsets = [14, 0], sizes = [2, 32], strides = [1, 1]} : vector<16x32xf32> to vector<2x32xf32>
    %395 = arith.mulf %394, %393 : vector<2x32xf32>
    %396 = vector.extract_strided_slice %395 {offsets = [0, 0], sizes = [2, 16], strides = [1, 1]} : vector<2x32xf32> to vector<2x16xf32>
    %c14_126 = arith.constant 14 : index
    %c0_127 = arith.constant 0 : index
    %397 = vector.load %arg7[%c14_126, %c0_127] : memref<16x128xf32, #tpu.memory_space<vmem>>, vector<2x16xf32>
    tpu.vector_store %arg7[%c14_126, %c0_127], %396 {strides = array<i32>} : memref<16x128xf32, #tpu.memory_space<vmem>>, vector<2x16xf32>,
    %398 = vector.extract_strided_slice %395 {offsets = [0, 16], sizes = [2, 16], strides = [1, 1]} : vector<2x32xf32> to vector<2x16xf32>
    %c0_128 = arith.constant 0 : index
    %c16_129 = arith.constant 16 : index
    %399 = vector.load %arg7[%c0_128, %c16_129] : memref<16x128xf32, #tpu.memory_space<vmem>>, vector<2x16xf32>
    tpu.vector_store %arg7[%c0_128, %c16_129], %398 {strides = array<i32>} : memref<16x128xf32, #tpu.memory_space<vmem>>, vector<2x16xf32>,
    %c0_130 = arith.constant 0 : index
    %c0_131 = arith.constant 0 : index
    %400 = vector.load %arg7[%c0_130, %c0_131] : memref<16x128xf32, #tpu.memory_space<vmem>>, vector<16x128xf32>
    %c1_132 = arith.constant 1 : index
    %c0_133 = arith.constant 0 : index
    %c0_134 = arith.constant 0 : index
    %c0_135 = arith.constant 0 : index
    %401 = vector.load %arg2[%c1_132, %c0_133, %c0_134, %c0_135] : memref<3x2x128x128xf32, #tpu.memory_space<vmem>>, vector<1x1x128x128xf32>
    %402 = vector.shape_cast %401 : vector<1x1x128x128xf32> to vector<128x128xf32>
    %cst_136 = arith.constant dense<0.000000e+00> : vector<16x128xf32>
    %403 = tpu.matmul %400, %402, %cst_136 {dimension_numbers = #tpu.dot_dimension_numbers<[1], [0], [0], [1], [0, 0, 1, 1], [], []>} : vector<16x128xf32>, vector<128x128xf32>, vector<16x128xf32> -> vector<16x128xf32>
    %c1_137 = arith.constant 1 : index
    %c0_138 = arith.constant 0 : index
    %c0_139 = arith.constant 0 : index
    %404 = vector.load %arg4[%c1_137, %c0_138, %c0_139] : memref<3x1x128xf32, #tpu.memory_space<vmem>>, vector<1x1x128xf32>
    %405 = vector.shape_cast %404 : vector<1x1x128xf32> to vector<1x128xf32>
    %406 = vector.broadcast %405 : vector<1x128xf32> to vector<16x128xf32>
    %407 = arith.addf %403, %406 : vector<16x128xf32>
    %c1_140 = arith.constant 1 : index
    %c1_141 = arith.constant 1 : index
    %c0_142 = arith.constant 0 : index
    %c0_143 = arith.constant 0 : index
    %408 = vector.load %arg2[%c1_140, %c1_141, %c0_142, %c0_143] : memref<3x2x128x128xf32, #tpu.memory_space<vmem>>, vector<1x1x128x128xf32>
    %409 = vector.shape_cast %408 : vector<1x1x128x128xf32> to vector<128x128xf32>
    %cst_144 = arith.constant dense<0.000000e+00> : vector<16x128xf32>
    %410 = tpu.matmul %400, %409, %cst_144 {dimension_numbers = #tpu.dot_dimension_numbers<[1], [0], [0], [1], [0, 0, 1, 1], [], []>} : vector<16x128xf32>, vector<128x128xf32>, vector<16x128xf32> -> vector<16x128xf32>
    %c1_145 = arith.constant 1 : index
    %c0_146 = arith.constant 0 : index
    %c0_147 = arith.constant 0 : index
    %411 = vector.load %arg3[%c1_145, %c0_146, %c0_147] : memref<3x32x128xf32, #tpu.memory_space<vmem>>, vector<1x32x128xf32>
    %412 = vector.shape_cast %411 : vector<1x32x128xf32> to vector<32x128xf32>
    %cst_148 = arith.constant 0.000000e+00 : f32
    %413 = vector.broadcast %cst_148 : f32 to vector<2x32xf32>
    %cst_149 = arith.constant 0.000000e+00 : f32
    %414 = vector.broadcast %cst_149 : f32 to vector<2x32xf32>
    %415 = vector.extract_strided_slice %407 {offsets = [0, 0], sizes = [2, 128], strides = [1, 1]} : vector<16x128xf32> to vector<2x128xf32>
    %416 = vector.extract_strided_slice %410 {offsets = [14, 0], sizes = [2, 128], strides = [1, 1]} : vector<16x128xf32> to vector<2x128xf32>
    %417 = arith.addf %415, %416 : vector<2x128xf32>
    %cst_150 = arith.constant dense<0.000000e+00> : vector<2x128xf32>
    %418 = tpu.matmul %413, %412, %cst_150 {dimension_numbers = #tpu.dot_dimension_numbers<[1], [0], [0], [1], [0, 0, 1, 1], [], []>} : vector<2x32xf32>, vector<32x128xf32>, vector<2x128xf32> -> vector<2x128xf32>
    %419 = arith.addf %417, %418 : vector<2x128xf32>
    %420 = vector.extract_strided_slice %419 {offsets = [0, 0], sizes = [2, 32], strides = [1, 1]} : vector<2x128xf32> to vector<2x32xf32>
    %cst_151 = arith.constant 5.000000e-01 : f32
    %421 = vector.broadcast %cst_151 : f32 to vector<2x32xf32>
    %422 = arith.mulf %421, %420 : vector<2x32xf32>
    %423 = math.tanh %422 : vector<2x32xf32>
    %cst_152 = arith.constant 5.000000e-01 : f32
    %424 = vector.broadcast %cst_152 : f32 to vector<2x32xf32>
    %425 = arith.mulf %424, %423 : vector<2x32xf32>
    %cst_153 = arith.constant 5.000000e-01 : f32
    %426 = vector.broadcast %cst_153 : f32 to vector<2x32xf32>
    %427 = arith.addf %425, %426 : vector<2x32xf32>
    %428 = vector.extract_strided_slice %419 {offsets = [0, 32], sizes = [2, 32], strides = [1, 1]} : vector<2x128xf32> to vector<2x32xf32>
    %cst_154 = arith.constant 5.000000e-01 : f32
    %429 = vector.broadcast %cst_154 : f32 to vector<2x32xf32>
    %430 = arith.mulf %429, %428 : vector<2x32xf32>
    %431 = math.tanh %430 : vector<2x32xf32>
    %cst_155 = arith.constant 5.000000e-01 : f32
    %432 = vector.broadcast %cst_155 : f32 to vector<2x32xf32>
    %433 = arith.mulf %432, %431 : vector<2x32xf32>
    %cst_156 = arith.constant 5.000000e-01 : f32
    %434 = vector.broadcast %cst_156 : f32 to vector<2x32xf32>
    %435 = arith.addf %433, %434 : vector<2x32xf32>
    %436 = vector.extract_strided_slice %419 {offsets = [0, 64], sizes = [2, 32], strides = [1, 1]} : vector<2x128xf32> to vector<2x32xf32>
    %437 = math.tanh %436 : vector<2x32xf32>
    %438 = vector.extract_strided_slice %419 {offsets = [0, 96], sizes = [2, 32], strides = [1, 1]} : vector<2x128xf32> to vector<2x32xf32>
    %cst_157 = arith.constant 5.000000e-01 : f32
    %439 = vector.broadcast %cst_157 : f32 to vector<2x32xf32>
    %440 = arith.mulf %439, %438 : vector<2x32xf32>
    %441 = math.tanh %440 : vector<2x32xf32>
    %cst_158 = arith.constant 5.000000e-01 : f32
    %442 = vector.broadcast %cst_158 : f32 to vector<2x32xf32>
    %443 = arith.mulf %442, %441 : vector<2x32xf32>
    %cst_159 = arith.constant 5.000000e-01 : f32
    %444 = vector.broadcast %cst_159 : f32 to vector<2x32xf32>
    %445 = arith.addf %443, %444 : vector<2x32xf32>
    %446 = arith.mulf %435, %414 : vector<2x32xf32>
    %447 = arith.mulf %427, %437 : vector<2x32xf32>
    %448 = arith.addf %446, %447 : vector<2x32xf32>
    %449 = math.tanh %448 : vector<2x32xf32>
    %450 = arith.mulf %445, %449 : vector<2x32xf32>
    %451 = vector.extract_strided_slice %4 {offsets = [0, 0], sizes = [2, 32], strides = [1, 1]} : vector<16x32xf32> to vector<2x32xf32>
    %452 = vector.extract_strided_slice %6 {offsets = [0, 0], sizes = [2, 32], strides = [1, 1]} : vector<16x32xf32> to vector<2x32xf32>
    %453 = arith.mulf %451, %450 : vector<2x32xf32>
    %454 = arith.mulf %452, %413 : vector<2x32xf32>
    %455 = arith.addf %453, %454 : vector<2x32xf32>
    %456 = arith.mulf %451, %448 : vector<2x32xf32>
    %457 = arith.mulf %452, %414 : vector<2x32xf32>
    %458 = arith.addf %456, %457 : vector<2x32xf32>
    %459 = vector.extract_strided_slice %453 {offsets = [0, 0], sizes = [2, 16], strides = [1, 1]} : vector<2x32xf32> to vector<2x16xf32>
    %c0_160 = arith.constant 0 : index
    %c0_161 = arith.constant 0 : index
    %460 = vector.load %arg7[%c0_160, %c0_161] : memref<16x128xf32, #tpu.memory_space<vmem>>, vector<2x16xf32>
    tpu.vector_store %arg7[%c0_160, %c0_161], %459 {strides = array<i32>} : memref<16x128xf32, #tpu.memory_space<vmem>>, vector<2x16xf32>,
    %461 = vector.extract_strided_slice %453 {offsets = [0, 16], sizes = [2, 16], strides = [1, 1]} : vector<2x32xf32> to vector<2x16xf32>
    %c14_162 = arith.constant 14 : index
    %c16_163 = arith.constant 16 : index
    %462 = vector.load %arg7[%c14_162, %c16_163] : memref<16x128xf32, #tpu.memory_space<vmem>>, vector<2x16xf32>
    tpu.vector_store %arg7[%c14_162, %c16_163], %461 {strides = array<i32>} : memref<16x128xf32, #tpu.memory_space<vmem>>, vector<2x16xf32>,
    %463 = vector.extract_strided_slice %407 {offsets = [2, 0], sizes = [2, 128], strides = [1, 1]} : vector<16x128xf32> to vector<2x128xf32>
    %464 = vector.extract_strided_slice %410 {offsets = [12, 0], sizes = [2, 128], strides = [1, 1]} : vector<16x128xf32> to vector<2x128xf32>
    %465 = arith.addf %463, %464 : vector<2x128xf32>
    %cst_164 = arith.constant dense<0.000000e+00> : vector<2x128xf32>
    %466 = tpu.matmul %455, %412, %cst_164 {dimension_numbers = #tpu.dot_dimension_numbers<[1], [0], [0], [1], [0, 0, 1, 1], [], []>} : vector<2x32xf32>, vector<32x128xf32>, vector<2x128xf32> -> vector<2x128xf32>
    %467 = arith.addf %465, %466 : vector<2x128xf32>
    %468 = vector.extract_strided_slice %467 {offsets = [0, 0], sizes = [2, 32], strides = [1, 1]} : vector<2x128xf32> to vector<2x32xf32>
    %cst_165 = arith.constant 5.000000e-01 : f32
    %469 = vector.broadcast %cst_165 : f32 to vector<2x32xf32>
    %470 = arith.mulf %469, %468 : vector<2x32xf32>
    %471 = math.tanh %470 : vector<2x32xf32>
    %cst_166 = arith.constant 5.000000e-01 : f32
    %472 = vector.broadcast %cst_166 : f32 to vector<2x32xf32>
    %473 = arith.mulf %472, %471 : vector<2x32xf32>
    %cst_167 = arith.constant 5.000000e-01 : f32
    %474 = vector.broadcast %cst_167 : f32 to vector<2x32xf32>
    %475 = arith.addf %473, %474 : vector<2x32xf32>
    %476 = vector.extract_strided_slice %467 {offsets = [0, 32], sizes = [2, 32], strides = [1, 1]} : vector<2x128xf32> to vector<2x32xf32>
    %cst_168 = arith.constant 5.000000e-01 : f32
    %477 = vector.broadcast %cst_168 : f32 to vector<2x32xf32>
    %478 = arith.mulf %477, %476 : vector<2x32xf32>
    %479 = math.tanh %478 : vector<2x32xf32>
    %cst_169 = arith.constant 5.000000e-01 : f32
    %480 = vector.broadcast %cst_169 : f32 to vector<2x32xf32>
    %481 = arith.mulf %480, %479 : vector<2x32xf32>
    %cst_170 = arith.constant 5.000000e-01 : f32
    %482 = vector.broadcast %cst_170 : f32 to vector<2x32xf32>
    %483 = arith.addf %481, %482 : vector<2x32xf32>
    %484 = vector.extract_strided_slice %467 {offsets = [0, 64], sizes = [2, 32], strides = [1, 1]} : vector<2x128xf32> to vector<2x32xf32>
    %485 = math.tanh %484 : vector<2x32xf32>
    %486 = vector.extract_strided_slice %467 {offsets = [0, 96], sizes = [2, 32], strides = [1, 1]} : vector<2x128xf32> to vector<2x32xf32>
    %cst_171 = arith.constant 5.000000e-01 : f32
    %487 = vector.broadcast %cst_171 : f32 to vector<2x32xf32>
    %488 = arith.mulf %487, %486 : vector<2x32xf32>
    %489 = math.tanh %488 : vector<2x32xf32>
    %cst_172 = arith.constant 5.000000e-01 : f32
    %490 = vector.broadcast %cst_172 : f32 to vector<2x32xf32>
    %491 = arith.mulf %490, %489 : vector<2x32xf32>
    %cst_173 = arith.constant 5.000000e-01 : f32
    %492 = vector.broadcast %cst_173 : f32 to vector<2x32xf32>
    %493 = arith.addf %491, %492 : vector<2x32xf32>
    %494 = arith.mulf %483, %458 : vector<2x32xf32>
    %495 = arith.mulf %475, %485 : vector<2x32xf32>
    %496 = arith.addf %494, %495 : vector<2x32xf32>
    %497 = math.tanh %496 : vector<2x32xf32>
    %498 = arith.mulf %493, %497 : vector<2x32xf32>
    %499 = vector.extract_strided_slice %4 {offsets = [2, 0], sizes = [2, 32], strides = [1, 1]} : vector<16x32xf32> to vector<2x32xf32>
    %500 = vector.extract_strided_slice %6 {offsets = [2, 0], sizes = [2, 32], strides = [1, 1]} : vector<16x32xf32> to vector<2x32xf32>
    %501 = arith.mulf %499, %498 : vector<2x32xf32>
    %502 = arith.mulf %500, %455 : vector<2x32xf32>
    %503 = arith.addf %501, %502 : vector<2x32xf32>
    %504 = arith.mulf %499, %496 : vector<2x32xf32>
    %505 = arith.mulf %500, %458 : vector<2x32xf32>
    %506 = arith.addf %504, %505 : vector<2x32xf32>
    %507 = vector.extract_strided_slice %501 {offsets = [0, 0], sizes = [2, 16], strides = [1, 1]} : vector<2x32xf32> to vector<2x16xf32>
    %c2_174 = arith.constant 2 : index
    %c0_175 = arith.constant 0 : index
    %508 = vector.load %arg7[%c2_174, %c0_175] : memref<16x128xf32, #tpu.memory_space<vmem>>, vector<2x16xf32>
    tpu.vector_store %arg7[%c2_174, %c0_175], %507 {strides = array<i32>} : memref<16x128xf32, #tpu.memory_space<vmem>>, vector<2x16xf32>,
    %509 = vector.extract_strided_slice %501 {offsets = [0, 16], sizes = [2, 16], strides = [1, 1]} : vector<2x32xf32> to vector<2x16xf32>
    %c12_176 = arith.constant 12 : index
    %c16_177 = arith.constant 16 : index
    %510 = vector.load %arg7[%c12_176, %c16_177] : memref<16x128xf32, #tpu.memory_space<vmem>>, vector<2x16xf32>
    tpu.vector_store %arg7[%c12_176, %c16_177], %509 {strides = array<i32>} : memref<16x128xf32, #tpu.memory_space<vmem>>, vector<2x16xf32>,
    %511 = vector.extract_strided_slice %407 {offsets = [4, 0], sizes = [2, 128], strides = [1, 1]} : vector<16x128xf32> to vector<2x128xf32>
    %512 = vector.extract_strided_slice %410 {offsets = [10, 0], sizes = [2, 128], strides = [1, 1]} : vector<16x128xf32> to vector<2x128xf32>
    %513 = arith.addf %511, %512 : vector<2x128xf32>
    %cst_178 = arith.constant dense<0.000000e+00> : vector<2x128xf32>
    %514 = tpu.matmul %503, %412, %cst_178 {dimension_numbers = #tpu.dot_dimension_numbers<[1], [0], [0], [1], [0, 0, 1, 1], [], []>} : vector<2x32xf32>, vector<32x128xf32>, vector<2x128xf32> -> vector<2x128xf32>
    %515 = arith.addf %513, %514 : vector<2x128xf32>
    %516 = vector.extract_strided_slice %515 {offsets = [0, 0], sizes = [2, 32], strides = [1, 1]} : vector<2x128xf32> to vector<2x32xf32>
    %cst_179 = arith.constant 5.000000e-01 : f32
    %517 = vector.broadcast %cst_179 : f32 to vector<2x32xf32>
    %518 = arith.mulf %517, %516 : vector<2x32xf32>
    %519 = math.tanh %518 : vector<2x32xf32>
    %cst_180 = arith.constant 5.000000e-01 : f32
    %520 = vector.broadcast %cst_180 : f32 to vector<2x32xf32>
    %521 = arith.mulf %520, %519 : vector<2x32xf32>
    %cst_181 = arith.constant 5.000000e-01 : f32
    %522 = vector.broadcast %cst_181 : f32 to vector<2x32xf32>
    %523 = arith.addf %521, %522 : vector<2x32xf32>
    %524 = vector.extract_strided_slice %515 {offsets = [0, 32], sizes = [2, 32], strides = [1, 1]} : vector<2x128xf32> to vector<2x32xf32>
    %cst_182 = arith.constant 5.000000e-01 : f32
    %525 = vector.broadcast %cst_182 : f32 to vector<2x32xf32>
    %526 = arith.mulf %525, %524 : vector<2x32xf32>
    %527 = math.tanh %526 : vector<2x32xf32>
    %cst_183 = arith.constant 5.000000e-01 : f32
    %528 = vector.broadcast %cst_183 : f32 to vector<2x32xf32>
    %529 = arith.mulf %528, %527 : vector<2x32xf32>
    %cst_184 = arith.constant 5.000000e-01 : f32
    %530 = vector.broadcast %cst_184 : f32 to vector<2x32xf32>
    %531 = arith.addf %529, %530 : vector<2x32xf32>
    %532 = vector.extract_strided_slice %515 {offsets = [0, 64], sizes = [2, 32], strides = [1, 1]} : vector<2x128xf32> to vector<2x32xf32>
    %533 = math.tanh %532 : vector<2x32xf32>
    %534 = vector.extract_strided_slice %515 {offsets = [0, 96], sizes = [2, 32], strides = [1, 1]} : vector<2x128xf32> to vector<2x32xf32>
    %cst_185 = arith.constant 5.000000e-01 : f32
    %535 = vector.broadcast %cst_185 : f32 to vector<2x32xf32>
    %536 = arith.mulf %535, %534 : vector<2x32xf32>
    %537 = math.tanh %536 : vector<2x32xf32>
    %cst_186 = arith.constant 5.000000e-01 : f32
    %538 = vector.broadcast %cst_186 : f32 to vector<2x32xf32>
    %539 = arith.mulf %538, %537 : vector<2x32xf32>
    %cst_187 = arith.constant 5.000000e-01 : f32
    %540 = vector.broadcast %cst_187 : f32 to vector<2x32xf32>
    %541 = arith.addf %539, %540 : vector<2x32xf32>
    %542 = arith.mulf %531, %506 : vector<2x32xf32>
    %543 = arith.mulf %523, %533 : vector<2x32xf32>
    %544 = arith.addf %542, %543 : vector<2x32xf32>
    %545 = math.tanh %544 : vector<2x32xf32>
    %546 = arith.mulf %541, %545 : vector<2x32xf32>
    %547 = vector.extract_strided_slice %4 {offsets = [4, 0], sizes = [2, 32], strides = [1, 1]} : vector<16x32xf32> to vector<2x32xf32>
    %548 = vector.extract_strided_slice %6 {offsets = [4, 0], sizes = [2, 32], strides = [1, 1]} : vector<16x32xf32> to vector<2x32xf32>
    %549 = arith.mulf %547, %546 : vector<2x32xf32>
    %550 = arith.mulf %548, %503 : vector<2x32xf32>
    %551 = arith.addf %549, %550 : vector<2x32xf32>
    %552 = arith.mulf %547, %544 : vector<2x32xf32>
    %553 = arith.mulf %548, %506 : vector<2x32xf32>
    %554 = arith.addf %552, %553 : vector<2x32xf32>
    %555 = vector.extract_strided_slice %549 {offsets = [0, 0], sizes = [2, 16], strides = [1, 1]} : vector<2x32xf32> to vector<2x16xf32>
    %c4_188 = arith.constant 4 : index
    %c0_189 = arith.constant 0 : index
    %556 = vector.load %arg7[%c4_188, %c0_189] : memref<16x128xf32, #tpu.memory_space<vmem>>, vector<2x16xf32>
    tpu.vector_store %arg7[%c4_188, %c0_189], %555 {strides = array<i32>} : memref<16x128xf32, #tpu.memory_space<vmem>>, vector<2x16xf32>,
    %557 = vector.extract_strided_slice %549 {offsets = [0, 16], sizes = [2, 16], strides = [1, 1]} : vector<2x32xf32> to vector<2x16xf32>
    %c10_190 = arith.constant 10 : index
    %c16_191 = arith.constant 16 : index
    %558 = vector.load %arg7[%c10_190, %c16_191] : memref<16x128xf32, #tpu.memory_space<vmem>>, vector<2x16xf32>
    tpu.vector_store %arg7[%c10_190, %c16_191], %557 {strides = array<i32>} : memref<16x128xf32, #tpu.memory_space<vmem>>, vector<2x16xf32>,
    %559 = vector.extract_strided_slice %407 {offsets = [6, 0], sizes = [2, 128], strides = [1, 1]} : vector<16x128xf32> to vector<2x128xf32>
    %560 = vector.extract_strided_slice %410 {offsets = [8, 0], sizes = [2, 128], strides = [1, 1]} : vector<16x128xf32> to vector<2x128xf32>
    %561 = arith.addf %559, %560 : vector<2x128xf32>
    %cst_192 = arith.constant dense<0.000000e+00> : vector<2x128xf32>
    %562 = tpu.matmul %551, %412, %cst_192 {dimension_numbers = #tpu.dot_dimension_numbers<[1], [0], [0], [1], [0, 0, 1, 1], [], []>} : vector<2x32xf32>, vector<32x128xf32>, vector<2x128xf32> -> vector<2x128xf32>
    %563 = arith.addf %561, %562 : vector<2x128xf32>
    %564 = vector.extract_strided_slice %563 {offsets = [0, 0], sizes = [2, 32], strides = [1, 1]} : vector<2x128xf32> to vector<2x32xf32>
    %cst_193 = arith.constant 5.000000e-01 : f32
    %565 = vector.broadcast %cst_193 : f32 to vector<2x32xf32>
    %566 = arith.mulf %565, %564 : vector<2x32xf32>
    %567 = math.tanh %566 : vector<2x32xf32>
    %cst_194 = arith.constant 5.000000e-01 : f32
    %568 = vector.broadcast %cst_194 : f32 to vector<2x32xf32>
    %569 = arith.mulf %568, %567 : vector<2x32xf32>
    %cst_195 = arith.constant 5.000000e-01 : f32
    %570 = vector.broadcast %cst_195 : f32 to vector<2x32xf32>
    %571 = arith.addf %569, %570 : vector<2x32xf32>
    %572 = vector.extract_strided_slice %563 {offsets = [0, 32], sizes = [2, 32], strides = [1, 1]} : vector<2x128xf32> to vector<2x32xf32>
    %cst_196 = arith.constant 5.000000e-01 : f32
    %573 = vector.broadcast %cst_196 : f32 to vector<2x32xf32>
    %574 = arith.mulf %573, %572 : vector<2x32xf32>
    %575 = math.tanh %574 : vector<2x32xf32>
    %cst_197 = arith.constant 5.000000e-01 : f32
    %576 = vector.broadcast %cst_197 : f32 to vector<2x32xf32>
    %577 = arith.mulf %576, %575 : vector<2x32xf32>
    %cst_198 = arith.constant 5.000000e-01 : f32
    %578 = vector.broadcast %cst_198 : f32 to vector<2x32xf32>
    %579 = arith.addf %577, %578 : vector<2x32xf32>
    %580 = vector.extract_strided_slice %563 {offsets = [0, 64], sizes = [2, 32], strides = [1, 1]} : vector<2x128xf32> to vector<2x32xf32>
    %581 = math.tanh %580 : vector<2x32xf32>
    %582 = vector.extract_strided_slice %563 {offsets = [0, 96], sizes = [2, 32], strides = [1, 1]} : vector<2x128xf32> to vector<2x32xf32>
    %cst_199 = arith.constant 5.000000e-01 : f32
    %583 = vector.broadcast %cst_199 : f32 to vector<2x32xf32>
    %584 = arith.mulf %583, %582 : vector<2x32xf32>
    %585 = math.tanh %584 : vector<2x32xf32>
    %cst_200 = arith.constant 5.000000e-01 : f32
    %586 = vector.broadcast %cst_200 : f32 to vector<2x32xf32>
    %587 = arith.mulf %586, %585 : vector<2x32xf32>
    %cst_201 = arith.constant 5.000000e-01 : f32
    %588 = vector.broadcast %cst_201 : f32 to vector<2x32xf32>
    %589 = arith.addf %587, %588 : vector<2x32xf32>
    %590 = arith.mulf %579, %554 : vector<2x32xf32>
    %591 = arith.mulf %571, %581 : vector<2x32xf32>
    %592 = arith.addf %590, %591 : vector<2x32xf32>
    %593 = math.tanh %592 : vector<2x32xf32>
    %594 = arith.mulf %589, %593 : vector<2x32xf32>
    %595 = vector.extract_strided_slice %4 {offsets = [6, 0], sizes = [2, 32], strides = [1, 1]} : vector<16x32xf32> to vector<2x32xf32>
    %596 = vector.extract_strided_slice %6 {offsets = [6, 0], sizes = [2, 32], strides = [1, 1]} : vector<16x32xf32> to vector<2x32xf32>
    %597 = arith.mulf %595, %594 : vector<2x32xf32>
    %598 = arith.mulf %596, %551 : vector<2x32xf32>
    %599 = arith.addf %597, %598 : vector<2x32xf32>
    %600 = arith.mulf %595, %592 : vector<2x32xf32>
    %601 = arith.mulf %596, %554 : vector<2x32xf32>
    %602 = arith.addf %600, %601 : vector<2x32xf32>
    %603 = vector.extract_strided_slice %597 {offsets = [0, 0], sizes = [2, 16], strides = [1, 1]} : vector<2x32xf32> to vector<2x16xf32>
    %c6_202 = arith.constant 6 : index
    %c0_203 = arith.constant 0 : index
    %604 = vector.load %arg7[%c6_202, %c0_203] : memref<16x128xf32, #tpu.memory_space<vmem>>, vector<2x16xf32>
    tpu.vector_store %arg7[%c6_202, %c0_203], %603 {strides = array<i32>} : memref<16x128xf32, #tpu.memory_space<vmem>>, vector<2x16xf32>,
    %605 = vector.extract_strided_slice %597 {offsets = [0, 16], sizes = [2, 16], strides = [1, 1]} : vector<2x32xf32> to vector<2x16xf32>
    %c8_204 = arith.constant 8 : index
    %c16_205 = arith.constant 16 : index
    %606 = vector.load %arg7[%c8_204, %c16_205] : memref<16x128xf32, #tpu.memory_space<vmem>>, vector<2x16xf32>
    tpu.vector_store %arg7[%c8_204, %c16_205], %605 {strides = array<i32>} : memref<16x128xf32, #tpu.memory_space<vmem>>, vector<2x16xf32>,
    %607 = vector.extract_strided_slice %407 {offsets = [8, 0], sizes = [2, 128], strides = [1, 1]} : vector<16x128xf32> to vector<2x128xf32>
    %608 = vector.extract_strided_slice %410 {offsets = [6, 0], sizes = [2, 128], strides = [1, 1]} : vector<16x128xf32> to vector<2x128xf32>
    %609 = arith.addf %607, %608 : vector<2x128xf32>
    %cst_206 = arith.constant dense<0.000000e+00> : vector<2x128xf32>
    %610 = tpu.matmul %599, %412, %cst_206 {dimension_numbers = #tpu.dot_dimension_numbers<[1], [0], [0], [1], [0, 0, 1, 1], [], []>} : vector<2x32xf32>, vector<32x128xf32>, vector<2x128xf32> -> vector<2x128xf32>
    %611 = arith.addf %609, %610 : vector<2x128xf32>
    %612 = vector.extract_strided_slice %611 {offsets = [0, 0], sizes = [2, 32], strides = [1, 1]} : vector<2x128xf32> to vector<2x32xf32>
    %cst_207 = arith.constant 5.000000e-01 : f32
    %613 = vector.broadcast %cst_207 : f32 to vector<2x32xf32>
    %614 = arith.mulf %613, %612 : vector<2x32xf32>
    %615 = math.tanh %614 : vector<2x32xf32>
    %cst_208 = arith.constant 5.000000e-01 : f32
    %616 = vector.broadcast %cst_208 : f32 to vector<2x32xf32>
    %617 = arith.mulf %616, %615 : vector<2x32xf32>
    %cst_209 = arith.constant 5.000000e-01 : f32
    %618 = vector.broadcast %cst_209 : f32 to vector<2x32xf32>
    %619 = arith.addf %617, %618 : vector<2x32xf32>
    %620 = vector.extract_strided_slice %611 {offsets = [0, 32], sizes = [2, 32], strides = [1, 1]} : vector<2x128xf32> to vector<2x32xf32>
    %cst_210 = arith.constant 5.000000e-01 : f32
    %621 = vector.broadcast %cst_210 : f32 to vector<2x32xf32>
    %622 = arith.mulf %621, %620 : vector<2x32xf32>
    %623 = math.tanh %622 : vector<2x32xf32>
    %cst_211 = arith.constant 5.000000e-01 : f32
    %624 = vector.broadcast %cst_211 : f32 to vector<2x32xf32>
    %625 = arith.mulf %624, %623 : vector<2x32xf32>
    %cst_212 = arith.constant 5.000000e-01 : f32
    %626 = vector.broadcast %cst_212 : f32 to vector<2x32xf32>
    %627 = arith.addf %625, %626 : vector<2x32xf32>
    %628 = vector.extract_strided_slice %611 {offsets = [0, 64], sizes = [2, 32], strides = [1, 1]} : vector<2x128xf32> to vector<2x32xf32>
    %629 = math.tanh %628 : vector<2x32xf32>
    %630 = vector.extract_strided_slice %611 {offsets = [0, 96], sizes = [2, 32], strides = [1, 1]} : vector<2x128xf32> to vector<2x32xf32>
    %cst_213 = arith.constant 5.000000e-01 : f32
    %631 = vector.broadcast %cst_213 : f32 to vector<2x32xf32>
    %632 = arith.mulf %631, %630 : vector<2x32xf32>
    %633 = math.tanh %632 : vector<2x32xf32>
    %cst_214 = arith.constant 5.000000e-01 : f32
    %634 = vector.broadcast %cst_214 : f32 to vector<2x32xf32>
    %635 = arith.mulf %634, %633 : vector<2x32xf32>
    %cst_215 = arith.constant 5.000000e-01 : f32
    %636 = vector.broadcast %cst_215 : f32 to vector<2x32xf32>
    %637 = arith.addf %635, %636 : vector<2x32xf32>
    %638 = arith.mulf %627, %602 : vector<2x32xf32>
    %639 = arith.mulf %619, %629 : vector<2x32xf32>
    %640 = arith.addf %638, %639 : vector<2x32xf32>
    %641 = math.tanh %640 : vector<2x32xf32>
    %642 = arith.mulf %637, %641 : vector<2x32xf32>
    %643 = vector.extract_strided_slice %4 {offsets = [8, 0], sizes = [2, 32], strides = [1, 1]} : vector<16x32xf32> to vector<2x32xf32>
    %644 = vector.extract_strided_slice %6 {offsets = [8, 0], sizes = [2, 32], strides = [1, 1]} : vector<16x32xf32> to vector<2x32xf32>
    %645 = arith.mulf %643, %642 : vector<2x32xf32>
    %646 = arith.mulf %644, %599 : vector<2x32xf32>
    %647 = arith.addf %645, %646 : vector<2x32xf32>
    %648 = arith.mulf %643, %640 : vector<2x32xf32>
    %649 = arith.mulf %644, %602 : vector<2x32xf32>
    %650 = arith.addf %648, %649 : vector<2x32xf32>
    %651 = vector.extract_strided_slice %645 {offsets = [0, 0], sizes = [2, 16], strides = [1, 1]} : vector<2x32xf32> to vector<2x16xf32>
    %c8_216 = arith.constant 8 : index
    %c0_217 = arith.constant 0 : index
    %652 = vector.load %arg7[%c8_216, %c0_217] : memref<16x128xf32, #tpu.memory_space<vmem>>, vector<2x16xf32>
    tpu.vector_store %arg7[%c8_216, %c0_217], %651 {strides = array<i32>} : memref<16x128xf32, #tpu.memory_space<vmem>>, vector<2x16xf32>,
    %653 = vector.extract_strided_slice %645 {offsets = [0, 16], sizes = [2, 16], strides = [1, 1]} : vector<2x32xf32> to vector<2x16xf32>
    %c6_218 = arith.constant 6 : index
    %c16_219 = arith.constant 16 : index
    %654 = vector.load %arg7[%c6_218, %c16_219] : memref<16x128xf32, #tpu.memory_space<vmem>>, vector<2x16xf32>
    tpu.vector_store %arg7[%c6_218, %c16_219], %653 {strides = array<i32>} : memref<16x128xf32, #tpu.memory_space<vmem>>, vector<2x16xf32>,
    %655 = vector.extract_strided_slice %407 {offsets = [10, 0], sizes = [2, 128], strides = [1, 1]} : vector<16x128xf32> to vector<2x128xf32>
    %656 = vector.extract_strided_slice %410 {offsets = [4, 0], sizes = [2, 128], strides = [1, 1]} : vector<16x128xf32> to vector<2x128xf32>
    %657 = arith.addf %655, %656 : vector<2x128xf32>
    %cst_220 = arith.constant dense<0.000000e+00> : vector<2x128xf32>
    %658 = tpu.matmul %647, %412, %cst_220 {dimension_numbers = #tpu.dot_dimension_numbers<[1], [0], [0], [1], [0, 0, 1, 1], [], []>} : vector<2x32xf32>, vector<32x128xf32>, vector<2x128xf32> -> vector<2x128xf32>
    %659 = arith.addf %657, %658 : vector<2x128xf32>
    %660 = vector.extract_strided_slice %659 {offsets = [0, 0], sizes = [2, 32], strides = [1, 1]} : vector<2x128xf32> to vector<2x32xf32>
    %cst_221 = arith.constant 5.000000e-01 : f32
    %661 = vector.broadcast %cst_221 : f32 to vector<2x32xf32>
    %662 = arith.mulf %661, %660 : vector<2x32xf32>
    %663 = math.tanh %662 : vector<2x32xf32>
    %cst_222 = arith.constant 5.000000e-01 : f32
    %664 = vector.broadcast %cst_222 : f32 to vector<2x32xf32>
    %665 = arith.mulf %664, %663 : vector<2x32xf32>
    %cst_223 = arith.constant 5.000000e-01 : f32
    %666 = vector.broadcast %cst_223 : f32 to vector<2x32xf32>
    %667 = arith.addf %665, %666 : vector<2x32xf32>
    %668 = vector.extract_strided_slice %659 {offsets = [0, 32], sizes = [2, 32], strides = [1, 1]} : vector<2x128xf32> to vector<2x32xf32>
    %cst_224 = arith.constant 5.000000e-01 : f32
    %669 = vector.broadcast %cst_224 : f32 to vector<2x32xf32>
    %670 = arith.mulf %669, %668 : vector<2x32xf32>
    %671 = math.tanh %670 : vector<2x32xf32>
    %cst_225 = arith.constant 5.000000e-01 : f32
    %672 = vector.broadcast %cst_225 : f32 to vector<2x32xf32>
    %673 = arith.mulf %672, %671 : vector<2x32xf32>
    %cst_226 = arith.constant 5.000000e-01 : f32
    %674 = vector.broadcast %cst_226 : f32 to vector<2x32xf32>
    %675 = arith.addf %673, %674 : vector<2x32xf32>
    %676 = vector.extract_strided_slice %659 {offsets = [0, 64], sizes = [2, 32], strides = [1, 1]} : vector<2x128xf32> to vector<2x32xf32>
    %677 = math.tanh %676 : vector<2x32xf32>
    %678 = vector.extract_strided_slice %659 {offsets = [0, 96], sizes = [2, 32], strides = [1, 1]} : vector<2x128xf32> to vector<2x32xf32>
    %cst_227 = arith.constant 5.000000e-01 : f32
    %679 = vector.broadcast %cst_227 : f32 to vector<2x32xf32>
    %680 = arith.mulf %679, %678 : vector<2x32xf32>
    %681 = math.tanh %680 : vector<2x32xf32>
    %cst_228 = arith.constant 5.000000e-01 : f32
    %682 = vector.broadcast %cst_228 : f32 to vector<2x32xf32>
    %683 = arith.mulf %682, %681 : vector<2x32xf32>
    %cst_229 = arith.constant 5.000000e-01 : f32
    %684 = vector.broadcast %cst_229 : f32 to vector<2x32xf32>
    %685 = arith.addf %683, %684 : vector<2x32xf32>
    %686 = arith.mulf %675, %650 : vector<2x32xf32>
    %687 = arith.mulf %667, %677 : vector<2x32xf32>
    %688 = arith.addf %686, %687 : vector<2x32xf32>
    %689 = math.tanh %688 : vector<2x32xf32>
    %690 = arith.mulf %685, %689 : vector<2x32xf32>
    %691 = vector.extract_strided_slice %4 {offsets = [10, 0], sizes = [2, 32], strides = [1, 1]} : vector<16x32xf32> to vector<2x32xf32>
    %692 = vector.extract_strided_slice %6 {offsets = [10, 0], sizes = [2, 32], strides = [1, 1]} : vector<16x32xf32> to vector<2x32xf32>
    %693 = arith.mulf %691, %690 : vector<2x32xf32>
    %694 = arith.mulf %692, %647 : vector<2x32xf32>
    %695 = arith.addf %693, %694 : vector<2x32xf32>
    %696 = arith.mulf %691, %688 : vector<2x32xf32>
    %697 = arith.mulf %692, %650 : vector<2x32xf32>
    %698 = arith.addf %696, %697 : vector<2x32xf32>
    %699 = vector.extract_strided_slice %693 {offsets = [0, 0], sizes = [2, 16], strides = [1, 1]} : vector<2x32xf32> to vector<2x16xf32>
    %c10_230 = arith.constant 10 : index
    %c0_231 = arith.constant 0 : index
    %700 = vector.load %arg7[%c10_230, %c0_231] : memref<16x128xf32, #tpu.memory_space<vmem>>, vector<2x16xf32>
    tpu.vector_store %arg7[%c10_230, %c0_231], %699 {strides = array<i32>} : memref<16x128xf32, #tpu.memory_space<vmem>>, vector<2x16xf32>,
    %701 = vector.extract_strided_slice %693 {offsets = [0, 16], sizes = [2, 16], strides = [1, 1]} : vector<2x32xf32> to vector<2x16xf32>
    %c4_232 = arith.constant 4 : index
    %c16_233 = arith.constant 16 : index
    %702 = vector.load %arg7[%c4_232, %c16_233] : memref<16x128xf32, #tpu.memory_space<vmem>>, vector<2x16xf32>
    tpu.vector_store %arg7[%c4_232, %c16_233], %701 {strides = array<i32>} : memref<16x128xf32, #tpu.memory_space<vmem>>, vector<2x16xf32>,
    %703 = vector.extract_strided_slice %407 {offsets = [12, 0], sizes = [2, 128], strides = [1, 1]} : vector<16x128xf32> to vector<2x128xf32>
    %704 = vector.extract_strided_slice %410 {offsets = [2, 0], sizes = [2, 128], strides = [1, 1]} : vector<16x128xf32> to vector<2x128xf32>
    %705 = arith.addf %703, %704 : vector<2x128xf32>
    %cst_234 = arith.constant dense<0.000000e+00> : vector<2x128xf32>
    %706 = tpu.matmul %695, %412, %cst_234 {dimension_numbers = #tpu.dot_dimension_numbers<[1], [0], [0], [1], [0, 0, 1, 1], [], []>} : vector<2x32xf32>, vector<32x128xf32>, vector<2x128xf32> -> vector<2x128xf32>
    %707 = arith.addf %705, %706 : vector<2x128xf32>
    %708 = vector.extract_strided_slice %707 {offsets = [0, 0], sizes = [2, 32], strides = [1, 1]} : vector<2x128xf32> to vector<2x32xf32>
    %cst_235 = arith.constant 5.000000e-01 : f32
    %709 = vector.broadcast %cst_235 : f32 to vector<2x32xf32>
    %710 = arith.mulf %709, %708 : vector<2x32xf32>
    %711 = math.tanh %710 : vector<2x32xf32>
    %cst_236 = arith.constant 5.000000e-01 : f32
    %712 = vector.broadcast %cst_236 : f32 to vector<2x32xf32>
    %713 = arith.mulf %712, %711 : vector<2x32xf32>
    %cst_237 = arith.constant 5.000000e-01 : f32
    %714 = vector.broadcast %cst_237 : f32 to vector<2x32xf32>
    %715 = arith.addf %713, %714 : vector<2x32xf32>
    %716 = vector.extract_strided_slice %707 {offsets = [0, 32], sizes = [2, 32], strides = [1, 1]} : vector<2x128xf32> to vector<2x32xf32>
    %cst_238 = arith.constant 5.000000e-01 : f32
    %717 = vector.broadcast %cst_238 : f32 to vector<2x32xf32>
    %718 = arith.mulf %717, %716 : vector<2x32xf32>
    %719 = math.tanh %718 : vector<2x32xf32>
    %cst_239 = arith.constant 5.000000e-01 : f32
    %720 = vector.broadcast %cst_239 : f32 to vector<2x32xf32>
    %721 = arith.mulf %720, %719 : vector<2x32xf32>
    %cst_240 = arith.constant 5.000000e-01 : f32
    %722 = vector.broadcast %cst_240 : f32 to vector<2x32xf32>
    %723 = arith.addf %721, %722 : vector<2x32xf32>
    %724 = vector.extract_strided_slice %707 {offsets = [0, 64], sizes = [2, 32], strides = [1, 1]} : vector<2x128xf32> to vector<2x32xf32>
    %725 = math.tanh %724 : vector<2x32xf32>
    %726 = vector.extract_strided_slice %707 {offsets = [0, 96], sizes = [2, 32], strides = [1, 1]} : vector<2x128xf32> to vector<2x32xf32>
    %cst_241 = arith.constant 5.000000e-01 : f32
    %727 = vector.broadcast %cst_241 : f32 to vector<2x32xf32>
    %728 = arith.mulf %727, %726 : vector<2x32xf32>
    %729 = math.tanh %728 : vector<2x32xf32>
    %cst_242 = arith.constant 5.000000e-01 : f32
    %730 = vector.broadcast %cst_242 : f32 to vector<2x32xf32>
    %731 = arith.mulf %730, %729 : vector<2x32xf32>
    %cst_243 = arith.constant 5.000000e-01 : f32
    %732 = vector.broadcast %cst_243 : f32 to vector<2x32xf32>
    %733 = arith.addf %731, %732 : vector<2x32xf32>
    %734 = arith.mulf %723, %698 : vector<2x32xf32>
    %735 = arith.mulf %715, %725 : vector<2x32xf32>
    %736 = arith.addf %734, %735 : vector<2x32xf32>
    %737 = math.tanh %736 : vector<2x32xf32>
    %738 = arith.mulf %733, %737 : vector<2x32xf32>
    %739 = vector.extract_strided_slice %4 {offsets = [12, 0], sizes = [2, 32], strides = [1, 1]} : vector<16x32xf32> to vector<2x32xf32>
    %740 = vector.extract_strided_slice %6 {offsets = [12, 0], sizes = [2, 32], strides = [1, 1]} : vector<16x32xf32> to vector<2x32xf32>
    %741 = arith.mulf %739, %738 : vector<2x32xf32>
    %742 = arith.mulf %740, %695 : vector<2x32xf32>
    %743 = arith.addf %741, %742 : vector<2x32xf32>
    %744 = arith.mulf %739, %736 : vector<2x32xf32>
    %745 = arith.mulf %740, %698 : vector<2x32xf32>
    %746 = arith.addf %744, %745 : vector<2x32xf32>
    %747 = vector.extract_strided_slice %741 {offsets = [0, 0], sizes = [2, 16], strides = [1, 1]} : vector<2x32xf32> to vector<2x16xf32>
    %c12_244 = arith.constant 12 : index
    %c0_245 = arith.constant 0 : index
    %748 = vector.load %arg7[%c12_244, %c0_245] : memref<16x128xf32, #tpu.memory_space<vmem>>, vector<2x16xf32>
    tpu.vector_store %arg7[%c12_244, %c0_245], %747 {strides = array<i32>} : memref<16x128xf32, #tpu.memory_space<vmem>>, vector<2x16xf32>,
    %749 = vector.extract_strided_slice %741 {offsets = [0, 16], sizes = [2, 16], strides = [1, 1]} : vector<2x32xf32> to vector<2x16xf32>
    %c2_246 = arith.constant 2 : index
    %c16_247 = arith.constant 16 : index
    %750 = vector.load %arg7[%c2_246, %c16_247] : memref<16x128xf32, #tpu.memory_space<vmem>>, vector<2x16xf32>
    tpu.vector_store %arg7[%c2_246, %c16_247], %749 {strides = array<i32>} : memref<16x128xf32, #tpu.memory_space<vmem>>, vector<2x16xf32>,
    %751 = vector.extract_strided_slice %407 {offsets = [14, 0], sizes = [2, 128], strides = [1, 1]} : vector<16x128xf32> to vector<2x128xf32>
    %752 = vector.extract_strided_slice %410 {offsets = [0, 0], sizes = [2, 128], strides = [1, 1]} : vector<16x128xf32> to vector<2x128xf32>
    %753 = arith.addf %751, %752 : vector<2x128xf32>
    %cst_248 = arith.constant dense<0.000000e+00> : vector<2x128xf32>
    %754 = tpu.matmul %743, %412, %cst_248 {dimension_numbers = #tpu.dot_dimension_numbers<[1], [0], [0], [1], [0, 0, 1, 1], [], []>} : vector<2x32xf32>, vector<32x128xf32>, vector<2x128xf32> -> vector<2x128xf32>
    %755 = arith.addf %753, %754 : vector<2x128xf32>
    %756 = vector.extract_strided_slice %755 {offsets = [0, 0], sizes = [2, 32], strides = [1, 1]} : vector<2x128xf32> to vector<2x32xf32>
    %cst_249 = arith.constant 5.000000e-01 : f32
    %757 = vector.broadcast %cst_249 : f32 to vector<2x32xf32>
    %758 = arith.mulf %757, %756 : vector<2x32xf32>
    %759 = math.tanh %758 : vector<2x32xf32>
    %cst_250 = arith.constant 5.000000e-01 : f32
    %760 = vector.broadcast %cst_250 : f32 to vector<2x32xf32>
    %761 = arith.mulf %760, %759 : vector<2x32xf32>
    %cst_251 = arith.constant 5.000000e-01 : f32
    %762 = vector.broadcast %cst_251 : f32 to vector<2x32xf32>
    %763 = arith.addf %761, %762 : vector<2x32xf32>
    %764 = vector.extract_strided_slice %755 {offsets = [0, 32], sizes = [2, 32], strides = [1, 1]} : vector<2x128xf32> to vector<2x32xf32>
    %cst_252 = arith.constant 5.000000e-01 : f32
    %765 = vector.broadcast %cst_252 : f32 to vector<2x32xf32>
    %766 = arith.mulf %765, %764 : vector<2x32xf32>
    %767 = math.tanh %766 : vector<2x32xf32>
    %cst_253 = arith.constant 5.000000e-01 : f32
    %768 = vector.broadcast %cst_253 : f32 to vector<2x32xf32>
    %769 = arith.mulf %768, %767 : vector<2x32xf32>
    %cst_254 = arith.constant 5.000000e-01 : f32
    %770 = vector.broadcast %cst_254 : f32 to vector<2x32xf32>
    %771 = arith.addf %769, %770 : vector<2x32xf32>
    %772 = vector.extract_strided_slice %755 {offsets = [0, 64], sizes = [2, 32], strides = [1, 1]} : vector<2x128xf32> to vector<2x32xf32>
    %773 = math.tanh %772 : vector<2x32xf32>
    %774 = vector.extract_strided_slice %755 {offsets = [0, 96], sizes = [2, 32], strides = [1, 1]} : vector<2x128xf32> to vector<2x32xf32>
    %cst_255 = arith.constant 5.000000e-01 : f32
    %775 = vector.broadcast %cst_255 : f32 to vector<2x32xf32>
    %776 = arith.mulf %775, %774 : vector<2x32xf32>
    %777 = math.tanh %776 : vector<2x32xf32>
    %cst_256 = arith.constant 5.000000e-01 : f32
    %778 = vector.broadcast %cst_256 : f32 to vector<2x32xf32>
    %779 = arith.mulf %778, %777 : vector<2x32xf32>
    %cst_257 = arith.constant 5.000000e-01 : f32
    %780 = vector.broadcast %cst_257 : f32 to vector<2x32xf32>
    %781 = arith.addf %779, %780 : vector<2x32xf32>
    %782 = arith.mulf %771, %746 : vector<2x32xf32>
    %783 = arith.mulf %763, %773 : vector<2x32xf32>
    %784 = arith.addf %782, %783 : vector<2x32xf32>
    %785 = math.tanh %784 : vector<2x32xf32>
    %786 = arith.mulf %781, %785 : vector<2x32xf32>
    %787 = vector.extract_strided_slice %4 {offsets = [14, 0], sizes = [2, 32], strides = [1, 1]} : vector<16x32xf32> to vector<2x32xf32>
    %788 = arith.mulf %787, %786 : vector<2x32xf32>
    %789 = vector.extract_strided_slice %788 {offsets = [0, 0], sizes = [2, 16], strides = [1, 1]} : vector<2x32xf32> to vector<2x16xf32>
    %c14_258 = arith.constant 14 : index
    %c0_259 = arith.constant 0 : index
    %790 = vector.load %arg7[%c14_258, %c0_259] : memref<16x128xf32, #tpu.memory_space<vmem>>, vector<2x16xf32>
    tpu.vector_store %arg7[%c14_258, %c0_259], %789 {strides = array<i32>} : memref<16x128xf32, #tpu.memory_space<vmem>>, vector<2x16xf32>,
    %791 = vector.extract_strided_slice %788 {offsets = [0, 16], sizes = [2, 16], strides = [1, 1]} : vector<2x32xf32> to vector<2x16xf32>
    %c0_260 = arith.constant 0 : index
    %c16_261 = arith.constant 16 : index
    %792 = vector.load %arg7[%c0_260, %c16_261] : memref<16x128xf32, #tpu.memory_space<vmem>>, vector<2x16xf32>
    tpu.vector_store %arg7[%c0_260, %c16_261], %791 {strides = array<i32>} : memref<16x128xf32, #tpu.memory_space<vmem>>, vector<2x16xf32>,
    %c0_262 = arith.constant 0 : index
    %c0_263 = arith.constant 0 : index
    %793 = vector.load %arg7[%c0_262, %c0_263] : memref<16x128xf32, #tpu.memory_space<vmem>>, vector<16x128xf32>
    %c2_264 = arith.constant 2 : index
    %c0_265 = arith.constant 0 : index
    %c0_266 = arith.constant 0 : index
    %c0_267 = arith.constant 0 : index
    %794 = vector.load %arg2[%c2_264, %c0_265, %c0_266, %c0_267] : memref<3x2x128x128xf32, #tpu.memory_space<vmem>>, vector<1x1x128x128xf32>
    %795 = vector.shape_cast %794 : vector<1x1x128x128xf32> to vector<128x128xf32>
    %cst_268 = arith.constant dense<0.000000e+00> : vector<16x128xf32>
    %796 = tpu.matmul %793, %795, %cst_268 {dimension_numbers = #tpu.dot_dimension_numbers<[1], [0], [0], [1], [0, 0, 1, 1], [], []>} : vector<16x128xf32>, vector<128x128xf32>, vector<16x128xf32> -> vector<16x128xf32>
    %c2_269 = arith.constant 2 : index
    %c0_270 = arith.constant 0 : index
    %c0_271 = arith.constant 0 : index
    %797 = vector.load %arg4[%c2_269, %c0_270, %c0_271] : memref<3x1x128xf32, #tpu.memory_space<vmem>>, vector<1x1x128xf32>
    %798 = vector.shape_cast %797 : vector<1x1x128xf32> to vector<1x128xf32>
    %799 = vector.broadcast %798 : vector<1x128xf32> to vector<16x128xf32>
    %800 = arith.addf %796, %799 : vector<16x128xf32>
    %c2_272 = arith.constant 2 : index
    %c1_273 = arith.constant 1 : index
    %c0_274 = arith.constant 0 : index
    %c0_275 = arith.constant 0 : index
    %801 = vector.load %arg2[%c2_272, %c1_273, %c0_274, %c0_275] : memref<3x2x128x128xf32, #tpu.memory_space<vmem>>, vector<1x1x128x128xf32>
    %802 = vector.shape_cast %801 : vector<1x1x128x128xf32> to vector<128x128xf32>
    %cst_276 = arith.constant dense<0.000000e+00> : vector<16x128xf32>
    %803 = tpu.matmul %793, %802, %cst_276 {dimension_numbers = #tpu.dot_dimension_numbers<[1], [0], [0], [1], [0, 0, 1, 1], [], []>} : vector<16x128xf32>, vector<128x128xf32>, vector<16x128xf32> -> vector<16x128xf32>
    %c2_277 = arith.constant 2 : index
    %c0_278 = arith.constant 0 : index
    %c0_279 = arith.constant 0 : index
    %804 = vector.load %arg3[%c2_277, %c0_278, %c0_279] : memref<3x32x128xf32, #tpu.memory_space<vmem>>, vector<1x32x128xf32>
    %805 = vector.shape_cast %804 : vector<1x32x128xf32> to vector<32x128xf32>
    %cst_280 = arith.constant 0.000000e+00 : f32
    %806 = vector.broadcast %cst_280 : f32 to vector<2x32xf32>
    %cst_281 = arith.constant 0.000000e+00 : f32
    %807 = vector.broadcast %cst_281 : f32 to vector<2x32xf32>
    %808 = vector.extract_strided_slice %800 {offsets = [0, 0], sizes = [2, 128], strides = [1, 1]} : vector<16x128xf32> to vector<2x128xf32>
    %809 = vector.extract_strided_slice %803 {offsets = [14, 0], sizes = [2, 128], strides = [1, 1]} : vector<16x128xf32> to vector<2x128xf32>
    %810 = arith.addf %808, %809 : vector<2x128xf32>
    %cst_282 = arith.constant dense<0.000000e+00> : vector<2x128xf32>
    %811 = tpu.matmul %806, %805, %cst_282 {dimension_numbers = #tpu.dot_dimension_numbers<[1], [0], [0], [1], [0, 0, 1, 1], [], []>} : vector<2x32xf32>, vector<32x128xf32>, vector<2x128xf32> -> vector<2x128xf32>
    %812 = arith.addf %810, %811 : vector<2x128xf32>
    %813 = vector.extract_strided_slice %812 {offsets = [0, 0], sizes = [2, 32], strides = [1, 1]} : vector<2x128xf32> to vector<2x32xf32>
    %cst_283 = arith.constant 5.000000e-01 : f32
    %814 = vector.broadcast %cst_283 : f32 to vector<2x32xf32>
    %815 = arith.mulf %814, %813 : vector<2x32xf32>
    %816 = math.tanh %815 : vector<2x32xf32>
    %cst_284 = arith.constant 5.000000e-01 : f32
    %817 = vector.broadcast %cst_284 : f32 to vector<2x32xf32>
    %818 = arith.mulf %817, %816 : vector<2x32xf32>
    %cst_285 = arith.constant 5.000000e-01 : f32
    %819 = vector.broadcast %cst_285 : f32 to vector<2x32xf32>
    %820 = arith.addf %818, %819 : vector<2x32xf32>
    %821 = vector.extract_strided_slice %812 {offsets = [0, 32], sizes = [2, 32], strides = [1, 1]} : vector<2x128xf32> to vector<2x32xf32>
    %cst_286 = arith.constant 5.000000e-01 : f32
    %822 = vector.broadcast %cst_286 : f32 to vector<2x32xf32>
    %823 = arith.mulf %822, %821 : vector<2x32xf32>
    %824 = math.tanh %823 : vector<2x32xf32>
    %cst_287 = arith.constant 5.000000e-01 : f32
    %825 = vector.broadcast %cst_287 : f32 to vector<2x32xf32>
    %826 = arith.mulf %825, %824 : vector<2x32xf32>
    %cst_288 = arith.constant 5.000000e-01 : f32
    %827 = vector.broadcast %cst_288 : f32 to vector<2x32xf32>
    %828 = arith.addf %826, %827 : vector<2x32xf32>
    %829 = vector.extract_strided_slice %812 {offsets = [0, 64], sizes = [2, 32], strides = [1, 1]} : vector<2x128xf32> to vector<2x32xf32>
    %830 = math.tanh %829 : vector<2x32xf32>
    %831 = vector.extract_strided_slice %812 {offsets = [0, 96], sizes = [2, 32], strides = [1, 1]} : vector<2x128xf32> to vector<2x32xf32>
    %cst_289 = arith.constant 5.000000e-01 : f32
    %832 = vector.broadcast %cst_289 : f32 to vector<2x32xf32>
    %833 = arith.mulf %832, %831 : vector<2x32xf32>
    %834 = math.tanh %833 : vector<2x32xf32>
    %cst_290 = arith.constant 5.000000e-01 : f32
    %835 = vector.broadcast %cst_290 : f32 to vector<2x32xf32>
    %836 = arith.mulf %835, %834 : vector<2x32xf32>
    %cst_291 = arith.constant 5.000000e-01 : f32
    %837 = vector.broadcast %cst_291 : f32 to vector<2x32xf32>
    %838 = arith.addf %836, %837 : vector<2x32xf32>
    %839 = arith.mulf %828, %807 : vector<2x32xf32>
    %840 = arith.mulf %820, %830 : vector<2x32xf32>
    %841 = arith.addf %839, %840 : vector<2x32xf32>
    %842 = math.tanh %841 : vector<2x32xf32>
    %843 = arith.mulf %838, %842 : vector<2x32xf32>
    %844 = vector.extract_strided_slice %4 {offsets = [0, 0], sizes = [2, 32], strides = [1, 1]} : vector<16x32xf32> to vector<2x32xf32>
    %845 = vector.extract_strided_slice %6 {offsets = [0, 0], sizes = [2, 32], strides = [1, 1]} : vector<16x32xf32> to vector<2x32xf32>
    %846 = arith.mulf %844, %843 : vector<2x32xf32>
    %847 = arith.mulf %845, %806 : vector<2x32xf32>
    %848 = arith.addf %846, %847 : vector<2x32xf32>
    %849 = arith.mulf %844, %841 : vector<2x32xf32>
    %850 = arith.mulf %845, %807 : vector<2x32xf32>
    %851 = arith.addf %849, %850 : vector<2x32xf32>
    %852 = vector.extract_strided_slice %846 {offsets = [0, 0], sizes = [2, 16], strides = [1, 1]} : vector<2x32xf32> to vector<2x16xf32>
    %c0_292 = arith.constant 0 : index
    %c0_293 = arith.constant 0 : index
    %853 = vector.load %arg5[%c0_292, %c0_293] : memref<16x128xf32, #tpu.memory_space<vmem>>, vector<2x16xf32>
    tpu.vector_store %arg5[%c0_292, %c0_293], %852 {strides = array<i32>} : memref<16x128xf32, #tpu.memory_space<vmem>>, vector<2x16xf32>,
    %854 = vector.extract_strided_slice %846 {offsets = [0, 16], sizes = [2, 16], strides = [1, 1]} : vector<2x32xf32> to vector<2x16xf32>
    %c14_294 = arith.constant 14 : index
    %c16_295 = arith.constant 16 : index
    %855 = vector.load %arg5[%c14_294, %c16_295] : memref<16x128xf32, #tpu.memory_space<vmem>>, vector<2x16xf32>
    tpu.vector_store %arg5[%c14_294, %c16_295], %854 {strides = array<i32>} : memref<16x128xf32, #tpu.memory_space<vmem>>, vector<2x16xf32>,
    %856 = vector.extract_strided_slice %800 {offsets = [2, 0], sizes = [2, 128], strides = [1, 1]} : vector<16x128xf32> to vector<2x128xf32>
    %857 = vector.extract_strided_slice %803 {offsets = [12, 0], sizes = [2, 128], strides = [1, 1]} : vector<16x128xf32> to vector<2x128xf32>
    %858 = arith.addf %856, %857 : vector<2x128xf32>
    %cst_296 = arith.constant dense<0.000000e+00> : vector<2x128xf32>
    %859 = tpu.matmul %848, %805, %cst_296 {dimension_numbers = #tpu.dot_dimension_numbers<[1], [0], [0], [1], [0, 0, 1, 1], [], []>} : vector<2x32xf32>, vector<32x128xf32>, vector<2x128xf32> -> vector<2x128xf32>
    %860 = arith.addf %858, %859 : vector<2x128xf32>
    %861 = vector.extract_strided_slice %860 {offsets = [0, 0], sizes = [2, 32], strides = [1, 1]} : vector<2x128xf32> to vector<2x32xf32>
    %cst_297 = arith.constant 5.000000e-01 : f32
    %862 = vector.broadcast %cst_297 : f32 to vector<2x32xf32>
    %863 = arith.mulf %862, %861 : vector<2x32xf32>
    %864 = math.tanh %863 : vector<2x32xf32>
    %cst_298 = arith.constant 5.000000e-01 : f32
    %865 = vector.broadcast %cst_298 : f32 to vector<2x32xf32>
    %866 = arith.mulf %865, %864 : vector<2x32xf32>
    %cst_299 = arith.constant 5.000000e-01 : f32
    %867 = vector.broadcast %cst_299 : f32 to vector<2x32xf32>
    %868 = arith.addf %866, %867 : vector<2x32xf32>
    %869 = vector.extract_strided_slice %860 {offsets = [0, 32], sizes = [2, 32], strides = [1, 1]} : vector<2x128xf32> to vector<2x32xf32>
    %cst_300 = arith.constant 5.000000e-01 : f32
    %870 = vector.broadcast %cst_300 : f32 to vector<2x32xf32>
    %871 = arith.mulf %870, %869 : vector<2x32xf32>
    %872 = math.tanh %871 : vector<2x32xf32>
    %cst_301 = arith.constant 5.000000e-01 : f32
    %873 = vector.broadcast %cst_301 : f32 to vector<2x32xf32>
    %874 = arith.mulf %873, %872 : vector<2x32xf32>
    %cst_302 = arith.constant 5.000000e-01 : f32
    %875 = vector.broadcast %cst_302 : f32 to vector<2x32xf32>
    %876 = arith.addf %874, %875 : vector<2x32xf32>
    %877 = vector.extract_strided_slice %860 {offsets = [0, 64], sizes = [2, 32], strides = [1, 1]} : vector<2x128xf32> to vector<2x32xf32>
    %878 = math.tanh %877 : vector<2x32xf32>
    %879 = vector.extract_strided_slice %860 {offsets = [0, 96], sizes = [2, 32], strides = [1, 1]} : vector<2x128xf32> to vector<2x32xf32>
    %cst_303 = arith.constant 5.000000e-01 : f32
    %880 = vector.broadcast %cst_303 : f32 to vector<2x32xf32>
    %881 = arith.mulf %880, %879 : vector<2x32xf32>
    %882 = math.tanh %881 : vector<2x32xf32>
    %cst_304 = arith.constant 5.000000e-01 : f32
    %883 = vector.broadcast %cst_304 : f32 to vector<2x32xf32>
    %884 = arith.mulf %883, %882 : vector<2x32xf32>
    %cst_305 = arith.constant 5.000000e-01 : f32
    %885 = vector.broadcast %cst_305 : f32 to vector<2x32xf32>
    %886 = arith.addf %884, %885 : vector<2x32xf32>
    %887 = arith.mulf %876, %851 : vector<2x32xf32>
    %888 = arith.mulf %868, %878 : vector<2x32xf32>
    %889 = arith.addf %887, %888 : vector<2x32xf32>
    %890 = math.tanh %889 : vector<2x32xf32>
    %891 = arith.mulf %886, %890 : vector<2x32xf32>
    %892 = vector.extract_strided_slice %4 {offsets = [2, 0], sizes = [2, 32], strides = [1, 1]} : vector<16x32xf32> to vector<2x32xf32>
    %893 = vector.extract_strided_slice %6 {offsets = [2, 0], sizes = [2, 32], strides = [1, 1]} : vector<16x32xf32> to vector<2x32xf32>
    %894 = arith.mulf %892, %891 : vector<2x32xf32>
    %895 = arith.mulf %893, %848 : vector<2x32xf32>
    %896 = arith.addf %894, %895 : vector<2x32xf32>
    %897 = arith.mulf %892, %889 : vector<2x32xf32>
    %898 = arith.mulf %893, %851 : vector<2x32xf32>
    %899 = arith.addf %897, %898 : vector<2x32xf32>
    %900 = vector.extract_strided_slice %894 {offsets = [0, 0], sizes = [2, 16], strides = [1, 1]} : vector<2x32xf32> to vector<2x16xf32>
    %c2_306 = arith.constant 2 : index
    %c0_307 = arith.constant 0 : index
    %901 = vector.load %arg5[%c2_306, %c0_307] : memref<16x128xf32, #tpu.memory_space<vmem>>, vector<2x16xf32>
    tpu.vector_store %arg5[%c2_306, %c0_307], %900 {strides = array<i32>} : memref<16x128xf32, #tpu.memory_space<vmem>>, vector<2x16xf32>,
    %902 = vector.extract_strided_slice %894 {offsets = [0, 16], sizes = [2, 16], strides = [1, 1]} : vector<2x32xf32> to vector<2x16xf32>
    %c12_308 = arith.constant 12 : index
    %c16_309 = arith.constant 16 : index
    %903 = vector.load %arg5[%c12_308, %c16_309] : memref<16x128xf32, #tpu.memory_space<vmem>>, vector<2x16xf32>
    tpu.vector_store %arg5[%c12_308, %c16_309], %902 {strides = array<i32>} : memref<16x128xf32, #tpu.memory_space<vmem>>, vector<2x16xf32>,
    %904 = vector.extract_strided_slice %800 {offsets = [4, 0], sizes = [2, 128], strides = [1, 1]} : vector<16x128xf32> to vector<2x128xf32>
    %905 = vector.extract_strided_slice %803 {offsets = [10, 0], sizes = [2, 128], strides = [1, 1]} : vector<16x128xf32> to vector<2x128xf32>
    %906 = arith.addf %904, %905 : vector<2x128xf32>
    %cst_310 = arith.constant dense<0.000000e+00> : vector<2x128xf32>
    %907 = tpu.matmul %896, %805, %cst_310 {dimension_numbers = #tpu.dot_dimension_numbers<[1], [0], [0], [1], [0, 0, 1, 1], [], []>} : vector<2x32xf32>, vector<32x128xf32>, vector<2x128xf32> -> vector<2x128xf32>
    %908 = arith.addf %906, %907 : vector<2x128xf32>
    %909 = vector.extract_strided_slice %908 {offsets = [0, 0], sizes = [2, 32], strides = [1, 1]} : vector<2x128xf32> to vector<2x32xf32>
    %cst_311 = arith.constant 5.000000e-01 : f32
    %910 = vector.broadcast %cst_311 : f32 to vector<2x32xf32>
    %911 = arith.mulf %910, %909 : vector<2x32xf32>
    %912 = math.tanh %911 : vector<2x32xf32>
    %cst_312 = arith.constant 5.000000e-01 : f32
    %913 = vector.broadcast %cst_312 : f32 to vector<2x32xf32>
    %914 = arith.mulf %913, %912 : vector<2x32xf32>
    %cst_313 = arith.constant 5.000000e-01 : f32
    %915 = vector.broadcast %cst_313 : f32 to vector<2x32xf32>
    %916 = arith.addf %914, %915 : vector<2x32xf32>
    %917 = vector.extract_strided_slice %908 {offsets = [0, 32], sizes = [2, 32], strides = [1, 1]} : vector<2x128xf32> to vector<2x32xf32>
    %cst_314 = arith.constant 5.000000e-01 : f32
    %918 = vector.broadcast %cst_314 : f32 to vector<2x32xf32>
    %919 = arith.mulf %918, %917 : vector<2x32xf32>
    %920 = math.tanh %919 : vector<2x32xf32>
    %cst_315 = arith.constant 5.000000e-01 : f32
    %921 = vector.broadcast %cst_315 : f32 to vector<2x32xf32>
    %922 = arith.mulf %921, %920 : vector<2x32xf32>
    %cst_316 = arith.constant 5.000000e-01 : f32
    %923 = vector.broadcast %cst_316 : f32 to vector<2x32xf32>
    %924 = arith.addf %922, %923 : vector<2x32xf32>
    %925 = vector.extract_strided_slice %908 {offsets = [0, 64], sizes = [2, 32], strides = [1, 1]} : vector<2x128xf32> to vector<2x32xf32>
    %926 = math.tanh %925 : vector<2x32xf32>
    %927 = vector.extract_strided_slice %908 {offsets = [0, 96], sizes = [2, 32], strides = [1, 1]} : vector<2x128xf32> to vector<2x32xf32>
    %cst_317 = arith.constant 5.000000e-01 : f32
    %928 = vector.broadcast %cst_317 : f32 to vector<2x32xf32>
    %929 = arith.mulf %928, %927 : vector<2x32xf32>
    %930 = math.tanh %929 : vector<2x32xf32>
    %cst_318 = arith.constant 5.000000e-01 : f32
    %931 = vector.broadcast %cst_318 : f32 to vector<2x32xf32>
    %932 = arith.mulf %931, %930 : vector<2x32xf32>
    %cst_319 = arith.constant 5.000000e-01 : f32
    %933 = vector.broadcast %cst_319 : f32 to vector<2x32xf32>
    %934 = arith.addf %932, %933 : vector<2x32xf32>
    %935 = arith.mulf %924, %899 : vector<2x32xf32>
    %936 = arith.mulf %916, %926 : vector<2x32xf32>
    %937 = arith.addf %935, %936 : vector<2x32xf32>
    %938 = math.tanh %937 : vector<2x32xf32>
    %939 = arith.mulf %934, %938 : vector<2x32xf32>
    %940 = vector.extract_strided_slice %4 {offsets = [4, 0], sizes = [2, 32], strides = [1, 1]} : vector<16x32xf32> to vector<2x32xf32>
    %941 = vector.extract_strided_slice %6 {offsets = [4, 0], sizes = [2, 32], strides = [1, 1]} : vector<16x32xf32> to vector<2x32xf32>
    %942 = arith.mulf %940, %939 : vector<2x32xf32>
    %943 = arith.mulf %941, %896 : vector<2x32xf32>
    %944 = arith.addf %942, %943 : vector<2x32xf32>
    %945 = arith.mulf %940, %937 : vector<2x32xf32>
    %946 = arith.mulf %941, %899 : vector<2x32xf32>
    %947 = arith.addf %945, %946 : vector<2x32xf32>
    %948 = vector.extract_strided_slice %942 {offsets = [0, 0], sizes = [2, 16], strides = [1, 1]} : vector<2x32xf32> to vector<2x16xf32>
    %c4_320 = arith.constant 4 : index
    %c0_321 = arith.constant 0 : index
    %949 = vector.load %arg5[%c4_320, %c0_321] : memref<16x128xf32, #tpu.memory_space<vmem>>, vector<2x16xf32>
    tpu.vector_store %arg5[%c4_320, %c0_321], %948 {strides = array<i32>} : memref<16x128xf32, #tpu.memory_space<vmem>>, vector<2x16xf32>,
    %950 = vector.extract_strided_slice %942 {offsets = [0, 16], sizes = [2, 16], strides = [1, 1]} : vector<2x32xf32> to vector<2x16xf32>
    %c10_322 = arith.constant 10 : index
    %c16_323 = arith.constant 16 : index
    %951 = vector.load %arg5[%c10_322, %c16_323] : memref<16x128xf32, #tpu.memory_space<vmem>>, vector<2x16xf32>
    tpu.vector_store %arg5[%c10_322, %c16_323], %950 {strides = array<i32>} : memref<16x128xf32, #tpu.memory_space<vmem>>, vector<2x16xf32>,
    %952 = vector.extract_strided_slice %800 {offsets = [6, 0], sizes = [2, 128], strides = [1, 1]} : vector<16x128xf32> to vector<2x128xf32>
    %953 = vector.extract_strided_slice %803 {offsets = [8, 0], sizes = [2, 128], strides = [1, 1]} : vector<16x128xf32> to vector<2x128xf32>
    %954 = arith.addf %952, %953 : vector<2x128xf32>
    %cst_324 = arith.constant dense<0.000000e+00> : vector<2x128xf32>
    %955 = tpu.matmul %944, %805, %cst_324 {dimension_numbers = #tpu.dot_dimension_numbers<[1], [0], [0], [1], [0, 0, 1, 1], [], []>} : vector<2x32xf32>, vector<32x128xf32>, vector<2x128xf32> -> vector<2x128xf32>
    %956 = arith.addf %954, %955 : vector<2x128xf32>
    %957 = vector.extract_strided_slice %956 {offsets = [0, 0], sizes = [2, 32], strides = [1, 1]} : vector<2x128xf32> to vector<2x32xf32>
    %cst_325 = arith.constant 5.000000e-01 : f32
    %958 = vector.broadcast %cst_325 : f32 to vector<2x32xf32>
    %959 = arith.mulf %958, %957 : vector<2x32xf32>
    %960 = math.tanh %959 : vector<2x32xf32>
    %cst_326 = arith.constant 5.000000e-01 : f32
    %961 = vector.broadcast %cst_326 : f32 to vector<2x32xf32>
    %962 = arith.mulf %961, %960 : vector<2x32xf32>
    %cst_327 = arith.constant 5.000000e-01 : f32
    %963 = vector.broadcast %cst_327 : f32 to vector<2x32xf32>
    %964 = arith.addf %962, %963 : vector<2x32xf32>
    %965 = vector.extract_strided_slice %956 {offsets = [0, 32], sizes = [2, 32], strides = [1, 1]} : vector<2x128xf32> to vector<2x32xf32>
    %cst_328 = arith.constant 5.000000e-01 : f32
    %966 = vector.broadcast %cst_328 : f32 to vector<2x32xf32>
    %967 = arith.mulf %966, %965 : vector<2x32xf32>
    %968 = math.tanh %967 : vector<2x32xf32>
    %cst_329 = arith.constant 5.000000e-01 : f32
    %969 = vector.broadcast %cst_329 : f32 to vector<2x32xf32>
    %970 = arith.mulf %969, %968 : vector<2x32xf32>
    %cst_330 = arith.constant 5.000000e-01 : f32
    %971 = vector.broadcast %cst_330 : f32 to vector<2x32xf32>
    %972 = arith.addf %970, %971 : vector<2x32xf32>
    %973 = vector.extract_strided_slice %956 {offsets = [0, 64], sizes = [2, 32], strides = [1, 1]} : vector<2x128xf32> to vector<2x32xf32>
    %974 = math.tanh %973 : vector<2x32xf32>
    %975 = vector.extract_strided_slice %956 {offsets = [0, 96], sizes = [2, 32], strides = [1, 1]} : vector<2x128xf32> to vector<2x32xf32>
    %cst_331 = arith.constant 5.000000e-01 : f32
    %976 = vector.broadcast %cst_331 : f32 to vector<2x32xf32>
    %977 = arith.mulf %976, %975 : vector<2x32xf32>
    %978 = math.tanh %977 : vector<2x32xf32>
    %cst_332 = arith.constant 5.000000e-01 : f32
    %979 = vector.broadcast %cst_332 : f32 to vector<2x32xf32>
    %980 = arith.mulf %979, %978 : vector<2x32xf32>
    %cst_333 = arith.constant 5.000000e-01 : f32
    %981 = vector.broadcast %cst_333 : f32 to vector<2x32xf32>
    %982 = arith.addf %980, %981 : vector<2x32xf32>
    %983 = arith.mulf %972, %947 : vector<2x32xf32>
    %984 = arith.mulf %964, %974 : vector<2x32xf32>
    %985 = arith.addf %983, %984 : vector<2x32xf32>
    %986 = math.tanh %985 : vector<2x32xf32>
    %987 = arith.mulf %982, %986 : vector<2x32xf32>
    %988 = vector.extract_strided_slice %4 {offsets = [6, 0], sizes = [2, 32], strides = [1, 1]} : vector<16x32xf32> to vector<2x32xf32>
    %989 = vector.extract_strided_slice %6 {offsets = [6, 0], sizes = [2, 32], strides = [1, 1]} : vector<16x32xf32> to vector<2x32xf32>
    %990 = arith.mulf %988, %987 : vector<2x32xf32>
    %991 = arith.mulf %989, %944 : vector<2x32xf32>
    %992 = arith.addf %990, %991 : vector<2x32xf32>
    %993 = arith.mulf %988, %985 : vector<2x32xf32>
    %994 = arith.mulf %989, %947 : vector<2x32xf32>
    %995 = arith.addf %993, %994 : vector<2x32xf32>
    %996 = vector.extract_strided_slice %990 {offsets = [0, 0], sizes = [2, 16], strides = [1, 1]} : vector<2x32xf32> to vector<2x16xf32>
    %c6_334 = arith.constant 6 : index
    %c0_335 = arith.constant 0 : index
    %997 = vector.load %arg5[%c6_334, %c0_335] : memref<16x128xf32, #tpu.memory_space<vmem>>, vector<2x16xf32>
    tpu.vector_store %arg5[%c6_334, %c0_335], %996 {strides = array<i32>} : memref<16x128xf32, #tpu.memory_space<vmem>>, vector<2x16xf32>,
    %998 = vector.extract_strided_slice %990 {offsets = [0, 16], sizes = [2, 16], strides = [1, 1]} : vector<2x32xf32> to vector<2x16xf32>
    %c8_336 = arith.constant 8 : index
    %c16_337 = arith.constant 16 : index
    %999 = vector.load %arg5[%c8_336, %c16_337] : memref<16x128xf32, #tpu.memory_space<vmem>>, vector<2x16xf32>
    tpu.vector_store %arg5[%c8_336, %c16_337], %998 {strides = array<i32>} : memref<16x128xf32, #tpu.memory_space<vmem>>, vector<2x16xf32>,
    %1000 = vector.extract_strided_slice %800 {offsets = [8, 0], sizes = [2, 128], strides = [1, 1]} : vector<16x128xf32> to vector<2x128xf32>
    %1001 = vector.extract_strided_slice %803 {offsets = [6, 0], sizes = [2, 128], strides = [1, 1]} : vector<16x128xf32> to vector<2x128xf32>
    %1002 = arith.addf %1000, %1001 : vector<2x128xf32>
    %cst_338 = arith.constant dense<0.000000e+00> : vector<2x128xf32>
    %1003 = tpu.matmul %992, %805, %cst_338 {dimension_numbers = #tpu.dot_dimension_numbers<[1], [0], [0], [1], [0, 0, 1, 1], [], []>} : vector<2x32xf32>, vector<32x128xf32>, vector<2x128xf32> -> vector<2x128xf32>
    %1004 = arith.addf %1002, %1003 : vector<2x128xf32>
    %1005 = vector.extract_strided_slice %1004 {offsets = [0, 0], sizes = [2, 32], strides = [1, 1]} : vector<2x128xf32> to vector<2x32xf32>
    %cst_339 = arith.constant 5.000000e-01 : f32
    %1006 = vector.broadcast %cst_339 : f32 to vector<2x32xf32>
    %1007 = arith.mulf %1006, %1005 : vector<2x32xf32>
    %1008 = math.tanh %1007 : vector<2x32xf32>
    %cst_340 = arith.constant 5.000000e-01 : f32
    %1009 = vector.broadcast %cst_340 : f32 to vector<2x32xf32>
    %1010 = arith.mulf %1009, %1008 : vector<2x32xf32>
    %cst_341 = arith.constant 5.000000e-01 : f32
    %1011 = vector.broadcast %cst_341 : f32 to vector<2x32xf32>
    %1012 = arith.addf %1010, %1011 : vector<2x32xf32>
    %1013 = vector.extract_strided_slice %1004 {offsets = [0, 32], sizes = [2, 32], strides = [1, 1]} : vector<2x128xf32> to vector<2x32xf32>
    %cst_342 = arith.constant 5.000000e-01 : f32
    %1014 = vector.broadcast %cst_342 : f32 to vector<2x32xf32>
    %1015 = arith.mulf %1014, %1013 : vector<2x32xf32>
    %1016 = math.tanh %1015 : vector<2x32xf32>
    %cst_343 = arith.constant 5.000000e-01 : f32
    %1017 = vector.broadcast %cst_343 : f32 to vector<2x32xf32>
    %1018 = arith.mulf %1017, %1016 : vector<2x32xf32>
    %cst_344 = arith.constant 5.000000e-01 : f32
    %1019 = vector.broadcast %cst_344 : f32 to vector<2x32xf32>
    %1020 = arith.addf %1018, %1019 : vector<2x32xf32>
    %1021 = vector.extract_strided_slice %1004 {offsets = [0, 64], sizes = [2, 32], strides = [1, 1]} : vector<2x128xf32> to vector<2x32xf32>
    %1022 = math.tanh %1021 : vector<2x32xf32>
    %1023 = vector.extract_strided_slice %1004 {offsets = [0, 96], sizes = [2, 32], strides = [1, 1]} : vector<2x128xf32> to vector<2x32xf32>
    %cst_345 = arith.constant 5.000000e-01 : f32
    %1024 = vector.broadcast %cst_345 : f32 to vector<2x32xf32>
    %1025 = arith.mulf %1024, %1023 : vector<2x32xf32>
    %1026 = math.tanh %1025 : vector<2x32xf32>
    %cst_346 = arith.constant 5.000000e-01 : f32
    %1027 = vector.broadcast %cst_346 : f32 to vector<2x32xf32>
    %1028 = arith.mulf %1027, %1026 : vector<2x32xf32>
    %cst_347 = arith.constant 5.000000e-01 : f32
    %1029 = vector.broadcast %cst_347 : f32 to vector<2x32xf32>
    %1030 = arith.addf %1028, %1029 : vector<2x32xf32>
    %1031 = arith.mulf %1020, %995 : vector<2x32xf32>
    %1032 = arith.mulf %1012, %1022 : vector<2x32xf32>
    %1033 = arith.addf %1031, %1032 : vector<2x32xf32>
    %1034 = math.tanh %1033 : vector<2x32xf32>
    %1035 = arith.mulf %1030, %1034 : vector<2x32xf32>
    %1036 = vector.extract_strided_slice %4 {offsets = [8, 0], sizes = [2, 32], strides = [1, 1]} : vector<16x32xf32> to vector<2x32xf32>
    %1037 = vector.extract_strided_slice %6 {offsets = [8, 0], sizes = [2, 32], strides = [1, 1]} : vector<16x32xf32> to vector<2x32xf32>
    %1038 = arith.mulf %1036, %1035 : vector<2x32xf32>
    %1039 = arith.mulf %1037, %992 : vector<2x32xf32>
    %1040 = arith.addf %1038, %1039 : vector<2x32xf32>
    %1041 = arith.mulf %1036, %1033 : vector<2x32xf32>
    %1042 = arith.mulf %1037, %995 : vector<2x32xf32>
    %1043 = arith.addf %1041, %1042 : vector<2x32xf32>
    %1044 = vector.extract_strided_slice %1038 {offsets = [0, 0], sizes = [2, 16], strides = [1, 1]} : vector<2x32xf32> to vector<2x16xf32>
    %c8_348 = arith.constant 8 : index
    %c0_349 = arith.constant 0 : index
    %1045 = vector.load %arg5[%c8_348, %c0_349] : memref<16x128xf32, #tpu.memory_space<vmem>>, vector<2x16xf32>
    tpu.vector_store %arg5[%c8_348, %c0_349], %1044 {strides = array<i32>} : memref<16x128xf32, #tpu.memory_space<vmem>>, vector<2x16xf32>,
    %1046 = vector.extract_strided_slice %1038 {offsets = [0, 16], sizes = [2, 16], strides = [1, 1]} : vector<2x32xf32> to vector<2x16xf32>
    %c6_350 = arith.constant 6 : index
    %c16_351 = arith.constant 16 : index
    %1047 = vector.load %arg5[%c6_350, %c16_351] : memref<16x128xf32, #tpu.memory_space<vmem>>, vector<2x16xf32>
    tpu.vector_store %arg5[%c6_350, %c16_351], %1046 {strides = array<i32>} : memref<16x128xf32, #tpu.memory_space<vmem>>, vector<2x16xf32>,
    %1048 = vector.extract_strided_slice %800 {offsets = [10, 0], sizes = [2, 128], strides = [1, 1]} : vector<16x128xf32> to vector<2x128xf32>
    %1049 = vector.extract_strided_slice %803 {offsets = [4, 0], sizes = [2, 128], strides = [1, 1]} : vector<16x128xf32> to vector<2x128xf32>
    %1050 = arith.addf %1048, %1049 : vector<2x128xf32>
    %cst_352 = arith.constant dense<0.000000e+00> : vector<2x128xf32>
    %1051 = tpu.matmul %1040, %805, %cst_352 {dimension_numbers = #tpu.dot_dimension_numbers<[1], [0], [0], [1], [0, 0, 1, 1], [], []>} : vector<2x32xf32>, vector<32x128xf32>, vector<2x128xf32> -> vector<2x128xf32>
    %1052 = arith.addf %1050, %1051 : vector<2x128xf32>
    %1053 = vector.extract_strided_slice %1052 {offsets = [0, 0], sizes = [2, 32], strides = [1, 1]} : vector<2x128xf32> to vector<2x32xf32>
    %cst_353 = arith.constant 5.000000e-01 : f32
    %1054 = vector.broadcast %cst_353 : f32 to vector<2x32xf32>
    %1055 = arith.mulf %1054, %1053 : vector<2x32xf32>
    %1056 = math.tanh %1055 : vector<2x32xf32>
    %cst_354 = arith.constant 5.000000e-01 : f32
    %1057 = vector.broadcast %cst_354 : f32 to vector<2x32xf32>
    %1058 = arith.mulf %1057, %1056 : vector<2x32xf32>
    %cst_355 = arith.constant 5.000000e-01 : f32
    %1059 = vector.broadcast %cst_355 : f32 to vector<2x32xf32>
    %1060 = arith.addf %1058, %1059 : vector<2x32xf32>
    %1061 = vector.extract_strided_slice %1052 {offsets = [0, 32], sizes = [2, 32], strides = [1, 1]} : vector<2x128xf32> to vector<2x32xf32>
    %cst_356 = arith.constant 5.000000e-01 : f32
    %1062 = vector.broadcast %cst_356 : f32 to vector<2x32xf32>
    %1063 = arith.mulf %1062, %1061 : vector<2x32xf32>
    %1064 = math.tanh %1063 : vector<2x32xf32>
    %cst_357 = arith.constant 5.000000e-01 : f32
    %1065 = vector.broadcast %cst_357 : f32 to vector<2x32xf32>
    %1066 = arith.mulf %1065, %1064 : vector<2x32xf32>
    %cst_358 = arith.constant 5.000000e-01 : f32
    %1067 = vector.broadcast %cst_358 : f32 to vector<2x32xf32>
    %1068 = arith.addf %1066, %1067 : vector<2x32xf32>
    %1069 = vector.extract_strided_slice %1052 {offsets = [0, 64], sizes = [2, 32], strides = [1, 1]} : vector<2x128xf32> to vector<2x32xf32>
    %1070 = math.tanh %1069 : vector<2x32xf32>
    %1071 = vector.extract_strided_slice %1052 {offsets = [0, 96], sizes = [2, 32], strides = [1, 1]} : vector<2x128xf32> to vector<2x32xf32>
    %cst_359 = arith.constant 5.000000e-01 : f32
    %1072 = vector.broadcast %cst_359 : f32 to vector<2x32xf32>
    %1073 = arith.mulf %1072, %1071 : vector<2x32xf32>
    %1074 = math.tanh %1073 : vector<2x32xf32>
    %cst_360 = arith.constant 5.000000e-01 : f32
    %1075 = vector.broadcast %cst_360 : f32 to vector<2x32xf32>
    %1076 = arith.mulf %1075, %1074 : vector<2x32xf32>
    %cst_361 = arith.constant 5.000000e-01 : f32
    %1077 = vector.broadcast %cst_361 : f32 to vector<2x32xf32>
    %1078 = arith.addf %1076, %1077 : vector<2x32xf32>
    %1079 = arith.mulf %1068, %1043 : vector<2x32xf32>
    %1080 = arith.mulf %1060, %1070 : vector<2x32xf32>
    %1081 = arith.addf %1079, %1080 : vector<2x32xf32>
    %1082 = math.tanh %1081 : vector<2x32xf32>
    %1083 = arith.mulf %1078, %1082 : vector<2x32xf32>
    %1084 = vector.extract_strided_slice %4 {offsets = [10, 0], sizes = [2, 32], strides = [1, 1]} : vector<16x32xf32> to vector<2x32xf32>
    %1085 = vector.extract_strided_slice %6 {offsets = [10, 0], sizes = [2, 32], strides = [1, 1]} : vector<16x32xf32> to vector<2x32xf32>
    %1086 = arith.mulf %1084, %1083 : vector<2x32xf32>
    %1087 = arith.mulf %1085, %1040 : vector<2x32xf32>
    %1088 = arith.addf %1086, %1087 : vector<2x32xf32>
    %1089 = arith.mulf %1084, %1081 : vector<2x32xf32>
    %1090 = arith.mulf %1085, %1043 : vector<2x32xf32>
    %1091 = arith.addf %1089, %1090 : vector<2x32xf32>
    %1092 = vector.extract_strided_slice %1086 {offsets = [0, 0], sizes = [2, 16], strides = [1, 1]} : vector<2x32xf32> to vector<2x16xf32>
    %c10_362 = arith.constant 10 : index
    %c0_363 = arith.constant 0 : index
    %1093 = vector.load %arg5[%c10_362, %c0_363] : memref<16x128xf32, #tpu.memory_space<vmem>>, vector<2x16xf32>
    tpu.vector_store %arg5[%c10_362, %c0_363], %1092 {strides = array<i32>} : memref<16x128xf32, #tpu.memory_space<vmem>>, vector<2x16xf32>,
    %1094 = vector.extract_strided_slice %1086 {offsets = [0, 16], sizes = [2, 16], strides = [1, 1]} : vector<2x32xf32> to vector<2x16xf32>
    %c4_364 = arith.constant 4 : index
    %c16_365 = arith.constant 16 : index
    %1095 = vector.load %arg5[%c4_364, %c16_365] : memref<16x128xf32, #tpu.memory_space<vmem>>, vector<2x16xf32>
    tpu.vector_store %arg5[%c4_364, %c16_365], %1094 {strides = array<i32>} : memref<16x128xf32, #tpu.memory_space<vmem>>, vector<2x16xf32>,
    %1096 = vector.extract_strided_slice %800 {offsets = [12, 0], sizes = [2, 128], strides = [1, 1]} : vector<16x128xf32> to vector<2x128xf32>
    %1097 = vector.extract_strided_slice %803 {offsets = [2, 0], sizes = [2, 128], strides = [1, 1]} : vector<16x128xf32> to vector<2x128xf32>
    %1098 = arith.addf %1096, %1097 : vector<2x128xf32>
    %cst_366 = arith.constant dense<0.000000e+00> : vector<2x128xf32>
    %1099 = tpu.matmul %1088, %805, %cst_366 {dimension_numbers = #tpu.dot_dimension_numbers<[1], [0], [0], [1], [0, 0, 1, 1], [], []>} : vector<2x32xf32>, vector<32x128xf32>, vector<2x128xf32> -> vector<2x128xf32>
    %1100 = arith.addf %1098, %1099 : vector<2x128xf32>
    %1101 = vector.extract_strided_slice %1100 {offsets = [0, 0], sizes = [2, 32], strides = [1, 1]} : vector<2x128xf32> to vector<2x32xf32>
    %cst_367 = arith.constant 5.000000e-01 : f32
    %1102 = vector.broadcast %cst_367 : f32 to vector<2x32xf32>
    %1103 = arith.mulf %1102, %1101 : vector<2x32xf32>
    %1104 = math.tanh %1103 : vector<2x32xf32>
    %cst_368 = arith.constant 5.000000e-01 : f32
    %1105 = vector.broadcast %cst_368 : f32 to vector<2x32xf32>
    %1106 = arith.mulf %1105, %1104 : vector<2x32xf32>
    %cst_369 = arith.constant 5.000000e-01 : f32
    %1107 = vector.broadcast %cst_369 : f32 to vector<2x32xf32>
    %1108 = arith.addf %1106, %1107 : vector<2x32xf32>
    %1109 = vector.extract_strided_slice %1100 {offsets = [0, 32], sizes = [2, 32], strides = [1, 1]} : vector<2x128xf32> to vector<2x32xf32>
    %cst_370 = arith.constant 5.000000e-01 : f32
    %1110 = vector.broadcast %cst_370 : f32 to vector<2x32xf32>
    %1111 = arith.mulf %1110, %1109 : vector<2x32xf32>
    %1112 = math.tanh %1111 : vector<2x32xf32>
    %cst_371 = arith.constant 5.000000e-01 : f32
    %1113 = vector.broadcast %cst_371 : f32 to vector<2x32xf32>
    %1114 = arith.mulf %1113, %1112 : vector<2x32xf32>
    %cst_372 = arith.constant 5.000000e-01 : f32
    %1115 = vector.broadcast %cst_372 : f32 to vector<2x32xf32>
    %1116 = arith.addf %1114, %1115 : vector<2x32xf32>
    %1117 = vector.extract_strided_slice %1100 {offsets = [0, 64], sizes = [2, 32], strides = [1, 1]} : vector<2x128xf32> to vector<2x32xf32>
    %1118 = math.tanh %1117 : vector<2x32xf32>
    %1119 = vector.extract_strided_slice %1100 {offsets = [0, 96], sizes = [2, 32], strides = [1, 1]} : vector<2x128xf32> to vector<2x32xf32>
    %cst_373 = arith.constant 5.000000e-01 : f32
    %1120 = vector.broadcast %cst_373 : f32 to vector<2x32xf32>
    %1121 = arith.mulf %1120, %1119 : vector<2x32xf32>
    %1122 = math.tanh %1121 : vector<2x32xf32>
    %cst_374 = arith.constant 5.000000e-01 : f32
    %1123 = vector.broadcast %cst_374 : f32 to vector<2x32xf32>
    %1124 = arith.mulf %1123, %1122 : vector<2x32xf32>
    %cst_375 = arith.constant 5.000000e-01 : f32
    %1125 = vector.broadcast %cst_375 : f32 to vector<2x32xf32>
    %1126 = arith.addf %1124, %1125 : vector<2x32xf32>
    %1127 = arith.mulf %1116, %1091 : vector<2x32xf32>
    %1128 = arith.mulf %1108, %1118 : vector<2x32xf32>
    %1129 = arith.addf %1127, %1128 : vector<2x32xf32>
    %1130 = math.tanh %1129 : vector<2x32xf32>
    %1131 = arith.mulf %1126, %1130 : vector<2x32xf32>
    %1132 = vector.extract_strided_slice %4 {offsets = [12, 0], sizes = [2, 32], strides = [1, 1]} : vector<16x32xf32> to vector<2x32xf32>
    %1133 = vector.extract_strided_slice %6 {offsets = [12, 0], sizes = [2, 32], strides = [1, 1]} : vector<16x32xf32> to vector<2x32xf32>
    %1134 = arith.mulf %1132, %1131 : vector<2x32xf32>
    %1135 = arith.mulf %1133, %1088 : vector<2x32xf32>
    %1136 = arith.addf %1134, %1135 : vector<2x32xf32>
    %1137 = arith.mulf %1132, %1129 : vector<2x32xf32>
    %1138 = arith.mulf %1133, %1091 : vector<2x32xf32>
    %1139 = arith.addf %1137, %1138 : vector<2x32xf32>
    %1140 = vector.extract_strided_slice %1134 {offsets = [0, 0], sizes = [2, 16], strides = [1, 1]} : vector<2x32xf32> to vector<2x16xf32>
    %c12_376 = arith.constant 12 : index
    %c0_377 = arith.constant 0 : index
    %1141 = vector.load %arg5[%c12_376, %c0_377] : memref<16x128xf32, #tpu.memory_space<vmem>>, vector<2x16xf32>
    tpu.vector_store %arg5[%c12_376, %c0_377], %1140 {strides = array<i32>} : memref<16x128xf32, #tpu.memory_space<vmem>>, vector<2x16xf32>,
    %1142 = vector.extract_strided_slice %1134 {offsets = [0, 16], sizes = [2, 16], strides = [1, 1]} : vector<2x32xf32> to vector<2x16xf32>
    %c2_378 = arith.constant 2 : index
    %c16_379 = arith.constant 16 : index
    %1143 = vector.load %arg5[%c2_378, %c16_379] : memref<16x128xf32, #tpu.memory_space<vmem>>, vector<2x16xf32>
    tpu.vector_store %arg5[%c2_378, %c16_379], %1142 {strides = array<i32>} : memref<16x128xf32, #tpu.memory_space<vmem>>, vector<2x16xf32>,
    %1144 = vector.extract_strided_slice %800 {offsets = [14, 0], sizes = [2, 128], strides = [1, 1]} : vector<16x128xf32> to vector<2x128xf32>
    %1145 = vector.extract_strided_slice %803 {offsets = [0, 0], sizes = [2, 128], strides = [1, 1]} : vector<16x128xf32> to vector<2x128xf32>
    %1146 = arith.addf %1144, %1145 : vector<2x128xf32>
    %cst_380 = arith.constant dense<0.000000e+00> : vector<2x128xf32>
    %1147 = tpu.matmul %1136, %805, %cst_380 {dimension_numbers = #tpu.dot_dimension_numbers<[1], [0], [0], [1], [0, 0, 1, 1], [], []>} : vector<2x32xf32>, vector<32x128xf32>, vector<2x128xf32> -> vector<2x128xf32>
    %1148 = arith.addf %1146, %1147 : vector<2x128xf32>
    %1149 = vector.extract_strided_slice %1148 {offsets = [0, 0], sizes = [2, 32], strides = [1, 1]} : vector<2x128xf32> to vector<2x32xf32>
    %cst_381 = arith.constant 5.000000e-01 : f32
    %1150 = vector.broadcast %cst_381 : f32 to vector<2x32xf32>
    %1151 = arith.mulf %1150, %1149 : vector<2x32xf32>
    %1152 = math.tanh %1151 : vector<2x32xf32>
    %cst_382 = arith.constant 5.000000e-01 : f32
    %1153 = vector.broadcast %cst_382 : f32 to vector<2x32xf32>
    %1154 = arith.mulf %1153, %1152 : vector<2x32xf32>
    %cst_383 = arith.constant 5.000000e-01 : f32
    %1155 = vector.broadcast %cst_383 : f32 to vector<2x32xf32>
    %1156 = arith.addf %1154, %1155 : vector<2x32xf32>
    %1157 = vector.extract_strided_slice %1148 {offsets = [0, 32], sizes = [2, 32], strides = [1, 1]} : vector<2x128xf32> to vector<2x32xf32>
    %cst_384 = arith.constant 5.000000e-01 : f32
    %1158 = vector.broadcast %cst_384 : f32 to vector<2x32xf32>
    %1159 = arith.mulf %1158, %1157 : vector<2x32xf32>
    %1160 = math.tanh %1159 : vector<2x32xf32>
    %cst_385 = arith.constant 5.000000e-01 : f32
    %1161 = vector.broadcast %cst_385 : f32 to vector<2x32xf32>
    %1162 = arith.mulf %1161, %1160 : vector<2x32xf32>
    %cst_386 = arith.constant 5.000000e-01 : f32
    %1163 = vector.broadcast %cst_386 : f32 to vector<2x32xf32>
    %1164 = arith.addf %1162, %1163 : vector<2x32xf32>
    %1165 = vector.extract_strided_slice %1148 {offsets = [0, 64], sizes = [2, 32], strides = [1, 1]} : vector<2x128xf32> to vector<2x32xf32>
    %1166 = math.tanh %1165 : vector<2x32xf32>
    %1167 = vector.extract_strided_slice %1148 {offsets = [0, 96], sizes = [2, 32], strides = [1, 1]} : vector<2x128xf32> to vector<2x32xf32>
    %cst_387 = arith.constant 5.000000e-01 : f32
    %1168 = vector.broadcast %cst_387 : f32 to vector<2x32xf32>
    %1169 = arith.mulf %1168, %1167 : vector<2x32xf32>
    %1170 = math.tanh %1169 : vector<2x32xf32>
    %cst_388 = arith.constant 5.000000e-01 : f32
    %1171 = vector.broadcast %cst_388 : f32 to vector<2x32xf32>
    %1172 = arith.mulf %1171, %1170 : vector<2x32xf32>
    %cst_389 = arith.constant 5.000000e-01 : f32
    %1173 = vector.broadcast %cst_389 : f32 to vector<2x32xf32>
    %1174 = arith.addf %1172, %1173 : vector<2x32xf32>
    %1175 = arith.mulf %1164, %1139 : vector<2x32xf32>
    %1176 = arith.mulf %1156, %1166 : vector<2x32xf32>
    %1177 = arith.addf %1175, %1176 : vector<2x32xf32>
    %1178 = math.tanh %1177 : vector<2x32xf32>
    %1179 = arith.mulf %1174, %1178 : vector<2x32xf32>
    %1180 = vector.extract_strided_slice %4 {offsets = [14, 0], sizes = [2, 32], strides = [1, 1]} : vector<16x32xf32> to vector<2x32xf32>
    %1181 = vector.extract_strided_slice %6 {offsets = [14, 0], sizes = [2, 32], strides = [1, 1]} : vector<16x32xf32> to vector<2x32xf32>
    %1182 = arith.mulf %1180, %1179 : vector<2x32xf32>
    %1183 = arith.mulf %1181, %1136 : vector<2x32xf32>
    %1184 = arith.addf %1182, %1183 : vector<2x32xf32>
    %1185 = arith.mulf %1180, %1177 : vector<2x32xf32>
    %1186 = arith.mulf %1181, %1139 : vector<2x32xf32>
    %1187 = arith.addf %1185, %1186 : vector<2x32xf32>
    %1188 = vector.extract_strided_slice %1182 {offsets = [0, 0], sizes = [2, 16], strides = [1, 1]} : vector<2x32xf32> to vector<2x16xf32>
    %c14_390 = arith.constant 14 : index
    %c0_391 = arith.constant 0 : index
    %1189 = vector.load %arg5[%c14_390, %c0_391] : memref<16x128xf32, #tpu.memory_space<vmem>>, vector<2x16xf32>
    tpu.vector_store %arg5[%c14_390, %c0_391], %1188 {strides = array<i32>} : memref<16x128xf32, #tpu.memory_space<vmem>>, vector<2x16xf32>,
    %1190 = vector.extract_strided_slice %1182 {offsets = [0, 16], sizes = [2, 16], strides = [1, 1]} : vector<2x32xf32> to vector<2x16xf32>
    %c0_392 = arith.constant 0 : index
    %c16_393 = arith.constant 16 : index
    %1191 = vector.load %arg5[%c0_392, %c16_393] : memref<16x128xf32, #tpu.memory_space<vmem>>, vector<2x16xf32>
    tpu.vector_store %arg5[%c0_392, %c16_393], %1190 {strides = array<i32>} : memref<16x128xf32, #tpu.memory_space<vmem>>, vector<2x16xf32>,
    %c0_394 = arith.constant 0 : index
    %c0_395 = arith.constant 0 : index
    %1192 = vector.load %arg6[%c0_394, %c0_395] : memref<4x32xf32, #tpu.memory_space<vmem>>, vector<2x32xf32>
    tpu.vector_store %arg6[%c0_394, %c0_395], %1184 {strides = array<i32>} : memref<4x32xf32, #tpu.memory_space<vmem>>, vector<2x32xf32>,
    %c2_396 = arith.constant 2 : index
    %c0_397 = arith.constant 0 : index
    %1193 = vector.load %arg6[%c2_396, %c0_397] : memref<4x32xf32, #tpu.memory_space<vmem>>, vector<2x32xf32>
    tpu.vector_store %arg6[%c2_396, %c0_397], %1187 {strides = array<i32>} : memref<4x32xf32, #tpu.memory_space<vmem>>, vector<2x32xf32>,
    return
  }
}

</mosaic_0001>

<bundles_post_ra>
// kernel: tpu_custom_call.1
= control target key start
LH: loop header
LB: loop body
LE: loop exit
PB: predicated region body
PF: predicated region fallthrough
CT: control target
= control target key end

     0   :  { %12 = vsyncpa [#allocation4], 0  ;;  %s3065_s0 = inlined_call_operand.hbm [shape: f32[16,128], index: 0, kind: input, shape index: {}]   ;;  %s3066_s1 = inlined_call_operand.hbm [shape: f32[16,32], index: 1, kind: input, shape index: {}]   ;;  %s3067_s2 = inlined_call_operand.hbm [shape: f32[3,2,128,128], index: 2, kind: input, shape index: {}]   ;;  %s3068_s3 = inlined_call_operand.hbm [shape: f32[3,32,128], index: 3, kind: input, shape index: {}]   ;;  %s3069_s4 = inlined_call_operand.vmem [shape: f32[3,1,128], index: 4, kind: input, shape index: {}]   ;;  %s3070_s5 = inlined_call_operand.hbm [shape: f32[16,128], index: 5, kind: output, shape index: {0}]   ;;  %s3071_s6 = inlined_call_operand.hbm [shape: f32[4,32], index: 6, kind: output, shape index: {1}]  }
   0x1   :  { %13 = vsyncpa [#allocation7], 0 }
   0x2   :  { %14 = vsyncpa [#allocation10], 0 }
   0x3   :  { %15 = vsyncpa [#allocation5], 0 }
   0x4   :  { %16 = vsyncpa [#allocation13], 0  ;;  %s34_s23 = sshll.u32 %s3066_s1, 4  ;;  %s2485_s24 = smov [#allocation6]   ;;  %s35_s23 = int_to_ptr.hbm [resolvable:$true] %s34_s23 }
   0x5   :  { %s36_s25 = sshll.u32 %s2485_s24, 4  ;;  %s21_s28 = sshll.u32 %s3065_s0, 4  ;;  %s37_s25 = int_to_ptr.vmem [resolvable:$true] %s36_s25  ;;  %s22_s28 = int_to_ptr.hbm [resolvable:$true] %s21_s28 }
   0x6   :  { %s2486_s29 = smov 128   ;;  %s2487_s30 = smov 8  }
   0x7   :  { %42 = dma.hbm_to_vmem [thread:$0]  %s35_s23, 256, %s37_s25, [#allocation7], %s2486_s29, %s2486_s29, %s2487_s30  }
   0x8   :  { %s2488_s7 = smov [#allocation3]   ;;  %s47_s1 = sshll.u32 %s3067_s2, 4  ;;  %s48_s1 = int_to_ptr.hbm [resolvable:$true] %s47_s1 }
   0x9   :  { %s23_s8 = sshll.u32 %s2488_s7, 4  ;;  %s60_s12 = sshll.u32 %s3068_s3, 4  ;;  %s24_s8 = int_to_ptr.vmem [resolvable:$true] %s23_s8  ;;  %s61_s12 = int_to_ptr.hbm [resolvable:$true] %s60_s12 }
   0xa   :  { %29 = dma.hbm_to_vmem [thread:$0]  %s22_s28, 256, %s24_s8, [#allocation4], %s2486_s29, %s2486_s29, %s2487_s30  }
   0xb   :  { %s2489_s13 = smov [#allocation8]   ;;  %s2490_s15 = smov [#allocation9]  }
   0xc   :  { %s49_s14 = sshll.u32 %s2489_s13, 4  ;;  %s62_s2 = sshll.u32 %s2490_s15, 4  ;;  %s50_s14 = int_to_ptr.vmem [resolvable:$true] %s49_s14  ;;  %s63_s2 = int_to_ptr.vmem [resolvable:$true] %s62_s2 }
   0xd   :  { %55 = dma.hbm_to_vmem [thread:$0]  %s48_s1, 12288, %s50_s14, [#allocation7], %s2486_s29, %s2486_s29, %s2487_s30  }
   0xe   :  { %68 = dma.hbm_to_vmem [thread:$0]  %s61_s12, 1536, %s63_s2, [#allocation10], %s2486_s29, %s2486_s29, %s2487_s30  }
   0xf   :  { %2475 = dma.done.wait [#allocation4], 256  }
  0x10   :  { %2476 = vsyncadd [#allocation4], 4294967040 }
  0x11   :  { %2477 = dma.done.wait [#allocation7], 12544  }
  0x12   :  { %2478 = vsyncadd [#allocation7], 4294954752 }
  0x13   :  { %2479 = dma.done.wait [#allocation10], 1536  }
  0x14   :  { %2480 = vsyncadd [#allocation10], 4294965760  ;;  %v112_v0 = vld [vmem:[#allocation8 + $0x78] sm:$0xff]  ;;  %v111_v2 = vld [vmem:[#allocation8 + $0x70] sm:$0xff]  ;;  %v2491_v4 = vmov 0.0   ;;  %s2492_s17 = smov 64  }
  0x15   :  { %v156_v1 = vld [vmem:[#allocation8 + $0xf8] sm:$0xff]  ;;  %117 = vmatpush.msra.mxu0 %v112_v0  ;;  %v155_v3 = vld [vmem:[#allocation8 + $0xf0] sm:$0xff]  ;;  %87 = vst [vmem:[#allocation2] sm:$0xff] %v2491_v4  ;;  %v110_v5 = vld [vmem:[#allocation8 + $0x68] sm:$0xff]  ;;  %s2493_s18 = smov 32   ;;  %s2494_s19 = smov 96  }
  0x16   :  { %157 = vmatpush.msra.mxu1 %v156_v1  ;;  %v154_v6 = vld [vmem:[#allocation8 + $0xe8] sm:$0xff]  ;;  %88 = vst [vmem:[#allocation2 + $0x8] sm:$0xff] %v2491_v4  ;;  %v109_v7 = vld [vmem:[#allocation8 + $0x60] sm:$0xff]  ;;  %v108_v9 = vld [vmem:[#allocation8 + $0x58] sm:$0xff]  ;;  %vm248_vm0 = vcmask 123904   ;;  %vm250_vm1 = vcmask 255104  }
  0x17   :  { %118 = vmatpush.msra.mxu0 %v111_v2  ;;  %89 = vst [vmem:[#allocation11] sm:$0xff] %v2491_v4  ;;  %v153_v8 = vld [vmem:[#allocation8 + $0xe0] sm:$0xff]  ;;  %v152_v10 = vld [vmem:[#allocation8 + $0xd8] sm:$0xff]  ;;  %v107_v11 = vld [vmem:[#allocation8 + $0x50] sm:$0xff]  ;;  %vm188_vm2 = vcmask 261120   ;;  %vm326_vm3 = vcmask 125954  }
  0x18   :  { %158 = vmatpush.msra.mxu1 %v155_v3  ;;  %90 = vst [vmem:[#allocation11 + $0x8] sm:$0xff] %v2491_v4  ;;  %v151_v12 = vld [vmem:[#allocation8 + $0xd0] sm:$0xff]  ;;  %v106_v13 = vld [vmem:[#allocation8 + $0x48] sm:$0xff]  ;;  %v2560_v15 = vld [vmem:[#allocation9 + $0x18] sm:$0xff]  ;;  %vm328_vm4 = vcmask 257154   ;;  %vm402_vm5 = vcmask 128004  }
  0x19   :  { %119 = vmatpush.msra.mxu0 %v110_v5  ;;  %v150_v14 = vld [vmem:[#allocation8 + $0xc8] sm:$0xff]  ;;  %v2562_v16 = vld [vmem:[#allocation9 + $0x10] sm:$0xff]  ;;  %v105_v17 = vld [vmem:[#allocation8 + $0x40] sm:$0xff]  ;;  %204 = vmatpush.msra.mxu2 %v2560_v15  ;;  %vm404_vm6 = vcmask 259204   ;;  %vm478_vm7 = vcmask 130054   ;;  %vm480_vm8 = vcmask 261254  }
  0x1a   :  { %159 = vmatpush.msra.mxu1 %v154_v6  ;;  %v149_v18 = vld [vmem:[#allocation8 + $0xc0] sm:$0xff]  ;;  %270 = vmatpush.msra.mxu3 %v2560_v15  ;;  %v2566_v19 = vld [vmem:[#allocation9 + $0x8] sm:$0xff]  ;;  %v104_v20 = vld [vmem:[#allocation8 + $0x38] sm:$0xff]  ;;  %vm2106_vm9 = vcmask 261126   ;;  %s2115_s27 = sshll.u32 %s3070_s5, 4  ;;  %s2496_s28 = smov [#allocation12]   ;;  %s2116_s27 = int_to_ptr.hbm [resolvable:$true] %s2115_s27 }
  0x1b   :  { %120 = vmatpush.msra.mxu0 %v109_v7  ;;  %v148_v21 = vld [vmem:[#allocation8 + $0xb8] sm:$0xff]  ;;  %205 = vmatpush.msra.mxu2 %v2562_v16  ;;  %v2570_v22 = vld [vmem:[#allocation9] sm:$0xff]  ;;  %v103_v23 = vld [vmem:[#allocation8 + $0x30] sm:$0xff]  ;;  %s2127_s7 = sshll.u32 %s2496_s28, 4  ;;  %s2129_s10 = sshll.u32 %s3071_s6, 4  ;;  %s2128_s7 = int_to_ptr.vmem [resolvable:$true] %s2127_s7  ;;  %s2130_s10 = int_to_ptr.hbm [resolvable:$true] %s2129_s10 }
  0x1c   :  { %160 = vmatpush.msra.mxu1 %v153_v8  ;;  %271 = vmatpush.msra.mxu3 %v2562_v16  ;;  %v147_v24 = vld [vmem:[#allocation8 + $0xb0] sm:$0xff]  ;;  %v102_v25 = vld [vmem:[#allocation8 + $0x28] sm:$0xff]  ;;  %v101_v27 = vld [vmem:[#allocation8 + $0x20] sm:$0xff] }
  0x1d   :  { %121 = vmatpush.msra.mxu0 %v108_v9  ;;  %206 = vmatpush.msra.mxu2 %v2566_v19  ;;  %v146_v26 = vld [vmem:[#allocation8 + $0xa8] sm:$0xff]  ;;  %v145_v28 = vld [vmem:[#allocation8 + $0xa0] sm:$0xff]  ;;  %v100_v29 = vld [vmem:[#allocation8 + $0x18] sm:$0xff] }
  0x1e   :  { %161 = vmatpush.msra.mxu1 %v152_v10  ;;  %272 = vmatpush.msra.mxu3 %v2566_v19  ;;  %v144_v30 = vld [vmem:[#allocation8 + $0x98] sm:$0xff]  ;;  %v99_v31 = vld [vmem:[#allocation8 + $0x10] sm:$0xff]  ;;  %v98_v33 = vld [vmem:[#allocation8 + $0x8] sm:$0xff] }
  0x1f   :  { %122 = vmatpush.msra.mxu0 %v107_v11  ;;  %207 = vmatpush.msra.mxu2 %v2570_v22  ;;  %v143_v32 = vld [vmem:[#allocation8 + $0x90] sm:$0xff]  ;;  %v142_v34 = vld [vmem:[#allocation8 + $0x88] sm:$0xff]  ;;  %v97_v35 = vld [vmem:[#allocation8] sm:$0xff] }
  0x20   :  { %162 = vmatpush.msra.mxu1 %v151_v12  ;;  %273 = vmatpush.msra.mxu3 %v2570_v22  ;;  %v141_v36 = vld [vmem:[#allocation8 + $0x80] sm:$0xff]  ;;  %v96_v38 = vld [vmem:[#allocation3 + $0x8] sm:$0xff]  ;;  %v2181_v41 = vld [vmem:[%s3069_s4] ss:$0 sm:$0xff] }
  0x21   :  { %123 = vmatpush.msra.mxu0 %v106_v13  ;;  %208 = vmatmul.f32.vlgmr.msra.gmra.mxu2 %v2491_v4  ;;  %v95_v37 = vld [vmem:[#allocation3] sm:$0xff]  ;;  %v2603_v1 = vld [vmem:[#allocation6] sm:$0xff] }
  0x22   :  { %163 = vmatpush.msra.mxu1 %v150_v14  ;;  %422 = vmatpush.msrb.mxu3 %v2560_v15  ;;  %v2606_v2 = vsub.f32 1.0, %v2603_v1 }
  0x23   :  { %124 = vmatpush.msra.mxu0 %v105_v17  ;;  %346 = vmatpush.msrb.mxu2 %v2560_v15 }
  0x24   :  { %164 = vmatpush.msra.mxu1 %v149_v18  ;;  %423 = vmatpush.msrb.mxu3 %v2562_v16  ;;  %v2609_v3 = vmul.f32 0.0, %v2606_v2 }
  0x25   :  { %125 = vmatpush.msra.mxu0 %v104_v20  ;;  %347 = vmatpush.msrb.mxu2 %v2562_v16 }
  0x26   :  { %165 = vmatpush.msra.mxu1 %v148_v21  ;;  %424 = vmatpush.msrb.mxu3 %v2566_v19 }
  0x27   :  { %126 = vmatpush.msra.mxu0 %v103_v23  ;;  %348 = vmatpush.msrb.mxu2 %v2566_v19 }
  0x28   :  { %166 = vmatpush.msra.mxu1 %v147_v24  ;;  %425 = vmatpush.msrb.mxu3 %v2570_v22 }
  0x29   :  { %127 = vmatpush.msra.mxu0 %v102_v25  ;;  %349 = vmatpush.msrb.mxu2 %v2570_v22 }
  0x2a   :  { %167 = vmatpush.msra.mxu1 %v146_v26 }
  0x2b   :  { %128 = vmatpush.msra.mxu0 %v101_v27  ;;  %502 = vmatpush.msra.mxu2 %v2560_v15 }
  0x2c   :  { %168 = vmatpush.msra.mxu1 %v145_v28 }
  0x2d   :  { %129 = vmatpush.msra.mxu0 %v100_v29  ;;  %503 = vmatpush.msra.mxu2 %v2562_v16 }
  0x2e   :  { %169 = vmatpush.msra.mxu1 %v144_v30 }
  0x2f   :  { %130 = vmatpush.msra.mxu0 %v99_v31  ;;  %504 = vmatpush.msra.mxu2 %v2566_v19 }
  0x30   :  { %170 = vmatpush.msra.mxu1 %v143_v32 }
  0x31   :  { %131 = vmatpush.msra.mxu0 %v98_v33  ;;  %505 = vmatpush.msra.mxu2 %v2570_v22 }
  0x32   :  { %171 = vmatpush.msra.mxu1 %v142_v34 }
  0x33   :  { %132 = vmatpush.msra.mxu0 %v97_v35 }
  0x34   :  { %172 = vmatpush.msra.mxu1 %v141_v36  ;;  %133 = vmatmul.f32.vlgmr.msra.gmra.mxu0 %v95_v37 }
  0x35   :  { %173 = vmatmul.f32.vlgmr.msra.gmra.mxu1 %v95_v37 }
  0x3c   :  { %136 = vmatmul.f32.gmra.mxu0 %v96_v38 }
  0x3d   :  { %176 = vmatmul.f32.gmra.mxu1 %v96_v38 }
  0xa4   :  { %v209_v49 = vpop.f32.mrf.mxu2 }
  0xb1   :  { %v134_v39 = vpop.f32.mrf.mxu0 }
  0xb2   :  { %v174_v40 = vpop.f32.mrf.mxu1  ;;  %v135_v42 = vadd.f32 %v2181_v41, %v134_v39 }
  0xb3   :  { %v483_v45 = vrot.slane %v174_v40, 6  ;;  %v556_v46 = vrot.slane %v174_v40, 2 }
  0xb9   :  { %v137_v43 = vpop.f32.mrf.mxu0 }
  0xba   :  { %v177_v44 = vpop.f32.mrf.mxu1  ;;  %v138_v47 = vadd.f32 %v2181_v41, %v137_v43 }
  0xbb   :  { %v185_v48 = vrot.slane %v177_v44, 6  ;;  %v252_v14 = vrot.slane %v177_v44, 2 }
  0xbc   :  { %v2592_v50 = vadd.f32 %v556_v46, %v138_v47  ;;  %v2596_v52 = vadd.f32 %v483_v45, %v138_v47 }
  0xbd   :  { %v2594_v51 = vadd.f32 %v185_v48, %v135_v42  ;;  %v2624_v18 = vadd.f32 %v252_v14, %v135_v42 }
  0xbf   :  { %v212_v53 = vadd.f32 %v209_v49, %v2594_v51 }
  0xc1   :  { %2184 = vtanh.f32 %v212_v53  ;;  %v213_v55 = vmul.f32 0.5, %v212_v53 }
  0xc3   :  { %2186 = vtanh.f32 %v213_v55 }
  0xc7   :  { %v2185_v54 = vpop.eup %2184 }
  0xc8   :  { %220 = vrot.lane.b32.xlu0 %v2185_v54, %s2492_s17 }
  0xc9   :  { %v2187_v56 = vpop.eup %2186 }
  0xca   :  { %v215_v57 = vmul.f32 0.5, %v2187_v56 }
  0xcc   :  { %v216_v58 = vadd.f32 0.5, %v215_v57 }
  0xce   :  { %v218_v61 = vmul.f32 0.0, %v216_v58 }
 0x13a   :  { %v221_v59 = vpop.permute.xlu0 %220 }
 0x13b   :  { %v223_v60 = vmul.f32 %v221_v59, %v216_v58 }
 0x13d   :  { %225 = vrot.lane.b32.xlu0 %v223_v60, %s2493_s18 }
 0x1af   :  { %v226_v62 = vpop.permute.xlu0 %225 }
 0x1b0   :  { %v228_v63 = vadd.f32 %v226_v62, %v218_v61 }
 0x1b2   :  { %2188 = vtanh.f32 %v228_v63  ;;  %243 = vrot.lane.b32.xlu2 %v228_v63, %s2494_s19 }
 0x1b8   :  { %v2189_v0 = vpop.eup %2188 }
 0x1b9   :  { %231 = vrot.lane.b32.xlu1 %v2189_v0, %s2492_s17 }
 0x20c   :  { %v244_v5 = vpop.permute.xlu2 %243 }
 0x20d   :  { %v246_v6 = vmul.f32 %v244_v5, %v2603_v1 }
 0x20f   :  { %v247_v7 = vadd.f32 %v246_v6, %v2609_v3 }
 0x211   :  { %v288_v8 = vrot.slane %v247_v7, 6 }
 0x213   :  { %289 = vrot.lane.b32.xlu0 %v288_v8, %s2493_s18  ;;  %v324_v38 = vmul.f32 %v288_v8, %v2606_v2 }
 0x22b   :  { %v232_v9 = vpop.permute.xlu1 %231 }
 0x22c   :  { %v234_v10 = vmul.f32 %v232_v9, %v216_v58 }
 0x22e   :  { %236 = vrot.lane.b32.xlu1 %v234_v10, %s2493_s18 }
 0x285   :  { %v290_v30 = vpop.permute.xlu0 %289 }
 0x2a0   :  { %v237_v11 = vpop.permute.xlu1 %236 }
 0x2a1   :  { %v239_v12 = vmul.f32 %v237_v11, %v2603_v1 }
 0x2a3   :  { %249 = vst.msk [vmem:[#allocation2] sm:$0x3] %vm248_vm0, %v239_v12  ;;  %v241_v13 = vadd.f32 %v2609_v3, %v239_v12 }
 0x2a4   :  { %251 = vst.msk [vmem:[#allocation2 + $0xe] sm:$0x3] %vm250_vm1, %v239_v12 }
 0x2a5   :  { %2146 = vmatmul.msk.f32.vlgmr.msra.gmra.mxu3 %vm188_vm2, %v241_v13  ;;  %v314_v42 = vrot.slane %v241_v13, 6 }
 0x2a6   :  { %574 = vmatpush.msra.mxu3 %v2560_v15 }
 0x2a7   :  { %v316_v44 = vmul.f32 %v314_v42, %v2606_v2 }
 0x2a8   :  { %575 = vmatpush.msra.mxu3 %v2562_v16 }
 0x2aa   :  { %576 = vmatpush.msra.mxu3 %v2566_v19 }
 0x2ac   :  { %577 = vmatpush.msra.mxu3 %v2570_v22 }
 0x328   :  { %v275_v17 = vpop.f32.mrf.mxu3 }
 0x329   :  { %v279_v20 = vrot.slane %v275_v17, 6 }
 0x32b   :  { %v281_v21 = vadd.f32 %v279_v20, %v2624_v18 }
 0x32d   :  { %2190 = vtanh.f32 %v281_v21  ;;  %v282_v24 = vmul.f32 0.5, %v281_v21 }
 0x32f   :  { %2192 = vtanh.f32 %v282_v24 }
 0x333   :  { %v2191_v23 = vpop.eup %2190 }
 0x334   :  { %294 = vrot.lane.b32.xlu2 %v2191_v23, %s2492_s17 }
 0x335   :  { %v2193_v25 = vpop.eup %2192 }
 0x336   :  { %v284_v26 = vmul.f32 0.5, %v2193_v25 }
 0x338   :  { %v285_v27 = vadd.f32 0.5, %v284_v26 }
 0x33a   :  { %v292_v31 = vmul.f32 %v290_v30, %v285_v27 }
 0x38e   :  { %v295_v28 = vpop.permute.xlu2 %294 }
 0x38f   :  { %v297_v29 = vmul.f32 %v295_v28, %v285_v27 }
 0x391   :  { %299 = vrot.lane.b32.xlu1 %v297_v29, %s2493_s18 }
 0x403   :  { %v300_v32 = vpop.permute.xlu1 %299 }
 0x404   :  { %v302_v33 = vadd.f32 %v300_v32, %v292_v31 }
 0x406   :  { %2194 = vtanh.f32 %v302_v33  ;;  %319 = vrot.lane.b32.xlu1 %v302_v33, %s2494_s19 }
 0x40c   :  { %v2195_v34 = vpop.eup %2194 }
 0x40d   :  { %305 = vrot.lane.b32.xlu2 %v2195_v34, %s2492_s17 }
 0x467   :  { %v306_v35 = vpop.permute.xlu2 %305 }
 0x468   :  { %v308_v36 = vmul.f32 %v306_v35, %v285_v27 }
 0x46a   :  { %310 = vrot.lane.b32.xlu0 %v308_v36, %s2493_s18 }
 0x478   :  { %v320_v37 = vpop.permute.xlu1 %319 }
 0x479   :  { %v322_v39 = vmul.f32 %v320_v37, %v2603_v1 }
 0x47b   :  { %v325_v40 = vadd.f32 %v324_v38, %v322_v39 }
 0x47d   :  { %v364_v41 = vrot.slane %v325_v40, 6 }
 0x47f   :  { %365 = vrot.lane.b32.xlu0 %v364_v41, %s2493_s18  ;;  %v400_v8 = vmul.f32 %v364_v41, %v2606_v2 }
 0x4dc   :  { %v311_v43 = vpop.permute.xlu0 %310 }
 0x4dd   :  { %v313_v45 = vmul.f32 %v311_v43, %v2603_v1 }
 0x4df   :  { %v317_v46 = vadd.f32 %v316_v44, %v313_v45  ;;  %327 = vst.msk [vmem:[#allocation2] sm:$0xc] %vm326_vm3, %v313_v45 }
 0x4e0   :  { %329 = vst.msk [vmem:[#allocation2 + $0xa] sm:$0xc] %vm328_vm4, %v313_v45 }
 0x4e1   :  { %v331_v47 = vrot.slane %v317_v46, 2  ;;  %v390_v12 = vrot.slane %v317_v46, 6 }
 0x4e3   :  { %2147 = vmatmul.msk.f32.vlgmr.msrb.gmra.mxu2 %vm188_vm2, %v331_v47  ;;  %v392_v14 = vmul.f32 %v390_v12, %v2606_v2 }
 0x4e4   :  { %648 = vmatpush.msrb.mxu2 %v2560_v15 }
 0x4e6   :  { %649 = vmatpush.msrb.mxu2 %v2562_v16 }
 0x4e8   :  { %650 = vmatpush.msrb.mxu2 %v2566_v19 }
 0x4ea   :  { %651 = vmatpush.msrb.mxu2 %v2570_v22 }
 0x4f1   :  { %v366_v61 = vpop.permute.xlu0 %365 }
 0x566   :  { %v351_v48 = vpop.f32.mrf.mxu2 }
 0x567   :  { %v355_v49 = vrot.slane %v351_v48, 4 }
 0x569   :  { %v357_v53 = vadd.f32 %v355_v49, %v2594_v51 }
 0x56b   :  { %2196 = vtanh.f32 %v357_v53  ;;  %v358_v55 = vmul.f32 0.5, %v357_v53 }
 0x56d   :  { %2198 = vtanh.f32 %v358_v55 }
 0x571   :  { %v2197_v54 = vpop.eup %2196 }
 0x572   :  { %370 = vrot.lane.b32.xlu2 %v2197_v54, %s2492_s17 }
 0x573   :  { %v2199_v56 = vpop.eup %2198 }
 0x574   :  { %v360_v57 = vmul.f32 0.5, %v2199_v56 }
 0x576   :  { %v361_v58 = vadd.f32 0.5, %v360_v57 }
 0x578   :  { %v368_v62 = vmul.f32 %v366_v61, %v361_v58 }
 0x5cc   :  { %v371_v59 = vpop.permute.xlu2 %370 }
 0x5cd   :  { %v373_v60 = vmul.f32 %v371_v59, %v361_v58 }
 0x5cf   :  { %375 = vrot.lane.b32.xlu1 %v373_v60, %s2493_s18 }
 0x641   :  { %v376_v63 = vpop.permute.xlu1 %375 }
 0x642   :  { %v378_v0 = vadd.f32 %v376_v63, %v368_v62 }
 0x644   :  { %2200 = vtanh.f32 %v378_v0  ;;  %395 = vrot.lane.b32.xlu1 %v378_v0, %s2494_s19 }
 0x64a   :  { %v2201_v51 = vpop.eup %2200 }
 0x64b   :  { %381 = vrot.lane.b32.xlu2 %v2201_v51, %s2492_s17  ;;  %v2682_v51 = vld [vmem:[#allocation6 + $0x8] sm:$0xff] }
 0x6a5   :  { %v382_v5 = vpop.permute.xlu2 %381 }
 0x6a6   :  { %v384_v6 = vmul.f32 %v382_v5, %v361_v58  ;;  %v2685_v5 = vsub.f32 1.0, %v2682_v51 }
 0x6a8   :  { %386 = vrot.lane.b32.xlu0 %v384_v6, %s2493_s18 }
 0x6b6   :  { %v396_v7 = vpop.permute.xlu1 %395 }
 0x6b7   :  { %v398_v9 = vmul.f32 %v396_v7, %v2603_v1 }
 0x6b9   :  { %v401_v10 = vadd.f32 %v400_v8, %v398_v9 }
 0x6bb   :  { %v440_v11 = vrot.slane %v401_v10, 6 }
 0x6bd   :  { %441 = vrot.lane.b32.xlu0 %v440_v11, %s2493_s18  ;;  %v476_v36 = vmul.f32 %v440_v11, %v2606_v2 }
 0x71a   :  { %v387_v13 = vpop.permute.xlu0 %386 }
 0x71b   :  { %v389_v17 = vmul.f32 %v387_v13, %v2603_v1 }
 0x71d   :  { %v393_v20 = vadd.f32 %v392_v14, %v389_v17  ;;  %403 = vst.msk [vmem:[#allocation2] sm:$0x30] %vm402_vm5, %v389_v17 }
 0x71e   :  { %405 = vst.msk [vmem:[#allocation2 + $0x6] sm:$0x30] %vm404_vm6, %v389_v17 }
 0x71f   :  { %v407_v21 = vrot.slane %v393_v20, 4  ;;  %v466_v40 = vrot.slane %v393_v20, 6 }
 0x721   :  { %2148 = vmatmul.msk.f32.vlgmr.msrb.gmra.mxu3 %vm188_vm2, %v407_v21  ;;  %v468_v42 = vmul.f32 %v466_v40, %v2606_v2 }
 0x722   :  { %722 = vmatpush.msrb.mxu3 %v2560_v15 }
 0x724   :  { %723 = vmatpush.msrb.mxu3 %v2562_v16 }
 0x726   :  { %724 = vmatpush.msrb.mxu3 %v2566_v19 }
 0x728   :  { %725 = vmatpush.msrb.mxu3 %v2570_v22 }
 0x72f   :  { %v442_v16 = vpop.permute.xlu0 %441 }
 0x7a4   :  { %v427_v23 = vpop.f32.mrf.mxu3 }
 0x7a5   :  { %v431_v24 = vrot.slane %v427_v23, 2 }
 0x7a7   :  { %v433_v25 = vadd.f32 %v431_v24, %v2624_v18 }
 0x7a9   :  { %2202 = vtanh.f32 %v433_v25  ;;  %v434_v27 = vmul.f32 0.5, %v433_v25 }
 0x7ab   :  { %2204 = vtanh.f32 %v434_v27 }
 0x7af   :  { %v2203_v26 = vpop.eup %2202 }
 0x7b0   :  { %446 = vrot.lane.b32.xlu2 %v2203_v26, %s2492_s17 }
 0x7b1   :  { %v2205_v28 = vpop.eup %2204 }
 0x7b2   :  { %v436_v29 = vmul.f32 0.5, %v2205_v28 }
 0x7b4   :  { %v437_v30 = vadd.f32 0.5, %v436_v29 }
 0x7b6   :  { %v444_v19 = vmul.f32 %v442_v16, %v437_v30 }
 0x80a   :  { %v447_v15 = vpop.permute.xlu2 %446 }
 0x80b   :  { %v449_v31 = vmul.f32 %v447_v15, %v437_v30 }
 0x80d   :  { %451 = vrot.lane.b32.xlu1 %v449_v31, %s2493_s18 }
 0x87f   :  { %v452_v22 = vpop.permute.xlu1 %451 }
 0x880   :  { %v454_v32 = vadd.f32 %v452_v22, %v444_v19 }
 0x882   :  { %2206 = vtanh.f32 %v454_v32  ;;  %471 = vrot.lane.b32.xlu1 %v454_v32, %s2494_s19 }
 0x888   :  { %v2207_v18 = vpop.eup %2206 }
 0x889   :  { %457 = vrot.lane.b32.xlu2 %v2207_v18, %s2492_s17 }
 0x8e3   :  { %v458_v33 = vpop.permute.xlu2 %457 }
 0x8e4   :  { %v460_v34 = vmul.f32 %v458_v33, %v437_v30 }
 0x8e6   :  { %462 = vrot.lane.b32.xlu0 %v460_v34, %s2493_s18 }
 0x8f4   :  { %v472_v35 = vpop.permute.xlu1 %471 }
 0x8f5   :  { %v474_v37 = vmul.f32 %v472_v35, %v2603_v1 }
 0x8f7   :  { %v477_v38 = vadd.f32 %v476_v36, %v474_v37 }
 0x8f9   :  { %v517_v39 = vrot.slane %v477_v38, 6 }
 0x8fb   :  { %518 = vrot.lane.b32.xlu0 %v517_v39, %s2493_s18  ;;  %v552_v7 = vmul.f32 %v517_v39, %v2685_v5 }
 0x958   :  { %v463_v41 = vpop.permute.xlu0 %462 }
 0x959   :  { %v465_v43 = vmul.f32 %v463_v41, %v2603_v1 }
 0x95b   :  { %v469_v44 = vadd.f32 %v468_v42, %v465_v43  ;;  %479 = vst.msk [vmem:[#allocation2] sm:$0xc0] %vm478_vm7, %v465_v43 }
 0x95c   :  { %481 = vst.msk [vmem:[#allocation2 + $0x2] sm:$0xc0] %vm480_vm8, %v465_v43 }
 0x95d   :  { %v487_v45 = vrot.slane %v469_v44, 6 }
 0x95f   :  { %2149 = vmatmul.msk.f32.vlgmr.msra.gmra.mxu2 %vm188_vm2, %v487_v45  ;;  %v544_v12 = vmul.f32 %v487_v45, %v2685_v5 }
 0x96d   :  { %v519_v58 = vpop.permute.xlu0 %518 }
 0x9e2   :  { %v507_v46 = vpop.f32.mrf.mxu2 }
 0x9e3   :  { %v510_v47 = vadd.f32 %v507_v46, %v2596_v52 }
 0x9e5   :  { %2208 = vtanh.f32 %v510_v47  ;;  %v511_v49 = vmul.f32 0.5, %v510_v47 }
 0x9e7   :  { %2210 = vtanh.f32 %v511_v49 }
 0x9eb   :  { %v2209_v48 = vpop.eup %2208 }
 0x9ec   :  { %523 = vrot.lane.b32.xlu2 %v2209_v48, %s2492_s17 }
 0x9ed   :  { %v2211_v53 = vpop.eup %2210 }
 0x9ee   :  { %v513_v54 = vmul.f32 0.5, %v2211_v53 }
 0x9f0   :  { %v514_v55 = vadd.f32 0.5, %v513_v54 }
 0x9f2   :  { %v521_v59 = vmul.f32 %v519_v58, %v514_v55 }
 0xa46   :  { %v524_v56 = vpop.permute.xlu2 %523 }
 0xa47   :  { %v526_v57 = vmul.f32 %v524_v56, %v514_v55 }
 0xa49   :  { %528 = vrot.lane.b32.xlu1 %v526_v57, %s2493_s18 }
 0xabb   :  { %v529_v60 = vpop.permute.xlu1 %528 }
 0xabc   :  { %v531_v61 = vadd.f32 %v529_v60, %v521_v59 }
 0xabe   :  { %2212 = vtanh.f32 %v531_v61  ;;  %547 = vrot.lane.b32.xlu1 %v531_v61, %s2494_s19 }
 0xac4   :  { %v2213_v62 = vpop.eup %2212 }
 0xac5   :  { %534 = vrot.lane.b32.xlu2 %v2213_v62, %s2492_s17 }
 0xb1f   :  { %v535_v63 = vpop.permute.xlu2 %534 }
 0xb20   :  { %v537_v0 = vmul.f32 %v535_v63, %v514_v55 }
 0xb22   :  { %539 = vrot.lane.b32.xlu0 %v537_v0, %s2493_s18 }
 0xb30   :  { %v548_v6 = vpop.permute.xlu1 %547 }
 0xb31   :  { %v550_v8 = vmul.f32 %v548_v6, %v2682_v51 }
 0xb33   :  { %v553_v9 = vadd.f32 %v552_v7, %v550_v8 }
 0xb35   :  { %v592_v10 = vrot.slane %v553_v9, 6 }
 0xb37   :  { %593 = vrot.lane.b32.xlu0 %v592_v10, %s2493_s18  ;;  %v628_v33 = vmul.f32 %v592_v10, %v2685_v5 }
 0xb94   :  { %v540_v11 = vpop.permute.xlu0 %539 }
 0xb95   :  { %v542_v13 = vmul.f32 %v540_v11, %v2682_v51 }
 0xb97   :  { %v545_v14 = vadd.f32 %v544_v12, %v542_v13  ;;  %554 = vst.msk [vmem:[#allocation2 + $0x8] sm:$0x3] %vm248_vm0, %v542_v13 }
 0xb98   :  { %555 = vst.msk [vmem:[#allocation2 + $0x6] sm:$0x3] %vm250_vm1, %v542_v13 }
 0xb99   :  { %2150 = vmatmul.msk.f32.vlgmr.msra.gmra.mxu3 %vm188_vm2, %v545_v14  ;;  %v618_v37 = vrot.slane %v545_v14, 6 }
 0xb9b   :  { %v620_v39 = vmul.f32 %v618_v37, %v2685_v5  ;;  %v827_v37 = vld [vmem:[#allocation8 + $0x1d8] sm:$0xff] }
 0xba9   :  { %v594_v30 = vpop.permute.xlu0 %593 }
 0xc1c   :  { %v579_v17 = vpop.f32.mrf.mxu3 }
 0xc1d   :  { %v583_v20 = vrot.slane %v579_v17, 6 }
 0xc1f   :  { %v585_v21 = vadd.f32 %v583_v20, %v2592_v50 }
 0xc21   :  { %2214 = vtanh.f32 %v585_v21  ;;  %v586_v24 = vmul.f32 0.5, %v585_v21 }
 0xc23   :  { %2216 = vtanh.f32 %v586_v24 }
 0xc27   :  { %v2215_v23 = vpop.eup %2214 }
 0xc28   :  { %598 = vrot.lane.b32.xlu2 %v2215_v23, %s2492_s17 }
 0xc29   :  { %v2217_v25 = vpop.eup %2216 }
 0xc2a   :  { %v588_v26 = vmul.f32 0.5, %v2217_v25 }
 0xc2c   :  { %v589_v27 = vadd.f32 0.5, %v588_v26 }
 0xc2e   :  { %v596_v15 = vmul.f32 %v594_v30, %v589_v27 }
 0xc82   :  { %v599_v28 = vpop.permute.xlu2 %598 }
 0xc83   :  { %v601_v29 = vmul.f32 %v599_v28, %v589_v27 }
 0xc85   :  { %603 = vrot.lane.b32.xlu1 %v601_v29, %s2493_s18 }
 0xcf7   :  { %v604_v31 = vpop.permute.xlu1 %603 }
 0xcf8   :  { %v606_v16 = vadd.f32 %v604_v31, %v596_v15 }
 0xcfa   :  { %2218 = vtanh.f32 %v606_v16  ;;  %623 = vrot.lane.b32.xlu1 %v606_v16, %s2494_s19 }
 0xd00   :  { %v2219_v19 = vpop.eup %2218 }
 0xd01   :  { %609 = vrot.lane.b32.xlu2 %v2219_v19, %s2492_s17  ;;  %v831_v19 = vld [vmem:[#allocation8 + $0x1f8] sm:$0xff] }
 0xd02   :  { %832 = vmatpush.msrb.mxu1 %v831_v19 }
 0xd5b   :  { %v610_v22 = vpop.permute.xlu2 %609 }
 0xd5c   :  { %v612_v32 = vmul.f32 %v610_v22, %v589_v27  ;;  %v785_v22 = vld [vmem:[#allocation8 + $0x170] sm:$0xff] }
 0xd5e   :  { %614 = vrot.lane.b32.xlu0 %v612_v32, %s2493_s18  ;;  %v830_v32 = vld [vmem:[#allocation8 + $0x1f0] sm:$0xff] }
 0xd5f   :  { %833 = vmatpush.msrb.mxu1 %v830_v32 }
 0xd6c   :  { %v624_v18 = vpop.permute.xlu1 %623 }
 0xd6d   :  { %v626_v34 = vmul.f32 %v624_v18, %v2682_v51  ;;  %v784_v18 = vld [vmem:[#allocation8 + $0x168] sm:$0xff] }
 0xd6f   :  { %v629_v35 = vadd.f32 %v628_v33, %v626_v34  ;;  %v829_v33 = vld [vmem:[#allocation8 + $0x1e8] sm:$0xff]  ;;  %v783_v34 = vld [vmem:[#allocation8 + $0x160] sm:$0xff] }
 0xd70   :  { %834 = vmatpush.msrb.mxu1 %v829_v33 }
 0xd71   :  { %v666_v36 = vrot.slane %v629_v35, 6  ;;  %v828_v35 = vld [vmem:[#allocation8 + $0x1e0] sm:$0xff] }
 0xd72   :  { %835 = vmatpush.msrb.mxu1 %v828_v35 }
 0xd73   :  { %667 = vrot.lane.b32.xlu0 %v666_v36, %s2493_s18  ;;  %v702_v63 = vmul.f32 %v666_v36, %v2685_v5  ;;  %v782_v36 = vld [vmem:[#allocation8 + $0x158] sm:$0xff] }
 0xd74   :  { %836 = vmatpush.msrb.mxu1 %v827_v37 }
 0xdd0   :  { %v615_v38 = vpop.permute.xlu0 %614 }
 0xdd1   :  { %v617_v40 = vmul.f32 %v615_v38, %v2682_v51  ;;  %v781_v38 = vld [vmem:[#allocation8 + $0x150] sm:$0xff] }
 0xdd3   :  { %v621_v41 = vadd.f32 %v620_v39, %v617_v40  ;;  %630 = vst.msk [vmem:[#allocation2 + $0x8] sm:$0xc] %vm326_vm3, %v617_v40  ;;  %v826_v39 = vld [vmem:[#allocation8 + $0x1d0] sm:$0xff] }
 0xdd4   :  { %631 = vst.msk [vmem:[#allocation2 + $0x2] sm:$0xc] %vm328_vm4, %v617_v40  ;;  %v780_v40 = vld [vmem:[#allocation8 + $0x148] sm:$0xff]  ;;  %837 = vmatpush.msrb.mxu1 %v826_v39 }
 0xdd5   :  { %v633_v42 = vrot.slane %v621_v41, 2  ;;  %v692_v8 = vrot.slane %v621_v41, 6  ;;  %v825_v41 = vld [vmem:[#allocation8 + $0x1c8] sm:$0xff] }
 0xdd6   :  { %838 = vmatpush.msrb.mxu1 %v825_v41 }
 0xdd7   :  { %2151 = vmatmul.msk.f32.vlgmr.msrb.gmra.mxu2 %vm188_vm2, %v633_v42  ;;  %v694_v10 = vmul.f32 %v692_v8, %v2685_v5  ;;  %v779_v42 = vld [vmem:[#allocation8 + $0x140] sm:$0xff] }
 0xdd8   :  { %v2738_v8 = vld [vmem:[#allocation9 + $0x20] sm:$0xff] }
 0xde5   :  { %v668_v56 = vpop.permute.xlu0 %667 }
 0xe5a   :  { %v653_v43 = vpop.f32.mrf.mxu2 }
 0xe5b   :  { %v657_v44 = vrot.slane %v653_v43, 4  ;;  %v824_v43 = vld [vmem:[#allocation8 + $0x1c0] sm:$0xff] }
 0xe5c   :  { %839 = vmatpush.msrb.mxu1 %v824_v43 }
 0xe5d   :  { %v659_v45 = vadd.f32 %v657_v44, %v2596_v52  ;;  %v778_v44 = vld [vmem:[#allocation8 + $0x138] sm:$0xff] }
 0xe5f   :  { %2220 = vtanh.f32 %v659_v45  ;;  %v660_v47 = vmul.f32 0.5, %v659_v45  ;;  %v823_v45 = vld [vmem:[#allocation8 + $0x1b8] sm:$0xff] }
 0xe60   :  { %840 = vmatpush.msrb.mxu1 %v823_v45 }
 0xe61   :  { %2222 = vtanh.f32 %v660_v47  ;;  %v822_v47 = vld [vmem:[#allocation8 + $0x1b0] sm:$0xff] }
 0xe62   :  { %841 = vmatpush.msrb.mxu1 %v822_v47 }
 0xe65   :  { %v2221_v46 = vpop.eup %2220 }
 0xe66   :  { %672 = vrot.lane.b32.xlu2 %v2221_v46, %s2492_s17  ;;  %v777_v46 = vld [vmem:[#allocation8 + $0x130] sm:$0xff] }
 0xe67   :  { %v2223_v48 = vpop.eup %2222 }
 0xe68   :  { %v662_v49 = vmul.f32 0.5, %v2223_v48  ;;  %v776_v48 = vld [vmem:[#allocation8 + $0x128] sm:$0xff] }
 0xe6a   :  { %v663_v53 = vadd.f32 0.5, %v662_v49  ;;  %v821_v49 = vld [vmem:[#allocation8 + $0x1a8] sm:$0xff] }
 0xe6b   :  { %842 = vmatpush.msrb.mxu1 %v821_v49 }
 0xe6c   :  { %v670_v57 = vmul.f32 %v668_v56, %v663_v53  ;;  %v820_v56 = vld [vmem:[#allocation8 + $0x1a0] sm:$0xff] }
 0xe6d   :  { %843 = vmatpush.msrb.mxu1 %v820_v56 }
 0xec0   :  { %v673_v54 = vpop.permute.xlu2 %672 }
 0xec1   :  { %v675_v55 = vmul.f32 %v673_v54, %v663_v53 }
 0xec3   :  { %677 = vrot.lane.b32.xlu1 %v675_v55, %s2493_s18  ;;  %v775_v55 = vld [vmem:[#allocation8 + $0x120] sm:$0xff] }
 0xf35   :  { %v678_v58 = vpop.permute.xlu1 %677 }
 0xf36   :  { %v680_v59 = vadd.f32 %v678_v58, %v670_v57  ;;  %v774_v57 = vld [vmem:[#allocation8 + $0x118] sm:$0xff] }
 0xf37   :  { %v819_v58 = vld [vmem:[#allocation8 + $0x198] sm:$0xff] }
 0xf38   :  { %2224 = vtanh.f32 %v680_v59  ;;  %697 = vrot.lane.b32.xlu1 %v680_v59, %s2494_s19  ;;  %v773_v59 = vld [vmem:[#allocation8 + $0x110] sm:$0xff]  ;;  %844 = vmatpush.msrb.mxu1 %v819_v58 }
 0xf3e   :  { %v2225_v52 = vpop.eup %2224 }
 0xf3f   :  { %683 = vrot.lane.b32.xlu2 %v2225_v52, %s2492_s17  ;;  %v818_v52 = vld [vmem:[#allocation8 + $0x190] sm:$0xff] }
 0xf40   :  { %845 = vmatpush.msrb.mxu1 %v818_v52 }
 0xf99   :  { %v684_v60 = vpop.permute.xlu2 %683 }
 0xf9a   :  { %v686_v61 = vmul.f32 %v684_v60, %v663_v53  ;;  %v772_v60 = vld [vmem:[#allocation8 + $0x108] sm:$0xff] }
 0xf9c   :  { %688 = vrot.lane.b32.xlu0 %v686_v61, %s2493_s18  ;;  %v817_v61 = vld [vmem:[#allocation8 + $0x188] sm:$0xff] }
 0xf9d   :  { %846 = vmatpush.msrb.mxu1 %v817_v61 }
 0xfaa   :  { %v698_v62 = vpop.permute.xlu1 %697 }
 0xfab   :  { %v700_v0 = vmul.f32 %v698_v62, %v2682_v51  ;;  %v2728_v62 = vld [vmem:[#allocation9 + $0x38] sm:$0xff] }
 0xfac   :  { %876 = vmatpush.msra.mxu2 %v2728_v62  ;;  %939 = vmatpush.msra.mxu3 %v2728_v62 }
 0xfad   :  { %v703_v6 = vadd.f32 %v702_v63, %v700_v0  ;;  %v771_v63 = vld [vmem:[#allocation8 + $0x100] sm:$0xff] }
 0xfae   :  { %v816_v0 = vld [vmem:[#allocation8 + $0x180] sm:$0xff] }
 0xfaf   :  { %v740_v7 = vrot.slane %v703_v6, 6  ;;  %847 = vmatpush.msrb.mxu1 %v816_v0  ;;  %v2732_v6 = vld [vmem:[#allocation9 + $0x30] sm:$0xff] }
 0xfb0   :  { %877 = vmatpush.msra.mxu2 %v2732_v6  ;;  %940 = vmatpush.msra.mxu3 %v2732_v6 }
 0xfb1   :  { %741 = vrot.lane.b32.xlu0 %v740_v7, %s2493_s18  ;;  %v2734_v7 = vld [vmem:[#allocation9 + $0x28] sm:$0xff] }
 0xfb2   :  { %878 = vmatpush.msra.mxu2 %v2734_v7  ;;  %941 = vmatpush.msra.mxu3 %v2734_v7 }
 0xfb4   :  { %879 = vmatpush.msra.mxu2 %v2738_v8  ;;  %942 = vmatpush.msra.mxu3 %v2738_v8 }
 0xfb5   :  { %880 = vmatmul.f32.vlgmr.msra.gmra.mxu2 %v2491_v4 }
 0xfb6   :  { %1013 = vmatpush.msrb.mxu2 %v2728_v62 }
 0xfb8   :  { %1014 = vmatpush.msrb.mxu2 %v2732_v6 }
 0xfba   :  { %1015 = vmatpush.msrb.mxu2 %v2734_v7 }
 0xfbc   :  { %1016 = vmatpush.msrb.mxu2 %v2738_v8 }
 0xfbe   :  { %1165 = vmatpush.msra.mxu2 %v2728_v62 }
 0xfc0   :  { %1166 = vmatpush.msra.mxu2 %v2732_v6 }
 0xfc2   :  { %1167 = vmatpush.msra.mxu2 %v2734_v7 }
 0xfc4   :  { %1168 = vmatpush.msra.mxu2 %v2738_v8 }
0x100e   :  { %v689_v9 = vpop.permute.xlu0 %688 }
0x100f   :  { %v691_v11 = vmul.f32 %v689_v9, %v2682_v51 }
0x1011   :  { %v695_v12 = vadd.f32 %v694_v10, %v691_v11  ;;  %704 = vst.msk [vmem:[#allocation2 + $0x8] sm:$0x30] %vm402_vm5, %v691_v11 }
0x1012   :  { %705 = vst.msk [vmem:[#allocation2 - $0x2] sm:$0x30] %vm404_vm6, %v691_v11 }
0x1013   :  { %v707_v13 = vrot.slane %v695_v12, 4 }
0x1015   :  { %2152 = vmatmul.msk.f32.vlgmr.msrb.gmra.mxu3 %vm188_vm2, %v707_v13 }
0x1016   :  { %1087 = vmatpush.msrb.mxu3 %v2728_v62 }
0x1018   :  { %1088 = vmatpush.msrb.mxu3 %v2732_v6 }
0x101a   :  { %1089 = vmatpush.msrb.mxu3 %v2734_v7 }
0x101c   :  { %1090 = vmatpush.msrb.mxu3 %v2738_v8 }
0x1023   :  { %v742_v29 = vpop.permute.xlu0 %741 }
0x1098   :  { %v727_v14 = vpop.f32.mrf.mxu3 }
0x1099   :  { %v731_v17 = vrot.slane %v727_v14, 2  ;;  %v2182_v14 = vld [vmem:[%s3069_s4 + $0x1] ss:$0 sm:$0xff] }
0x109b   :  { %v733_v20 = vadd.f32 %v731_v17, %v2592_v50  ;;  %v786_v50 = vld [vmem:[#allocation8 + $0x178] sm:$0xff] }
0x109c   :  { %792 = vmatpush.msrb.mxu0 %v786_v50 }
0x109d   :  { %2226 = vtanh.f32 %v733_v20  ;;  %v734_v23 = vmul.f32 0.5, %v733_v20 }
0x109e   :  { %793 = vmatpush.msrb.mxu0 %v785_v22 }
0x109f   :  { %2228 = vtanh.f32 %v734_v23 }
0x10a0   :  { %794 = vmatpush.msrb.mxu0 %v784_v18 }
0x10a2   :  { %795 = vmatpush.msrb.mxu0 %v783_v34 }
0x10a3   :  { %v2227_v21 = vpop.eup %2226 }
0x10a4   :  { %746 = vrot.lane.b32.xlu2 %v2227_v21, %s2492_s17  ;;  %796 = vmatpush.msrb.mxu0 %v782_v36 }
0x10a5   :  { %v2229_v24 = vpop.eup %2228 }
0x10a6   :  { %v736_v25 = vmul.f32 0.5, %v2229_v24  ;;  %797 = vmatpush.msrb.mxu0 %v781_v38 }
0x10a8   :  { %v737_v26 = vadd.f32 0.5, %v736_v25  ;;  %798 = vmatpush.msrb.mxu0 %v780_v40 }
0x10aa   :  { %v744_v30 = vmul.f32 %v742_v29, %v737_v26  ;;  %799 = vmatpush.msrb.mxu0 %v779_v42 }
0x10ac   :  { %800 = vmatpush.msrb.mxu0 %v778_v44 }
0x10ae   :  { %801 = vmatpush.msrb.mxu0 %v777_v46 }
0x10b0   :  { %802 = vmatpush.msrb.mxu0 %v776_v48 }
0x10b2   :  { %803 = vmatpush.msrb.mxu0 %v775_v55 }
0x10b4   :  { %804 = vmatpush.msrb.mxu0 %v774_v57 }
0x10b6   :  { %805 = vmatpush.msrb.mxu0 %v773_v59 }
0x10b8   :  { %806 = vmatpush.msrb.mxu0 %v772_v60 }
0x10ba   :  { %807 = vmatpush.msrb.mxu0 %v771_v63 }
0x10fe   :  { %v747_v27 = vpop.permute.xlu2 %746 }
0x10ff   :  { %v749_v28 = vmul.f32 %v747_v27, %v737_v26  ;;  %v881_v27 = vpop.f32.mrf.mxu2 }
0x1101   :  { %751 = vrot.lane.b32.xlu1 %v749_v28, %s2493_s18 }
0x1173   :  { %v752_v15 = vpop.permute.xlu1 %751 }
0x1174   :  { %v754_v31 = vadd.f32 %v752_v15, %v744_v30 }
0x1176   :  { %2230 = vtanh.f32 %v754_v31 }
0x117c   :  { %v2231_v16 = vpop.eup %2230 }
0x117d   :  { %757 = vrot.lane.b32.xlu2 %v2231_v16, %s2492_s17 }
0x11d7   :  { %v758_v53 = vpop.permute.xlu2 %757 }
0x11d8   :  { %v760_v54 = vmul.f32 %v758_v53, %v737_v26 }
0x11da   :  { %762 = vrot.lane.b32.xlu0 %v760_v54, %s2493_s18 }
0x124c   :  { %v763_v4 = vpop.permute.xlu0 %762 }
0x124d   :  { %v765_v9 = vmul.f32 %v763_v4, %v2682_v51 }
0x124f   :  { %766 = vst.msk [vmem:[#allocation2 + $0x8] sm:$0xc0] %vm478_vm7, %v765_v9 }
0x1250   :  { %767 = vst.msk [vmem:[#allocation2 - $0x6] sm:$0xc0] %vm480_vm8, %v765_v9 }
0x1256   :  { %v769_v11 = vld [vmem:[#allocation2 + $0x8] sm:$0xff] }
0x1257   :  { %v768_v10 = vld [vmem:[#allocation2] sm:$0xff] }
0x1258   :  { %808 = vmatmul.f32.vlgmr.msrb.gmra.mxu0 %v768_v10  ;;  %848 = vmatmul.f32.vlgmr.msrb.gmra.mxu1 %v768_v10 }
0x1260   :  { %811 = vmatmul.f32.gmra.mxu0 %v769_v11  ;;  %851 = vmatmul.f32.gmra.mxu1 %v769_v11 }
0x12d5   :  { %v809_v12 = vpop.f32.mrf.mxu0  ;;  %v849_v13 = vpop.f32.mrf.mxu1 }
0x12d6   :  { %v810_v17 = vadd.f32 %v2182_v14, %v809_v12  ;;  %v1146_v23 = vrot.slane %v849_v13, 6  ;;  %v1219_v24 = vrot.slane %v849_v13, 2 }
0x12dd   :  { %v812_v20 = vpop.f32.mrf.mxu0  ;;  %v852_v21 = vpop.f32.mrf.mxu1 }
0x12de   :  { %v813_v25 = vadd.f32 %v2182_v14, %v812_v20  ;;  %v861_v26 = vrot.slane %v852_v21, 6  ;;  %v921_v46 = vrot.slane %v852_v21, 2 }
0x12e0   :  { %v2763_v28 = vadd.f32 %v1219_v24, %v813_v25  ;;  %v2765_v29 = vadd.f32 %v861_v26, %v810_v17  ;;  %v2767_v30 = vadd.f32 %v1146_v23, %v813_v25  ;;  %v2787_v48 = vadd.f32 %v921_v46, %v810_v17 }
0x12e2   :  { %v884_v15 = vadd.f32 %v881_v27, %v2765_v29 }
0x12e4   :  { %2232 = vtanh.f32 %v884_v15  ;;  %v885_v16 = vmul.f32 0.5, %v884_v15 }
0x12e6   :  { %2234 = vtanh.f32 %v885_v16 }
0x12ea   :  { %v2233_v31 = vpop.eup %2232 }
0x12eb   :  { %892 = vrot.lane.b32.xlu1 %v2233_v31, %s2492_s17 }
0x12ec   :  { %v2235_v50 = vpop.eup %2234 }
0x12ed   :  { %v887_v19 = vmul.f32 0.5, %v2235_v50 }
0x12ef   :  { %v888_v22 = vadd.f32 0.5, %v887_v19 }
0x12f1   :  { %v890_v33 = vmul.f32 0.0, %v888_v22 }
0x135d   :  { %v893_v32 = vpop.permute.xlu1 %892 }
0x135e   :  { %v895_v18 = vmul.f32 %v893_v32, %v888_v22 }
0x1360   :  { %897 = vrot.lane.b32.xlu2 %v895_v18, %s2493_s18 }
0x13ba   :  { %v898_v34 = vpop.permute.xlu2 %897 }
0x13bb   :  { %v900_v35 = vadd.f32 %v898_v34, %v890_v33 }
0x13bd   :  { %2236 = vtanh.f32 %v900_v35  ;;  %914 = vrot.lane.b32.xlu2 %v900_v35, %s2494_s19 }
0x13c3   :  { %v2237_v36 = vpop.eup %2236 }
0x13c4   :  { %903 = vrot.lane.b32.xlu0 %v2237_v36, %s2492_s17 }
0x1417   :  { %v915_v37 = vpop.permute.xlu2 %914 }
0x1418   :  { %v917_v39 = vmul.f32 %v915_v37, %v2603_v1 }
0x141a   :  { %v918_v41 = vadd.f32 %v917_v39, %v2609_v3  ;;  %v2812_v39 = vld [vmem:[#allocation6] sm:$0xff] }
0x141c   :  { %v957_v42 = vrot.slane %v918_v41, 6 }
0x141e   :  { %v993_v13 = vmul.f32 %v957_v42, %v2606_v2 }
0x1436   :  { %v904_v38 = vpop.permute.xlu0 %903 }
0x1437   :  { %v906_v40 = vmul.f32 %v904_v38, %v888_v22 }
0x1439   :  { %908 = vrot.lane.b32.xlu1 %v906_v40, %s2493_s18 }
0x1441   :  { %958 = vrot.lane.b32.xlu1 %v957_v42, %s2493_s18 }
0x14ab   :  { %v909_v43 = vpop.permute.xlu1 %908 }
0x14ac   :  { %v911_v44 = vmul.f32 %v909_v43, %v2603_v1 }
0x14ae   :  { %v912_v45 = vadd.f32 %v911_v44, %v2609_v3  ;;  %919 = vst.msk [vmem:[#allocation2] sm:$0x3] %vm248_vm0, %v911_v44 }
0x14af   :  { %920 = vst.msk [vmem:[#allocation2 + $0xe] sm:$0x3] %vm250_vm1, %v911_v44 }
0x14b0   :  { %2154 = vmatmul.msk.f32.vlgmr.msra.gmra.mxu3 %vm188_vm2, %v912_v45  ;;  %v983_v20 = vrot.slane %v912_v45, 6 }
0x14b1   :  { %1237 = vmatpush.msra.mxu3 %v2728_v62 }
0x14b2   :  { %v985_v23 = vmul.f32 %v983_v20, %v2606_v2 }
0x14b3   :  { %1238 = vmatpush.msra.mxu3 %v2732_v6  ;;  %v959_v60 = vpop.permute.xlu1 %958 }
0x14b5   :  { %1239 = vmatpush.msra.mxu3 %v2734_v7 }
0x14b7   :  { %1240 = vmatpush.msra.mxu3 %v2738_v8 }
0x1533   :  { %v944_v47 = vpop.f32.mrf.mxu3 }
0x1534   :  { %v948_v49 = vrot.slane %v944_v47, 6 }
0x1536   :  { %v950_v53 = vadd.f32 %v948_v49, %v2787_v48 }
0x1538   :  { %2238 = vtanh.f32 %v950_v53  ;;  %v951_v55 = vmul.f32 0.5, %v950_v53 }
0x153a   :  { %2240 = vtanh.f32 %v951_v55 }
0x153e   :  { %v2239_v54 = vpop.eup %2238 }
0x153f   :  { %963 = vrot.lane.b32.xlu0 %v2239_v54, %s2492_s17 }
0x1540   :  { %v2241_v56 = vpop.eup %2240 }
0x1541   :  { %v953_v57 = vmul.f32 0.5, %v2241_v56 }
0x1543   :  { %v954_v58 = vadd.f32 0.5, %v953_v57 }
0x1545   :  { %v961_v61 = vmul.f32 %v959_v60, %v954_v58 }
0x15b1   :  { %v964_v59 = vpop.permute.xlu0 %963 }
0x15b2   :  { %v966_v52 = vmul.f32 %v964_v59, %v954_v58 }
0x15b4   :  { %968 = vrot.lane.b32.xlu2 %v966_v52, %s2493_s18 }
0x160e   :  { %v969_v63 = vpop.permute.xlu2 %968 }
0x160f   :  { %v971_v0 = vadd.f32 %v969_v63, %v961_v61 }
0x1611   :  { %2242 = vtanh.f32 %v971_v0  ;;  %988 = vrot.lane.b32.xlu2 %v971_v0, %s2494_s19 }
0x1617   :  { %v2243_v4 = vpop.eup %2242 }
0x1618   :  { %974 = vrot.lane.b32.xlu0 %v2243_v4, %s2492_s17 }
0x166b   :  { %v989_v9 = vpop.permute.xlu2 %988 }
0x166c   :  { %v991_v11 = vmul.f32 %v989_v9, %v2603_v1 }
0x166e   :  { %v994_v14 = vadd.f32 %v993_v13, %v991_v11 }
0x1670   :  { %v1031_v17 = vrot.slane %v994_v14, 6 }
0x1672   :  { %v1067_v42 = vmul.f32 %v1031_v17, %v2606_v2 }
0x168a   :  { %v975_v10 = vpop.permute.xlu0 %974 }
0x168b   :  { %v977_v12 = vmul.f32 %v975_v10, %v954_v58 }
0x168d   :  { %979 = vrot.lane.b32.xlu1 %v977_v12, %s2493_s18 }
0x1695   :  { %1032 = vrot.lane.b32.xlu1 %v1031_v17, %s2493_s18 }
0x16ff   :  { %v980_v21 = vpop.permute.xlu1 %979 }
0x1700   :  { %v982_v24 = vmul.f32 %v980_v21, %v2603_v1 }
0x1702   :  { %v986_v25 = vadd.f32 %v985_v23, %v982_v24  ;;  %995 = vst.msk [vmem:[#allocation2] sm:$0xc] %vm326_vm3, %v982_v24 }
0x1703   :  { %996 = vst.msk [vmem:[#allocation2 + $0xa] sm:$0xc] %vm328_vm4, %v982_v24 }
0x1704   :  { %v998_v26 = vrot.slane %v986_v25, 2  ;;  %v1057_v45 = vrot.slane %v986_v25, 6 }
0x1706   :  { %2155 = vmatmul.msk.f32.vlgmr.msrb.gmra.mxu2 %vm188_vm2, %v998_v26  ;;  %v1059_v47 = vmul.f32 %v1057_v45, %v2606_v2 }
0x1707   :  { %1311 = vmatpush.msrb.mxu2 %v2728_v62  ;;  %v1033_v33 = vpop.permute.xlu1 %1032 }
0x1709   :  { %1312 = vmatpush.msrb.mxu2 %v2732_v6 }
0x170b   :  { %1313 = vmatpush.msrb.mxu2 %v2734_v7 }
0x170d   :  { %1314 = vmatpush.msrb.mxu2 %v2738_v8 }
0x1789   :  { %v1018_v27 = vpop.f32.mrf.mxu2 }
0x178a   :  { %v1022_v15 = vrot.slane %v1018_v27, 4 }
0x178c   :  { %v1024_v1 = vadd.f32 %v1022_v15, %v2765_v29 }
0x178e   :  { %2244 = vtanh.f32 %v1024_v1  ;;  %v1025_v16 = vmul.f32 0.5, %v1024_v1 }
0x1790   :  { %2246 = vtanh.f32 %v1025_v16 }
0x1794   :  { %v2245_v31 = vpop.eup %2244 }
0x1795   :  { %1037 = vrot.lane.b32.xlu0 %v2245_v31, %s2492_s17 }
0x1796   :  { %v2247_v50 = vpop.eup %2246 }
0x1797   :  { %v1027_v19 = vmul.f32 0.5, %v2247_v50 }
0x1799   :  { %v1028_v22 = vadd.f32 0.5, %v1027_v19 }
0x179b   :  { %v1035_v34 = vmul.f32 %v1033_v33, %v1028_v22 }
0x1807   :  { %v1038_v32 = vpop.permute.xlu0 %1037 }
0x1808   :  { %v1040_v18 = vmul.f32 %v1038_v32, %v1028_v22 }
0x180a   :  { %1042 = vrot.lane.b32.xlu2 %v1040_v18, %s2493_s18 }
0x1864   :  { %v1043_v35 = vpop.permute.xlu2 %1042 }
0x1865   :  { %v1045_v36 = vadd.f32 %v1043_v35, %v1035_v34 }
0x1867   :  { %2248 = vtanh.f32 %v1045_v36  ;;  %1062 = vrot.lane.b32.xlu2 %v1045_v36, %s2494_s19 }
0x186d   :  { %v2249_v29 = vpop.eup %2248 }
0x186e   :  { %1048 = vrot.lane.b32.xlu0 %v2249_v29, %s2492_s17 }
0x18c1   :  { %v1063_v37 = vpop.permute.xlu2 %1062 }
0x18c2   :  { %v1065_v40 = vmul.f32 %v2812_v39, %v1063_v37 }
0x18c4   :  { %v1068_v43 = vadd.f32 %v1067_v42, %v1065_v40 }
0x18c6   :  { %v1105_v44 = vrot.slane %v1068_v43, 6 }
0x18c8   :  { %v1141_v12 = vmul.f32 %v1105_v44, %v2606_v2 }
0x18e0   :  { %v1049_v38 = vpop.permute.xlu0 %1048 }
0x18e1   :  { %v1051_v41 = vmul.f32 %v1049_v38, %v1028_v22 }
0x18e3   :  { %1053 = vrot.lane.b32.xlu1 %v1051_v41, %s2493_s18 }
0x18eb   :  { %1106 = vrot.lane.b32.xlu1 %v1105_v44, %s2493_s18 }
0x1955   :  { %v1054_v46 = vpop.permute.xlu1 %1053 }
0x1956   :  { %v1056_v49 = vmul.f32 %v2812_v39, %v1054_v46 }
0x1958   :  { %v1060_v53 = vadd.f32 %v1059_v47, %v1056_v49  ;;  %1069 = vst.msk [vmem:[#allocation2] sm:$0x30] %vm402_vm5, %v1056_v49 }
0x1959   :  { %1070 = vst.msk [vmem:[#allocation2 + $0x6] sm:$0x30] %vm404_vm6, %v1056_v49 }
0x195a   :  { %v1072_v54 = vrot.slane %v1060_v53, 4  ;;  %v1131_v17 = vrot.slane %v1060_v53, 6 }
0x195c   :  { %2156 = vmatmul.msk.f32.vlgmr.msrb.gmra.mxu3 %vm188_vm2, %v1072_v54  ;;  %v1133_v21 = vmul.f32 %v1131_v17, %v2606_v2 }
0x195d   :  { %1385 = vmatpush.msrb.mxu3 %v2728_v62 }
0x195f   :  { %1386 = vmatpush.msrb.mxu3 %v2732_v6  ;;  %v1107_v6 = vpop.permute.xlu1 %1106 }
0x1961   :  { %1387 = vmatpush.msrb.mxu3 %v2734_v7 }
0x1963   :  { %1388 = vmatpush.msrb.mxu3 %v2738_v8 }
0x19df   :  { %v1092_v55 = vpop.f32.mrf.mxu3 }
0x19e0   :  { %v1096_v56 = vrot.slane %v1092_v55, 2 }
0x19e2   :  { %v1098_v57 = vadd.f32 %v1096_v56, %v2787_v48 }
0x19e4   :  { %2250 = vtanh.f32 %v1098_v57  ;;  %v1099_v59 = vmul.f32 0.5, %v1098_v57 }
0x19e6   :  { %2252 = vtanh.f32 %v1099_v59 }
0x19ea   :  { %v2251_v58 = vpop.eup %2250 }
0x19eb   :  { %1111 = vrot.lane.b32.xlu0 %v2251_v58, %s2492_s17 }
0x19ec   :  { %v2253_v52 = vpop.eup %2252 }
0x19ed   :  { %v1101_v60 = vmul.f32 0.5, %v2253_v52 }
0x19ef   :  { %v1102_v61 = vadd.f32 0.5, %v1101_v60 }
0x19f1   :  { %v1109_v7 = vmul.f32 %v1107_v6, %v1102_v61 }
0x1a5d   :  { %v1112_v62 = vpop.permute.xlu0 %1111 }
0x1a5e   :  { %v1114_v63 = vmul.f32 %v1112_v62, %v1102_v61 }
0x1a60   :  { %1116 = vrot.lane.b32.xlu2 %v1114_v63, %s2493_s18 }
0x1aba   :  { %v1117_v8 = vpop.permute.xlu2 %1116 }
0x1abb   :  { %v1119_v0 = vadd.f32 %v1117_v8, %v1109_v7 }
0x1abd   :  { %2254 = vtanh.f32 %v1119_v0  ;;  %1136 = vrot.lane.b32.xlu2 %v1119_v0, %s2494_s19 }
0x1ac3   :  { %v2255_v48 = vpop.eup %2254 }
0x1ac4   :  { %1122 = vrot.lane.b32.xlu0 %v2255_v48, %s2492_s17 }
0x1b17   :  { %v1137_v4 = vpop.permute.xlu2 %1136 }
0x1b18   :  { %v1139_v10 = vmul.f32 %v2812_v39, %v1137_v4 }
0x1b1a   :  { %v1142_v13 = vadd.f32 %v1141_v12, %v1139_v10 }
0x1b1c   :  { %v1180_v14 = vrot.slane %v1142_v13, 6 }
0x1b1e   :  { %v1215_v40 = vmul.f32 %v1180_v14, %v2685_v5 }
0x1b36   :  { %v1123_v9 = vpop.permute.xlu0 %1122 }
0x1b37   :  { %v1125_v11 = vmul.f32 %v1123_v9, %v1102_v61 }
0x1b39   :  { %1127 = vrot.lane.b32.xlu1 %v1125_v11, %s2493_s18 }
0x1b41   :  { %1181 = vrot.lane.b32.xlu1 %v1180_v14, %s2493_s18 }
0x1bab   :  { %v1128_v20 = vpop.permute.xlu1 %1127 }
0x1bac   :  { %v1130_v23 = vmul.f32 %v2812_v39, %v1128_v20 }
0x1bae   :  { %v1134_v24 = vadd.f32 %v1133_v21, %v1130_v23  ;;  %1143 = vst.msk [vmem:[#allocation2] sm:$0xc0] %vm478_vm7, %v1130_v23 }
0x1baf   :  { %1144 = vst.msk [vmem:[#allocation2 + $0x2] sm:$0xc0] %vm480_vm8, %v1130_v23 }
0x1bb0   :  { %v1150_v25 = vrot.slane %v1134_v24, 6 }
0x1bb2   :  { %2157 = vmatmul.msk.f32.vlgmr.msra.gmra.mxu2 %vm188_vm2, %v1150_v25  ;;  %v1207_v44 = vmul.f32 %v1150_v25, %v2685_v5 }
0x1bb3   :  { %v1182_v32 = vpop.permute.xlu1 %1181 }
0x1c35   :  { %v1170_v26 = vpop.f32.mrf.mxu2 }
0x1c36   :  { %v1173_v27 = vadd.f32 %v1170_v26, %v2767_v30 }
0x1c38   :  { %2256 = vtanh.f32 %v1173_v27  ;;  %v1174_v1 = vmul.f32 0.5, %v1173_v27 }
0x1c3a   :  { %2258 = vtanh.f32 %v1174_v1 }
0x1c3e   :  { %v2257_v15 = vpop.eup %2256 }
0x1c3f   :  { %1186 = vrot.lane.b32.xlu0 %v2257_v15, %s2492_s17 }
0x1c40   :  { %v2259_v31 = vpop.eup %2258 }
0x1c41   :  { %v1176_v16 = vmul.f32 0.5, %v2259_v31 }
0x1c43   :  { %v1177_v50 = vadd.f32 0.5, %v1176_v16 }
0x1c45   :  { %v1184_v18 = vmul.f32 %v1182_v32, %v1177_v50 }
0x1cb1   :  { %v1187_v19 = vpop.permute.xlu0 %1186 }
0x1cb2   :  { %v1189_v22 = vmul.f32 %v1187_v19, %v1177_v50 }
0x1cb4   :  { %1191 = vrot.lane.b32.xlu2 %v1189_v22, %s2493_s18 }
0x1d0e   :  { %v1192_v33 = vpop.permute.xlu2 %1191 }
0x1d0f   :  { %v1194_v34 = vadd.f32 %v1192_v33, %v1184_v18 }
0x1d11   :  { %2260 = vtanh.f32 %v1194_v34  ;;  %1210 = vrot.lane.b32.xlu2 %v1194_v34, %s2494_s19 }
0x1d17   :  { %v2261_v35 = vpop.eup %2260 }
0x1d18   :  { %1197 = vrot.lane.b32.xlu0 %v2261_v35, %s2492_s17 }
0x1d6b   :  { %v1211_v36 = vpop.permute.xlu2 %1210 }
0x1d6c   :  { %v1213_v37 = vmul.f32 %v1211_v36, %v2682_v51 }
0x1d6e   :  { %v1216_v41 = vadd.f32 %v1215_v40, %v1213_v37 }
0x1d70   :  { %v1255_v42 = vrot.slane %v1216_v41, 6 }
0x1d72   :  { %v1291_v4 = vmul.f32 %v1255_v42, %v2685_v5 }
0x1d8a   :  { %v1198_v29 = vpop.permute.xlu0 %1197 }
0x1d8b   :  { %v1200_v38 = vmul.f32 %v1198_v29, %v1177_v50 }
0x1d8d   :  { %1202 = vrot.lane.b32.xlu1 %v1200_v38, %s2493_s18 }
0x1d95   :  { %1256 = vrot.lane.b32.xlu1 %v1255_v42, %s2493_s18 }
0x1dff   :  { %v1203_v43 = vpop.permute.xlu1 %1202 }
0x1e00   :  { %v1205_v45 = vmul.f32 %v1203_v43, %v2682_v51 }
0x1e02   :  { %v1208_v46 = vadd.f32 %v1207_v44, %v1205_v45  ;;  %1217 = vst.msk [vmem:[#allocation2 + $0x8] sm:$0x3] %vm248_vm0, %v1205_v45 }
0x1e03   :  { %1218 = vst.msk [vmem:[#allocation2 + $0x6] sm:$0x3] %vm250_vm1, %v1205_v45 }
0x1e04   :  { %2158 = vmatmul.msk.f32.vlgmr.msra.gmra.mxu3 %vm188_vm2, %v1208_v46  ;;  %v1281_v11 = vrot.slane %v1208_v46, 6 }
0x1e06   :  { %v1283_v13 = vmul.f32 %v1281_v11, %v2685_v5  ;;  %v1489_v11 = vld [vmem:[#allocation8 + $0x2d0] sm:$0xff] }
0x1e07   :  { %v1257_v60 = vpop.permute.xlu1 %1256 }
0x1e87   :  { %v1242_v47 = vpop.f32.mrf.mxu3 }
0x1e88   :  { %v1246_v49 = vrot.slane %v1242_v47, 6 }
0x1e8a   :  { %v1248_v53 = vadd.f32 %v1246_v49, %v2763_v28 }
0x1e8c   :  { %2262 = vtanh.f32 %v1248_v53  ;;  %v1249_v55 = vmul.f32 0.5, %v1248_v53 }
0x1e8e   :  { %2264 = vtanh.f32 %v1249_v55 }
0x1e92   :  { %v2263_v54 = vpop.eup %2262 }
0x1e93   :  { %1261 = vrot.lane.b32.xlu0 %v2263_v54, %s2492_s17 }
0x1e94   :  { %v2265_v56 = vpop.eup %2264 }
0x1e95   :  { %v1251_v57 = vmul.f32 0.5, %v2265_v56 }
0x1e97   :  { %v1252_v58 = vadd.f32 0.5, %v1251_v57 }
0x1e99   :  { %v1259_v61 = vmul.f32 %v1257_v60, %v1252_v58 }
0x1f05   :  { %v1262_v59 = vpop.permute.xlu0 %1261 }
0x1f06   :  { %v1264_v52 = vmul.f32 %v1262_v59, %v1252_v58 }
0x1f08   :  { %1266 = vrot.lane.b32.xlu2 %v1264_v52, %s2493_s18 }
0x1f62   :  { %v1267_v62 = vpop.permute.xlu2 %1266 }
0x1f63   :  { %v1269_v63 = vadd.f32 %v1267_v62, %v1259_v61  ;;  %v1494_v62 = vld [vmem:[#allocation8 + $0x2f8] sm:$0xff] }
0x1f64   :  { %1495 = vmatpush.msra.mxu1 %v1494_v62 }
0x1f65   :  { %2266 = vtanh.f32 %v1269_v63  ;;  %1286 = vrot.lane.b32.xlu2 %v1269_v63, %s2494_s19  ;;  %v1448_v63 = vld [vmem:[#allocation8 + $0x270] sm:$0xff] }
0x1f6b   :  { %v2267_v6 = vpop.eup %2266 }
0x1f6c   :  { %1272 = vrot.lane.b32.xlu0 %v2267_v6, %s2492_s17  ;;  %v1493_v6 = vld [vmem:[#allocation8 + $0x2f0] sm:$0xff] }
0x1f6d   :  { %1496 = vmatpush.msra.mxu1 %v1493_v6 }
0x1fbf   :  { %v1287_v7 = vpop.permute.xlu2 %1286 }
0x1fc0   :  { %v1289_v0 = vmul.f32 %v1287_v7, %v2682_v51  ;;  %v1447_v7 = vld [vmem:[#allocation8 + $0x268] sm:$0xff] }
0x1fc2   :  { %v1292_v9 = vadd.f32 %v1291_v4, %v1289_v0  ;;  %v1446_v0 = vld [vmem:[#allocation8 + $0x260] sm:$0xff]  ;;  %v1445_v4 = vld [vmem:[#allocation8 + $0x258] sm:$0xff] }
0x1fc4   :  { %v1329_v10 = vrot.slane %v1292_v9, 6  ;;  %v1490_v9 = vld [vmem:[#allocation8 + $0x2d8] sm:$0xff] }
0x1fc6   :  { %v1365_v36 = vmul.f32 %v1329_v10, %v2685_v5 }
0x1fde   :  { %v1273_v8 = vpop.permute.xlu0 %1272 }
0x1fdf   :  { %v1275_v48 = vmul.f32 %v1273_v8, %v1252_v58  ;;  %v1492_v8 = vld [vmem:[#allocation8 + $0x2e8] sm:$0xff] }
0x1fe0   :  { %1497 = vmatpush.msra.mxu1 %v1492_v8 }
0x1fe1   :  { %1277 = vrot.lane.b32.xlu1 %v1275_v48, %s2493_s18  ;;  %v1491_v48 = vld [vmem:[#allocation8 + $0x2e0] sm:$0xff] }
0x1fe2   :  { %1498 = vmatpush.msra.mxu1 %v1491_v48 }
0x1fe4   :  { %1499 = vmatpush.msra.mxu1 %v1490_v9 }
0x1fe6   :  { %1500 = vmatpush.msra.mxu1 %v1489_v11 }
0x1fe9   :  { %1330 = vrot.lane.b32.xlu1 %v1329_v10, %s2493_s18  ;;  %v1444_v10 = vld [vmem:[#allocation8 + $0x250] sm:$0xff] }
0x2053   :  { %v1278_v12 = vpop.permute.xlu1 %1277 }
0x2054   :  { %v1280_v14 = vmul.f32 %v1278_v12, %v2682_v51  ;;  %v1443_v12 = vld [vmem:[#allocation8 + $0x248] sm:$0xff] }
0x2056   :  { %v1284_v17 = vadd.f32 %v1283_v13, %v1280_v14  ;;  %1293 = vst.msk [vmem:[#allocation2 + $0x8] sm:$0xc] %vm326_vm3, %v1280_v14  ;;  %v1488_v13 = vld [vmem:[#allocation8 + $0x2c8] sm:$0xff] }
0x2057   :  { %1294 = vst.msk [vmem:[#allocation2 + $0x2] sm:$0xc] %vm328_vm4, %v1280_v14  ;;  %v1442_v14 = vld [vmem:[#allocation8 + $0x240] sm:$0xff]  ;;  %1501 = vmatpush.msra.mxu1 %v1488_v13 }
0x2058   :  { %v1296_v20 = vrot.slane %v1284_v17, 2  ;;  %v1355_v38 = vrot.slane %v1284_v17, 6  ;;  %v1487_v17 = vld [vmem:[#allocation8 + $0x2c0] sm:$0xff] }
0x2059   :  { %1502 = vmatpush.msra.mxu1 %v1487_v17 }
0x205a   :  { %2159 = vmatmul.msk.f32.vlgmr.msrb.gmra.mxu2 %vm188_vm2, %v1296_v20  ;;  %v1357_v41 = vmul.f32 %v1355_v38, %v2685_v5  ;;  %v1441_v20 = vld [vmem:[#allocation8 + $0x238] sm:$0xff] }
0x205b   :  { %v1331_v50 = vpop.permute.xlu1 %1330 }
0x20dd   :  { %v1316_v21 = vpop.f32.mrf.mxu2 }
0x20de   :  { %v1320_v23 = vrot.slane %v1316_v21, 4  ;;  %v1486_v21 = vld [vmem:[#allocation8 + $0x2b8] sm:$0xff] }
0x20df   :  { %1503 = vmatpush.msra.mxu1 %v1486_v21 }
0x20e0   :  { %v1322_v24 = vadd.f32 %v1320_v23, %v2767_v30  ;;  %v1440_v23 = vld [vmem:[#allocation8 + $0x230] sm:$0xff] }
0x20e2   :  { %2268 = vtanh.f32 %v1322_v24  ;;  %v1323_v26 = vmul.f32 0.5, %v1322_v24  ;;  %v1485_v24 = vld [vmem:[#allocation8 + $0x2b0] sm:$0xff] }
0x20e3   :  { %1504 = vmatpush.msra.mxu1 %v1485_v24 }
0x20e4   :  { %2270 = vtanh.f32 %v1323_v26  ;;  %v1484_v26 = vld [vmem:[#allocation8 + $0x2a8] sm:$0xff] }
0x20e5   :  { %1505 = vmatpush.msra.mxu1 %v1484_v26 }
0x20e8   :  { %v2269_v25 = vpop.eup %2268 }
0x20e9   :  { %1335 = vrot.lane.b32.xlu0 %v2269_v25, %s2492_s17  ;;  %v1439_v25 = vld [vmem:[#allocation8 + $0x228] sm:$0xff] }
0x20ea   :  { %v2271_v27 = vpop.eup %2270 }
0x20eb   :  { %v1325_v15 = vmul.f32 0.5, %v2271_v27 }
0x20ed   :  { %v1326_v1 = vadd.f32 0.5, %v1325_v15 }
0x20ef   :  { %v1333_v19 = vmul.f32 %v1331_v50, %v1326_v1  ;;  %v1482_v50 = vld [vmem:[#allocation8 + $0x298] sm:$0xff] }
0x215b   :  { %v1336_v31 = vpop.permute.xlu0 %1335 }
0x215c   :  { %v1338_v16 = vmul.f32 %v1336_v31, %v1326_v1  ;;  %v1483_v31 = vld [vmem:[#allocation8 + $0x2a0] sm:$0xff] }
0x215d   :  { %1506 = vmatpush.msra.mxu1 %v1483_v31 }
0x215e   :  { %1340 = vrot.lane.b32.xlu2 %v1338_v16, %s2493_s18  ;;  %v1437_v16 = vld [vmem:[#allocation8 + $0x218] sm:$0xff] }
0x215f   :  { %1507 = vmatpush.msra.mxu1 %v1482_v50 }
0x21b8   :  { %v1341_v22 = vpop.permute.xlu2 %1340 }
0x21b9   :  { %v1343_v32 = vadd.f32 %v1341_v22, %v1333_v19  ;;  %v1436_v19 = vld [vmem:[#allocation8 + $0x210] sm:$0xff] }
0x21ba   :  { %v1481_v22 = vld [vmem:[#allocation8 + $0x290] sm:$0xff] }
0x21bb   :  { %2272 = vtanh.f32 %v1343_v32  ;;  %1360 = vrot.lane.b32.xlu2 %v1343_v32, %s2494_s19  ;;  %v1435_v32 = vld [vmem:[#allocation8 + $0x208] sm:$0xff]  ;;  %1508 = vmatpush.msra.mxu1 %v1481_v22 }
0x21c1   :  { %v2273_v30 = vpop.eup %2272 }
0x21c2   :  { %1346 = vrot.lane.b32.xlu0 %v2273_v30, %s2492_s17  ;;  %v1480_v30 = vld [vmem:[#allocation8 + $0x288] sm:$0xff] }
0x21c3   :  { %1509 = vmatpush.msra.mxu1 %v1480_v30 }
0x2215   :  { %v1361_v18 = vpop.permute.xlu2 %1360 }
0x2216   :  { %v1363_v34 = vmul.f32 %v1361_v18, %v2682_v51  ;;  %v2888_v18 = vld [vmem:[#allocation9 + $0x58] sm:$0xff] }
0x2217   :  { %1539 = vmatpush.msra.mxu2 %v2888_v18  ;;  %1602 = vmatpush.msra.mxu3 %v2888_v18 }
0x2218   :  { %v1366_v29 = vadd.f32 %v1365_v36, %v1363_v34  ;;  %v1479_v34 = vld [vmem:[#allocation8 + $0x280] sm:$0xff]  ;;  %v2894_v36 = vld [vmem:[#allocation9 + $0x48] sm:$0xff] }
0x2219   :  { %1510 = vmatpush.msra.mxu1 %v1479_v34 }
0x221a   :  { %v1403_v37 = vrot.slane %v1366_v29, 6  ;;  %v2898_v29 = vld [vmem:[#allocation9 + $0x40] sm:$0xff] }
0x2234   :  { %v1347_v33 = vpop.permute.xlu0 %1346 }
0x2235   :  { %v1349_v35 = vmul.f32 %v1347_v33, %v1326_v1  ;;  %v1438_v1 = vld [vmem:[#allocation8 + $0x220] sm:$0xff] }
0x2236   :  { %v1434_v33 = vld [vmem:[#allocation8 + $0x200] sm:$0xff] }
0x2237   :  { %1351 = vrot.lane.b32.xlu1 %v1349_v35, %s2493_s18  ;;  %v2892_v35 = vld [vmem:[#allocation9 + $0x50] sm:$0xff] }
0x2238   :  { %1540 = vmatpush.msra.mxu2 %v2892_v35  ;;  %1603 = vmatpush.msra.mxu3 %v2892_v35 }
0x223a   :  { %1541 = vmatpush.msra.mxu2 %v2894_v36  ;;  %1604 = vmatpush.msra.mxu3 %v2894_v36 }
0x223c   :  { %1542 = vmatpush.msra.mxu2 %v2898_v29  ;;  %1605 = vmatpush.msra.mxu3 %v2898_v29 }
0x223e   :  { %1676 = vmatpush.msrb.mxu2 %v2888_v18 }
0x223f   :  { %1404 = vrot.lane.b32.xlu1 %v1403_v37, %s2493_s18  ;;  %v2329_v37 = vld [vmem:[#allocation11] sm:$0xff] }
0x2240   :  { %1543 = vmatmul.f32.vlgmr.msra.gmra.mxu2 %v2329_v37 }
0x2241   :  { %1677 = vmatpush.msrb.mxu2 %v2892_v35 }
0x2243   :  { %1678 = vmatpush.msrb.mxu2 %v2894_v36 }
0x2245   :  { %1679 = vmatpush.msrb.mxu2 %v2898_v29 }
0x2247   :  { %1828 = vmatpush.msra.mxu2 %v2888_v18 }
0x2249   :  { %1829 = vmatpush.msra.mxu2 %v2892_v35 }
0x224b   :  { %1830 = vmatpush.msra.mxu2 %v2894_v36 }
0x224d   :  { %1831 = vmatpush.msra.mxu2 %v2898_v29 }
0x22a9   :  { %v1352_v40 = vpop.permute.xlu1 %1351 }
0x22aa   :  { %v1354_v42 = vmul.f32 %v1352_v40, %v2682_v51  ;;  %v2916_v40 = vld [vmem:[#allocation6 + $0x8] sm:$0xff] }
0x22ac   :  { %v1358_v43 = vadd.f32 %v1357_v41, %v1354_v42  ;;  %1367 = vst.msk [vmem:[#allocation2 + $0x8] sm:$0x30] %vm402_vm5, %v1354_v42 }
0x22ad   :  { %1368 = vst.msk [vmem:[#allocation2 - $0x2] sm:$0x30] %vm404_vm6, %v1354_v42 }
0x22ae   :  { %v1370_v44 = vrot.slane %v1358_v43, 4 }
0x22b0   :  { %2160 = vmatmul.msk.f32.vlgmr.msrb.gmra.mxu3 %vm188_vm2, %v1370_v44 }
0x22b1   :  { %v1405_v58 = vpop.permute.xlu1 %1404  ;;  %1750 = vmatpush.msrb.mxu3 %v2888_v18 }
0x22b3   :  { %1751 = vmatpush.msrb.mxu3 %v2892_v35 }
0x22b5   :  { %1752 = vmatpush.msrb.mxu3 %v2894_v36 }
0x22b7   :  { %1753 = vmatpush.msrb.mxu3 %v2898_v29 }
0x2333   :  { %v1390_v45 = vpop.f32.mrf.mxu3 }
0x2334   :  { %v1394_v46 = vrot.slane %v1390_v45, 2 }
0x2336   :  { %v1396_v47 = vadd.f32 %v1394_v46, %v2763_v28  ;;  %v1449_v28 = vld [vmem:[#allocation8 + $0x278] sm:$0xff]  ;;  %v2183_v46 = vld [vmem:[%s3069_s4 + $0x2] ss:$0 sm:$0xff]  ;;  %s2495_s4 = smov [#allocation11]  }
0x2337   :  { %1455 = vmatpush.msra.mxu0 %v1449_v28  ;;  %s2113_s24 = sshll.u32 %s2495_s4, 4  ;;  %s2114_s24 = int_to_ptr.vmem [resolvable:$true] %s2113_s24 }
0x2338   :  { %2274 = vtanh.f32 %v1396_v47  ;;  %v1397_v53 = vmul.f32 0.5, %v1396_v47 }
0x2339   :  { %1456 = vmatpush.msra.mxu0 %v1448_v63 }
0x233a   :  { %2276 = vtanh.f32 %v1397_v53 }
0x233b   :  { %1457 = vmatpush.msra.mxu0 %v1447_v7 }
0x233d   :  { %1458 = vmatpush.msra.mxu0 %v1446_v0 }
0x233e   :  { %v2275_v49 = vpop.eup %2274 }
0x233f   :  { %1409 = vrot.lane.b32.xlu0 %v2275_v49, %s2492_s17  ;;  %1459 = vmatpush.msra.mxu0 %v1445_v4 }
0x2340   :  { %v2277_v54 = vpop.eup %2276 }
0x2341   :  { %v1399_v51 = vmul.f32 0.5, %v2277_v54  ;;  %1460 = vmatpush.msra.mxu0 %v1444_v10 }
0x2343   :  { %v1400_v55 = vadd.f32 0.5, %v1399_v51  ;;  %1461 = vmatpush.msra.mxu0 %v1443_v12 }
0x2345   :  { %v1407_v59 = vmul.f32 %v1405_v58, %v1400_v55  ;;  %1462 = vmatpush.msra.mxu0 %v1442_v14  ;;  %v1544_v58 = vpop.f32.mrf.mxu2 }
0x2347   :  { %1463 = vmatpush.msra.mxu0 %v1441_v20 }
0x2349   :  { %1464 = vmatpush.msra.mxu0 %v1440_v23 }
0x234b   :  { %1465 = vmatpush.msra.mxu0 %v1439_v25 }
0x234d   :  { %1466 = vmatpush.msra.mxu0 %v1438_v1 }
0x234f   :  { %1467 = vmatpush.msra.mxu0 %v1437_v16 }
0x2351   :  { %1468 = vmatpush.msra.mxu0 %v1436_v19 }
0x2353   :  { %1469 = vmatpush.msra.mxu0 %v1435_v32 }
0x2355   :  { %1470 = vmatpush.msra.mxu0 %v1434_v33 }
0x23b1   :  { %v1410_v56 = vpop.permute.xlu0 %1409 }
0x23b2   :  { %v1412_v57 = vmul.f32 %v1410_v56, %v1400_v55 }
0x23b4   :  { %1414 = vrot.lane.b32.xlu2 %v1412_v57, %s2493_s18 }
0x240e   :  { %v1415_v52 = vpop.permute.xlu2 %1414 }
0x240f   :  { %v1417_v60 = vadd.f32 %v1415_v52, %v1407_v59 }
0x2411   :  { %2278 = vtanh.f32 %v1417_v60 }
0x2417   :  { %v2279_v61 = vpop.eup %2278 }
0x2418   :  { %1420 = vrot.lane.b32.xlu0 %v2279_v61, %s2492_s17 }
0x248a   :  { %v1421_v27 = vpop.permute.xlu0 %1420 }
0x248b   :  { %v1423_v15 = vmul.f32 %v1421_v27, %v1400_v55 }
0x248d   :  { %1425 = vrot.lane.b32.xlu1 %v1423_v15, %s2493_s18 }
0x24ff   :  { %v1426_v38 = vpop.permute.xlu1 %1425 }
0x2500   :  { %v1428_v41 = vmul.f32 %v2916_v40, %v1426_v38 }
0x2502   :  { %1429 = vst.msk [vmem:[#allocation2 + $0x8] sm:$0xc0] %vm478_vm7, %v1428_v41 }
0x2503   :  { %1430 = vst.msk [vmem:[#allocation2 - $0x6] sm:$0xc0] %vm480_vm8, %v1428_v41 }
0x2509   :  { %v1432_v43 = vld [vmem:[#allocation2 + $0x8] sm:$0xff] }
0x250a   :  { %v1431_v42 = vld [vmem:[#allocation2] sm:$0xff] }
0x250b   :  { %1471 = vmatmul.f32.vlgmr.msra.gmra.mxu0 %v1431_v42  ;;  %1511 = vmatmul.f32.vlgmr.msra.gmra.mxu1 %v1431_v42 }
0x2513   :  { %1474 = vmatmul.f32.gmra.mxu0 %v1432_v43  ;;  %1514 = vmatmul.f32.gmra.mxu1 %v1432_v43 }
0x2588   :  { %v1472_v44 = vpop.f32.mrf.mxu0  ;;  %v1512_v45 = vpop.f32.mrf.mxu1 }
0x2589   :  { %v1473_v47 = vadd.f32 %v2183_v46, %v1472_v44  ;;  %v1809_v49 = vrot.slane %v1512_v45, 6  ;;  %v1882_v51 = vrot.slane %v1512_v45, 2 }
0x2590   :  { %v1475_v53 = vpop.f32.mrf.mxu0  ;;  %v1515_v54 = vpop.f32.mrf.mxu1 }
0x2591   :  { %v1476_v55 = vadd.f32 %v2183_v46, %v1475_v53  ;;  %v1524_v56 = vrot.slane %v1515_v54, 6  ;;  %v1584_v57 = vrot.slane %v1515_v54, 2 }
0x2593   :  { %v2924_v59 = vadd.f32 %v1882_v51, %v1476_v55  ;;  %v2926_v52 = vadd.f32 %v1584_v57, %v1473_v47  ;;  %v2928_v60 = vadd.f32 %v1524_v56, %v1473_v47  ;;  %v2930_v61 = vadd.f32 %v1809_v49, %v1476_v55 }
0x2595   :  { %v1547_v28 = vadd.f32 %v1544_v58, %v2928_v60 }
0x2597   :  { %2280 = vtanh.f32 %v1547_v28  ;;  %v1548_v63 = vmul.f32 0.5, %v1547_v28 }
0x2599   :  { %2282 = vtanh.f32 %v1548_v63 }
0x259d   :  { %v2281_v62 = vpop.eup %2280 }
0x259e   :  { %1555 = vrot.lane.b32.xlu2 %v2281_v62, %s2492_s17 }
0x259f   :  { %v2283_v6 = vpop.eup %2282 }
0x25a0   :  { %v1550_v7 = vmul.f32 0.5, %v2283_v6 }
0x25a2   :  { %v1551_v8 = vadd.f32 0.5, %v1550_v7 }
0x25a4   :  { %v1553_v4 = vmul.f32 0.0, %v1551_v8 }
0x25f8   :  { %v1556_v0 = vpop.permute.xlu2 %1555 }
0x25f9   :  { %v1558_v48 = vmul.f32 %v1556_v0, %v1551_v8 }
0x25fb   :  { %1560 = vrot.lane.b32.xlu0 %v1558_v48, %s2493_s18 }
0x266d   :  { %v1561_v9 = vpop.permute.xlu0 %1560 }
0x266e   :  { %v1563_v10 = vadd.f32 %v1561_v9, %v1553_v4 }
0x2670   :  { %2284 = vtanh.f32 %v1563_v10  ;;  %1577 = vrot.lane.b32.xlu0 %v1563_v10, %s2494_s19 }
0x2676   :  { %v2285_v11 = vpop.eup %2284 }
0x2677   :  { %1566 = vrot.lane.b32.xlu1 %v2285_v11, %s2492_s17 }
0x26e2   :  { %v1578_v12 = vpop.permute.xlu0 %1577 }
0x26e3   :  { %v1580_v14 = vmul.f32 %v2812_v39, %v1578_v12 }
0x26e5   :  { %v1581_v20 = vadd.f32 %v1580_v14, %v2609_v3 }
0x26e7   :  { %v1620_v21 = vrot.slane %v1581_v20, 6 }
0x26e9   :  { %v1567_v13 = vpop.permute.xlu1 %1566  ;;  %v1656_v44 = vmul.f32 %v1620_v21, %v2606_v2 }
0x26ea   :  { %v1569_v17 = vmul.f32 %v1567_v13, %v1551_v8 }
0x26ec   :  { %1571 = vrot.lane.b32.xlu2 %v1569_v17, %s2493_s18 }
0x26f4   :  { %1621 = vrot.lane.b32.xlu2 %v1620_v21, %s2493_s18 }
0x2746   :  { %v1572_v23 = vpop.permute.xlu2 %1571 }
0x2747   :  { %v1574_v24 = vmul.f32 %v2812_v39, %v1572_v23 }
0x2749   :  { %v1575_v25 = vadd.f32 %v1574_v24, %v2609_v3  ;;  %1582 = vst.msk [vmem:[#allocation11] sm:$0x3] %vm248_vm0, %v1574_v24 }
0x274a   :  { %1583 = vst.msk [vmem:[#allocation11 + $0xe] sm:$0x3] %vm250_vm1, %v1574_v24 }
0x274b   :  { %2162 = vmatmul.msk.f32.vlgmr.msra.gmra.mxu3 %vm188_vm2, %v1575_v25  ;;  %v1646_v47 = vrot.slane %v1575_v25, 6 }
0x274c   :  { %1900 = vmatpush.msra.mxu3 %v2888_v18 }
0x274d   :  { %v1648_v53 = vmul.f32 %v1646_v47, %v2606_v2 }
0x274e   :  { %1901 = vmatpush.msra.mxu3 %v2892_v35  ;;  %v1622_v32 = vpop.permute.xlu2 %1621 }
0x2750   :  { %1902 = vmatpush.msra.mxu3 %v2894_v36 }
0x2752   :  { %1903 = vmatpush.msra.mxu3 %v2898_v29 }
0x27ce   :  { %v1607_v26 = vpop.f32.mrf.mxu3 }
0x27cf   :  { %v1611_v27 = vrot.slane %v1607_v26, 6 }
0x27d1   :  { %v1613_v15 = vadd.f32 %v1611_v27, %v2926_v52 }
0x27d3   :  { %2286 = vtanh.f32 %v1613_v15  ;;  %v1614_v1 = vmul.f32 0.5, %v1613_v15 }
0x27d5   :  { %2288 = vtanh.f32 %v1614_v1 }
0x27d9   :  { %v2287_v3 = vpop.eup %2286 }
0x27da   :  { %1626 = vrot.lane.b32.xlu1 %v2287_v3, %s2492_s17 }
0x27db   :  { %v2289_v31 = vpop.eup %2288 }
0x27dc   :  { %v1616_v16 = vmul.f32 0.5, %v2289_v31 }
0x27de   :  { %v1617_v50 = vadd.f32 0.5, %v1616_v16 }
0x27e0   :  { %v1624_v30 = vmul.f32 %v1622_v32, %v1617_v50 }
0x284c   :  { %v1627_v19 = vpop.permute.xlu1 %1626 }
0x284d   :  { %v1629_v22 = vmul.f32 %v1627_v19, %v1617_v50 }
0x284f   :  { %1631 = vrot.lane.b32.xlu0 %v1629_v22, %s2493_s18 }
0x28c1   :  { %v1632_v33 = vpop.permute.xlu0 %1631 }
0x28c2   :  { %v1634_v34 = vadd.f32 %v1632_v33, %v1624_v30 }
0x28c4   :  { %2290 = vtanh.f32 %v1634_v34  ;;  %1651 = vrot.lane.b32.xlu0 %v1634_v34, %s2494_s19 }
0x28ca   :  { %v2291_v37 = vpop.eup %2290 }
0x28cb   :  { %1637 = vrot.lane.b32.xlu1 %v2291_v37, %s2492_s17 }
0x2936   :  { %v1652_v38 = vpop.permute.xlu0 %1651 }
0x2937   :  { %v1654_v42 = vmul.f32 %v2812_v39, %v1652_v38 }
0x2939   :  { %v1657_v45 = vadd.f32 %v1656_v44, %v1654_v42 }
0x293b   :  { %v1694_v46 = vrot.slane %v1657_v45, 6 }
0x293d   :  { %v1638_v41 = vpop.permute.xlu1 %1637  ;;  %v1730_v17 = vmul.f32 %v1694_v46, %v2606_v2 }
0x293e   :  { %v1640_v43 = vmul.f32 %v1638_v41, %v1617_v50 }
0x2940   :  { %1642 = vrot.lane.b32.xlu2 %v1640_v43, %s2493_s18 }
0x2948   :  { %1695 = vrot.lane.b32.xlu2 %v1694_v46, %s2493_s18 }
0x299a   :  { %v1643_v49 = vpop.permute.xlu2 %1642 }
0x299b   :  { %v1645_v54 = vmul.f32 %v2812_v39, %v1643_v49 }
0x299d   :  { %v1649_v51 = vadd.f32 %v1648_v53, %v1645_v54  ;;  %1658 = vst.msk [vmem:[#allocation11] sm:$0xc] %vm326_vm3, %v1645_v54 }
0x299e   :  { %1659 = vst.msk [vmem:[#allocation11 + $0xa] sm:$0xc] %vm328_vm4, %v1645_v54 }
0x299f   :  { %v1661_v55 = vrot.slane %v1649_v51, 2  ;;  %v1720_v23 = vrot.slane %v1649_v51, 6 }
0x29a1   :  { %2163 = vmatmul.msk.f32.vlgmr.msrb.gmra.mxu2 %vm188_vm2, %v1661_v55  ;;  %v1722_v25 = vmul.f32 %v1720_v23, %v2606_v2 }
0x29a2   :  { %1974 = vmatpush.msrb.mxu2 %v2888_v18  ;;  %v1696_v48 = vpop.permute.xlu2 %1695 }
0x29a4   :  { %1975 = vmatpush.msrb.mxu2 %v2892_v35 }
0x29a6   :  { %1976 = vmatpush.msrb.mxu2 %v2894_v36 }
0x29a8   :  { %1977 = vmatpush.msrb.mxu2 %v2898_v29 }
0x2a24   :  { %v1681_v56 = vpop.f32.mrf.mxu2 }
0x2a25   :  { %v1685_v57 = vrot.slane %v1681_v56, 4 }
0x2a27   :  { %v1687_v58 = vadd.f32 %v1685_v57, %v2928_v60 }
0x2a29   :  { %2292 = vtanh.f32 %v1687_v58  ;;  %v1688_v62 = vmul.f32 0.5, %v1687_v58 }
0x2a2b   :  { %2294 = vtanh.f32 %v1688_v62 }
0x2a2f   :  { %v2293_v28 = vpop.eup %2292 }
0x2a30   :  { %1700 = vrot.lane.b32.xlu1 %v2293_v28, %s2492_s17 }
0x2a31   :  { %v2295_v63 = vpop.eup %2294 }
0x2a32   :  { %v1690_v6 = vmul.f32 0.5, %v2295_v63 }
0x2a34   :  { %v1691_v7 = vadd.f32 0.5, %v1690_v6 }
0x2a36   :  { %v1698_v4 = vmul.f32 %v1696_v48, %v1691_v7 }
0x2aa2   :  { %v1701_v8 = vpop.permute.xlu1 %1700 }
0x2aa3   :  { %v1703_v0 = vmul.f32 %v1701_v8, %v1691_v7 }
0x2aa5   :  { %1705 = vrot.lane.b32.xlu0 %v1703_v0, %s2493_s18 }
0x2b17   :  { %v1706_v9 = vpop.permute.xlu0 %1705 }
0x2b18   :  { %v1708_v10 = vadd.f32 %v1706_v9, %v1698_v4 }
0x2b1a   :  { %2296 = vtanh.f32 %v1708_v10  ;;  %1725 = vrot.lane.b32.xlu0 %v1708_v10, %s2494_s19 }
0x2b20   :  { %v2297_v60 = vpop.eup %2296 }
0x2b21   :  { %1711 = vrot.lane.b32.xlu1 %v2297_v60, %s2492_s17 }
0x2b8c   :  { %v1726_v11 = vpop.permute.xlu0 %1725 }
0x2b8d   :  { %v1728_v13 = vmul.f32 %v2812_v39, %v1726_v11 }
0x2b8f   :  { %v1731_v20 = vadd.f32 %v1730_v17, %v1728_v13 }
0x2b91   :  { %v1768_v21 = vrot.slane %v1731_v20, 6 }
0x2b93   :  { %v1712_v12 = vpop.permute.xlu1 %1711  ;;  %v1804_v42 = vmul.f32 %v1768_v21, %v2606_v2 }
0x2b94   :  { %v1714_v14 = vmul.f32 %v1712_v12, %v1691_v7 }
0x2b96   :  { %1716 = vrot.lane.b32.xlu2 %v1714_v14, %s2493_s18 }
0x2b9e   :  { %1769 = vrot.lane.b32.xlu2 %v1768_v21, %s2493_s18 }
0x2bf0   :  { %v1717_v24 = vpop.permute.xlu2 %1716 }
0x2bf1   :  { %v1719_v26 = vmul.f32 %v2812_v39, %v1717_v24 }
0x2bf3   :  { %v1723_v27 = vadd.f32 %v1722_v25, %v1719_v26  ;;  %1732 = vst.msk [vmem:[#allocation11] sm:$0x30] %vm402_vm5, %v1719_v26 }
0x2bf4   :  { %1733 = vst.msk [vmem:[#allocation11 + $0x6] sm:$0x30] %vm404_vm6, %v1719_v26 }
0x2bf5   :  { %v1735_v15 = vrot.slane %v1723_v27, 4  ;;  %v1794_v45 = vrot.slane %v1723_v27, 6 }
0x2bf7   :  { %2164 = vmatmul.msk.f32.vlgmr.msrb.gmra.mxu3 %vm188_vm2, %v1735_v15  ;;  %v1796_v47 = vmul.f32 %v1794_v45, %v2606_v2 }
0x2bf8   :  { %2048 = vmatpush.msrb.mxu3 %v2888_v18 }
0x2bfa   :  { %2049 = vmatpush.msrb.mxu3 %v2892_v35  ;;  %v1770_v35 = vpop.permute.xlu2 %1769 }
0x2bfc   :  { %2050 = vmatpush.msrb.mxu3 %v2894_v36 }
0x2bfe   :  { %2051 = vmatpush.msrb.mxu3 %v2898_v29 }
0x2c7a   :  { %v1755_v3 = vpop.f32.mrf.mxu3 }
0x2c7b   :  { %v1759_v1 = vrot.slane %v1755_v3, 2 }
0x2c7d   :  { %v1761_v31 = vadd.f32 %v1759_v1, %v2926_v52 }
0x2c7f   :  { %2298 = vtanh.f32 %v1761_v31  ;;  %v1762_v50 = vmul.f32 0.5, %v1761_v31 }
0x2c81   :  { %2300 = vtanh.f32 %v1762_v50 }
0x2c85   :  { %v2299_v16 = vpop.eup %2298 }
0x2c86   :  { %1774 = vrot.lane.b32.xlu1 %v2299_v16, %s2492_s17 }
0x2c87   :  { %v2301_v19 = vpop.eup %2300 }
0x2c88   :  { %v1764_v22 = vmul.f32 0.5, %v2301_v19 }
0x2c8a   :  { %v1765_v32 = vadd.f32 0.5, %v1764_v22 }
0x2c8c   :  { %v1772_v36 = vmul.f32 %v1770_v35, %v1765_v32 }
0x2cf8   :  { %v1775_v18 = vpop.permute.xlu1 %1774 }
0x2cf9   :  { %v1777_v30 = vmul.f32 %v1775_v18, %v1765_v32 }
0x2cfb   :  { %1779 = vrot.lane.b32.xlu0 %v1777_v30, %s2493_s18 }
0x2d6d   :  { %v1780_v29 = vpop.permute.xlu0 %1779 }
0x2d6e   :  { %v1782_v33 = vadd.f32 %v1780_v29, %v1772_v36 }
0x2d70   :  { %2302 = vtanh.f32 %v1782_v33  ;;  %1799 = vrot.lane.b32.xlu0 %v1782_v33, %s2494_s19 }
0x2d76   :  { %v2303_v52 = vpop.eup %2302 }
0x2d77   :  { %1785 = vrot.lane.b32.xlu1 %v2303_v52, %s2492_s17 }
0x2de2   :  { %v1800_v34 = vpop.permute.xlu0 %1799 }
0x2de3   :  { %v1802_v38 = vmul.f32 %v2812_v39, %v1800_v34 }
0x2de5   :  { %v1805_v43 = vadd.f32 %v1804_v42, %v1802_v38 }
0x2de7   :  { %v1843_v44 = vrot.slane %v1805_v43, 6 }
0x2de9   :  { %v1786_v37 = vpop.permute.xlu1 %1785  ;;  %v1878_v60 = vmul.f32 %v1843_v44, %v2685_v5 }
0x2dea   :  { %v1788_v41 = vmul.f32 %v1786_v37, %v1765_v32 }
0x2dec   :  { %1790 = vrot.lane.b32.xlu2 %v1788_v41, %s2493_s18 }
0x2df4   :  { %1844 = vrot.lane.b32.xlu2 %v1843_v44, %s2493_s18 }
0x2e46   :  { %v1791_v46 = vpop.permute.xlu2 %1790 }
0x2e47   :  { %v1793_v49 = vmul.f32 %v2812_v39, %v1791_v46 }
0x2e49   :  { %v1797_v53 = vadd.f32 %v1796_v47, %v1793_v49  ;;  %1806 = vst.msk [vmem:[#allocation11] sm:$0xc0] %vm478_vm7, %v1793_v49 }
0x2e4a   :  { %1807 = vst.msk [vmem:[#allocation11 + $0x2] sm:$0xc0] %vm480_vm8, %v1793_v49 }
0x2e4b   :  { %v1813_v54 = vrot.slane %v1797_v53, 6 }
0x2e4d   :  { %2165 = vmatmul.msk.f32.vlgmr.msra.gmra.mxu2 %vm188_vm2, %v1813_v54  ;;  %v1870_v14 = vmul.f32 %v1813_v54, %v2685_v5 }
0x2e4e   :  { %v1845_v63 = vpop.permute.xlu2 %1844 }
0x2ed0   :  { %v1833_v51 = vpop.f32.mrf.mxu2 }
0x2ed1   :  { %v1836_v55 = vadd.f32 %v1833_v51, %v2930_v61 }
0x2ed3   :  { %2304 = vtanh.f32 %v1836_v55  ;;  %v1837_v57 = vmul.f32 0.5, %v1836_v55 }
0x2ed5   :  { %2306 = vtanh.f32 %v1837_v57 }
0x2ed9   :  { %v2305_v56 = vpop.eup %2304 }
0x2eda   :  { %1849 = vrot.lane.b32.xlu1 %v2305_v56, %s2492_s17 }
0x2edb   :  { %v2307_v2 = vpop.eup %2306 }
0x2edc   :  { %v1839_v58 = vmul.f32 0.5, %v2307_v2 }
0x2ede   :  { %v1840_v39 = vadd.f32 0.5, %v1839_v58 }
0x2ee0   :  { %v1847_v6 = vmul.f32 %v1845_v63, %v1840_v39 }
0x2f4c   :  { %v1850_v28 = vpop.permute.xlu1 %1849 }
0x2f4d   :  { %v1852_v62 = vmul.f32 %v1850_v28, %v1840_v39 }
0x2f4f   :  { %1854 = vrot.lane.b32.xlu0 %v1852_v62, %s2493_s18 }
0x2fc1   :  { %v1855_v7 = vpop.permute.xlu0 %1854 }
0x2fc2   :  { %v1857_v8 = vadd.f32 %v1855_v7, %v1847_v6 }
0x2fc4   :  { %2308 = vtanh.f32 %v1857_v8  ;;  %1873 = vrot.lane.b32.xlu0 %v1857_v8, %s2494_s19 }
0x2fca   :  { %v2309_v0 = vpop.eup %2308 }
0x2fcb   :  { %1860 = vrot.lane.b32.xlu1 %v2309_v0, %s2492_s17 }
0x3036   :  { %v1874_v48 = vpop.permute.xlu0 %1873 }
0x3037   :  { %v1876_v9 = vmul.f32 %v2916_v40, %v1874_v48 }
0x3039   :  { %v1879_v11 = vadd.f32 %v1878_v60, %v1876_v9 }
0x303b   :  { %v1918_v12 = vrot.slane %v1879_v11, 6 }
0x303d   :  { %v1861_v4 = vpop.permute.xlu1 %1860  ;;  %v1954_v29 = vmul.f32 %v1918_v12, %v2685_v5 }
0x303e   :  { %v1863_v10 = vmul.f32 %v1861_v4, %v1840_v39 }
0x3040   :  { %1865 = vrot.lane.b32.xlu2 %v1863_v10, %s2493_s18 }
0x3048   :  { %1919 = vrot.lane.b32.xlu2 %v1918_v12, %s2493_s18 }
0x309a   :  { %v1866_v13 = vpop.permute.xlu2 %1865 }
0x309b   :  { %v1868_v17 = vmul.f32 %v2916_v40, %v1866_v13 }
0x309d   :  { %v1871_v20 = vadd.f32 %v1870_v14, %v1868_v17  ;;  %1880 = vst.msk [vmem:[#allocation11 + $0x8] sm:$0x3] %vm248_vm0, %v1868_v17 }
0x309e   :  { %1881 = vst.msk [vmem:[#allocation11 + $0x6] sm:$0x3] %vm250_vm1, %v1868_v17 }
0x309f   :  { %2166 = vmatmul.msk.f32.vlgmr.msra.gmra.mxu3 %vm188_vm2, %v1871_v20  ;;  %v1944_v34 = vrot.slane %v1871_v20, 6 }
0x30a1   :  { %v1946_v38 = vmul.f32 %v1944_v34, %v2685_v5 }
0x30a2   :  { %v1920_v16 = vpop.permute.xlu2 %1919 }
0x3122   :  { %v1905_v21 = vpop.f32.mrf.mxu3 }
0x3123   :  { %v1909_v23 = vrot.slane %v1905_v21, 6 }
0x3125   :  { %v1911_v24 = vadd.f32 %v1909_v23, %v2924_v59 }
0x3127   :  { %2310 = vtanh.f32 %v1911_v24  ;;  %v1912_v26 = vmul.f32 0.5, %v1911_v24 }
0x3129   :  { %2312 = vtanh.f32 %v1912_v26 }
0x312d   :  { %v2311_v25 = vpop.eup %2310 }
0x312e   :  { %1924 = vrot.lane.b32.xlu1 %v2311_v25, %s2492_s17 }
0x312f   :  { %v2313_v27 = vpop.eup %2312 }
0x3130   :  { %v1914_v15 = vmul.f32 0.5, %v2313_v27 }
0x3132   :  { %v1915_v3 = vadd.f32 0.5, %v1914_v15 }
0x3134   :  { %v1922_v50 = vmul.f32 %v1920_v16, %v1915_v3 }
0x31a0   :  { %v1925_v1 = vpop.permute.xlu1 %1924 }
0x31a1   :  { %v1927_v31 = vmul.f32 %v1925_v1, %v1915_v3 }
0x31a3   :  { %1929 = vrot.lane.b32.xlu0 %v1927_v31, %s2493_s18 }
0x3215   :  { %v1930_v19 = vpop.permute.xlu0 %1929 }
0x3216   :  { %v1932_v22 = vadd.f32 %v1930_v19, %v1922_v50 }
0x3218   :  { %2314 = vtanh.f32 %v1932_v22  ;;  %1949 = vrot.lane.b32.xlu0 %v1932_v22, %s2494_s19 }
0x321e   :  { %v2315_v32 = vpop.eup %2314 }
0x321f   :  { %1935 = vrot.lane.b32.xlu1 %v2315_v32, %s2492_s17 }
0x328a   :  { %v1950_v18 = vpop.permute.xlu0 %1949 }
0x328b   :  { %v1952_v35 = vmul.f32 %v2916_v40, %v1950_v18 }
0x328d   :  { %v1955_v33 = vadd.f32 %v1954_v29, %v1952_v35 }
0x328f   :  { %v1992_v52 = vrot.slane %v1955_v33, 6 }
0x3291   :  { %v1936_v30 = vpop.permute.xlu1 %1935  ;;  %v2028_v7 = vmul.f32 %v1992_v52, %v2685_v5 }
0x3292   :  { %v1938_v36 = vmul.f32 %v1936_v30, %v1915_v3 }
0x3294   :  { %1940 = vrot.lane.b32.xlu2 %v1938_v36, %s2493_s18 }
0x329c   :  { %1993 = vrot.lane.b32.xlu2 %v1992_v52, %s2493_s18 }
0x32ee   :  { %v1941_v37 = vpop.permute.xlu2 %1940 }
0x32ef   :  { %v1943_v41 = vmul.f32 %v2916_v40, %v1941_v37 }
0x32f1   :  { %v1947_v42 = vadd.f32 %v1946_v38, %v1943_v41  ;;  %1956 = vst.msk [vmem:[#allocation11 + $0x8] sm:$0xc] %vm326_vm3, %v1943_v41 }
0x32f2   :  { %1957 = vst.msk [vmem:[#allocation11 + $0x2] sm:$0xc] %vm328_vm4, %v1943_v41 }
0x32f3   :  { %v1959_v43 = vrot.slane %v1947_v42, 2  ;;  %v2018_v48 = vrot.slane %v1947_v42, 6 }
0x32f5   :  { %2167 = vmatmul.msk.f32.vlgmr.msrb.gmra.mxu2 %vm188_vm2, %v1959_v43  ;;  %v2020_v9 = vmul.f32 %v2018_v48, %v2685_v5 }
0x32f6   :  { %v1994_v57 = vpop.permute.xlu2 %1993 }
0x3378   :  { %v1979_v44 = vpop.f32.mrf.mxu2 }
0x3379   :  { %v1983_v45 = vrot.slane %v1979_v44, 4 }
0x337b   :  { %v1985_v46 = vadd.f32 %v1983_v45, %v2930_v61 }
0x337d   :  { %2316 = vtanh.f32 %v1985_v46  ;;  %v1986_v49 = vmul.f32 0.5, %v1985_v46 }
0x337f   :  { %2318 = vtanh.f32 %v1986_v49 }
0x3383   :  { %v2317_v47 = vpop.eup %2316 }
0x3384   :  { %1998 = vrot.lane.b32.xlu1 %v2317_v47, %s2492_s17 }
0x3385   :  { %v2319_v53 = vpop.eup %2318 }
0x3386   :  { %v1988_v54 = vmul.f32 0.5, %v2319_v53 }
0x3388   :  { %v1989_v51 = vadd.f32 0.5, %v1988_v54 }
0x338a   :  { %v1996_v2 = vmul.f32 %v1994_v57, %v1989_v51 }
0x33f6   :  { %v1999_v55 = vpop.permute.xlu1 %1998 }
0x33f7   :  { %v2001_v56 = vmul.f32 %v1999_v55, %v1989_v51 }
0x33f9   :  { %2003 = vrot.lane.b32.xlu0 %v2001_v56, %s2493_s18 }
0x346b   :  { %v2004_v58 = vpop.permute.xlu0 %2003 }
0x346c   :  { %v2006_v39 = vadd.f32 %v2004_v58, %v1996_v2 }
0x346e   :  { %2320 = vtanh.f32 %v2006_v39  ;;  %2023 = vrot.lane.b32.xlu0 %v2006_v39, %s2494_s19 }
0x3474   :  { %v2321_v61 = vpop.eup %2320 }
0x3475   :  { %2009 = vrot.lane.b32.xlu1 %v2321_v61, %s2492_s17 }
0x34e0   :  { %v2024_v28 = vpop.permute.xlu0 %2023 }
0x34e1   :  { %v2026_v63 = vmul.f32 %v2916_v40, %v2024_v28 }
0x34e3   :  { %v2029_v8 = vadd.f32 %v2028_v7, %v2026_v63 }
0x34e5   :  { %v2066_v0 = vrot.slane %v2029_v8, 6 }
0x34e7   :  { %v2010_v62 = vpop.permute.xlu1 %2009  ;;  %v2102_v16 = vmul.f32 %v2066_v0, %v2685_v5 }
0x34e8   :  { %v2012_v6 = vmul.f32 %v2010_v62, %v1989_v51 }
0x34ea   :  { %2014 = vrot.lane.b32.xlu2 %v2012_v6, %s2493_s18 }
0x34f2   :  { %2067 = vrot.lane.b32.xlu2 %v2066_v0, %s2493_s18 }
0x3544   :  { %v2015_v4 = vpop.permute.xlu2 %2014 }
0x3545   :  { %v2017_v10 = vmul.f32 %v2916_v40, %v2015_v4 }
0x3547   :  { %v2021_v60 = vadd.f32 %v2020_v9, %v2017_v10  ;;  %2030 = vst.msk [vmem:[#allocation11 + $0x8] sm:$0x30] %vm402_vm5, %v2017_v10 }
0x3548   :  { %2031 = vst.msk [vmem:[#allocation11 - $0x2] sm:$0x30] %vm404_vm6, %v2017_v10 }
0x3549   :  { %v2033_v11 = vrot.slane %v2021_v60, 4  ;;  %v2092_v18 = vrot.slane %v2021_v60, 6 }
0x354b   :  { %2168 = vmatmul.msk.f32.vlgmr.msrb.gmra.mxu3 %vm188_vm2, %v2033_v11  ;;  %v2094_v35 = vmul.f32 %v2092_v18, %v2685_v5 }
0x354c   :  { %v2068_v27 = vpop.permute.xlu2 %2067 }
0x35ce   :  { %v2053_v12 = vpop.f32.mrf.mxu3 }
0x35cf   :  { %v2057_v13 = vrot.slane %v2053_v12, 2 }
0x35d1   :  { %v2059_v14 = vadd.f32 %v2057_v13, %v2924_v59 }
0x35d3   :  { %2322 = vtanh.f32 %v2059_v14  ;;  %v2060_v20 = vmul.f32 0.5, %v2059_v14 }
0x35d5   :  { %2324 = vtanh.f32 %v2060_v20 }
0x35d9   :  { %v2323_v17 = vpop.eup %2322 }
0x35da   :  { %2072 = vrot.lane.b32.xlu1 %v2323_v17, %s2492_s17 }
0x35db   :  { %v2325_v21 = vpop.eup %2324 }
0x35dc   :  { %v2062_v23 = vmul.f32 0.5, %v2325_v21 }
0x35de   :  { %v2063_v24 = vadd.f32 0.5, %v2062_v23 }
0x35e0   :  { %v2070_v15 = vmul.f32 %v2068_v27, %v2063_v24 }
0x364c   :  { %v2073_v25 = vpop.permute.xlu1 %2072 }
0x364d   :  { %v2075_v26 = vmul.f32 %v2073_v25, %v2063_v24 }
0x364f   :  { %2077 = vrot.lane.b32.xlu0 %v2075_v26, %s2493_s18 }
0x36c1   :  { %v2078_v3 = vpop.permute.xlu0 %2077 }
0x36c2   :  { %v2080_v1 = vadd.f32 %v2078_v3, %v2070_v15 }
0x36c4   :  { %2326 = vtanh.f32 %v2080_v1  ;;  %2097 = vrot.lane.b32.xlu0 %v2080_v1, %s2494_s19 }
0x36ca   :  { %v2327_v59 = vpop.eup %2326 }
0x36cb   :  { %2083 = vrot.lane.b32.xlu1 %v2327_v59, %s2492_s17 }
0x3736   :  { %v2098_v31 = vpop.permute.xlu0 %2097 }
0x3737   :  { %v2100_v50 = vmul.f32 %v2916_v40, %v2098_v31 }
0x3739   :  { %v2103_v19 = vadd.f32 %v2102_v16, %v2100_v50 }
0x373b   :  { %2108 = vst.msk [vmem:[#allocation12 - $0x4] sm:$0xc0] %vm2106_vm9, %v2103_v19 }
0x373d   :  { %v2084_v22 = vpop.permute.xlu1 %2083 }
0x373e   :  { %v2086_v32 = vmul.f32 %v2084_v22, %v2063_v24 }
0x3740   :  { %2088 = vrot.lane.b32.xlu2 %v2086_v32, %s2493_s18 }
0x379a   :  { %v2089_v30 = vpop.permute.xlu2 %2088 }
0x379b   :  { %v2091_v36 = vmul.f32 %v2916_v40, %v2089_v30 }
0x379d   :  { %v2095_v29 = vadd.f32 %v2094_v35, %v2091_v36  ;;  %2104 = vst.msk [vmem:[#allocation11 + $0x8] sm:$0xc0] %vm478_vm7, %v2091_v36 }
0x379e   :  { %2105 = vst.msk [vmem:[#allocation11 - $0x6] sm:$0xc0] %vm480_vm8, %v2091_v36 }
0x379f   :  { %2121 = dma.vmem_to_hbm [thread:$0]  %s2114_s24, 256, %s2116_s27, [#allocation5], %s2486_s29, %s2486_s29, %s2487_s30   ;;  %2107 = vst.msk [vmem:[#allocation12 - $0x6] sm:$0xc0] %vm2106_vm9, %v2095_v29 }
0x37a0   :  { %2132 = dma.vmem_to_hbm [thread:$0]  %s2128_s7, 64, %s2130_s10, [#allocation13]  }
0x37a1   :  { %2481 = dma.done.wait [#allocation5], 256  }
0x37a2   :  { %2482 = vsyncadd [#allocation5], 4294967040 }
0x37a3   :  { %2483 = dma.done.wait [#allocation13], 64  }
0x37a4   :  { %2484 = vsyncadd [#allocation13], 4294967232 }
0x37a5   :  { %2141 = vsyncpa [#allocation4], 1 }
0x37a6   :  { %2142 = vsyncpa [#allocation7], 1 }
0x37a7   :  { %2143 = vsyncpa [#allocation10], 1 }
0x37a8   :  { %2144 = vsyncpa [#allocation5], 1 }
0x37a9   :  { %2145 = vsyncpa [#allocation13], 1 }

</bundles_post_ra>
